<compile_context>
chip_gen: v7x
topology: tpu7x:2x2x1
jax: 0.10.0
libtpu: 0.0.40
codegen_flags: <defaults>
</compile_context>

<pallas_src>
import functools

import jax
import jax.numpy as jnp
from jax.experimental import pallas as pl
from jax.experimental.pallas import tpu as pltpu


VMEM_LIMIT = 32 * 1024 * 1024   # safe scoped-VMEM budget on v5e / v6e / v7x


def _round_up(x, m):
    return (x + m - 1) // m * m


# ----------------------------- Pallas kernels ------------------------------

def _matmul_kernel(a_ref, b_ref, bias_ref, o_ref, acc_ref, *, act):
    """Tiled matmul; f32 accumulator; bias + activation fused on last k step."""
    k = pl.program_id(2)

    @pl.when(k == 0)
    def _():
        acc_ref[...] = jnp.zeros_like(acc_ref)

    acc_ref[...] += jnp.dot(a_ref[...], b_ref[...],
                            preferred_element_type=jnp.float32)

    @pl.when(k == pl.num_programs(2) - 1)
    def _():
        y = acc_ref[...] + bias_ref[...]          # bias: (1, tn), broadcast
        if act == "relu":
            y = jnp.maximum(y, 0.0)
        elif act == "tanh":
            y = jnp.tanh(y)
        o_ref[...] = y


def _bn_stats_kernel(x_ref, stat_ref):
    """Accumulate per-channel sum (row 0) and sum of squares (row 1)."""
    @pl.when(pl.program_id(0) == 0)
    def _():
        stat_ref[...] = jnp.zeros_like(stat_ref)

    x = x_ref[...]
    stat_ref[0:1, :] += jnp.sum(x, axis=0, keepdims=True)
    stat_ref[1:2, :] += jnp.sum(x * x, axis=0, keepdims=True)


def _bn_apply_kernel(*refs, count, eps, relu, has_res):
    """Normalize a row tile; ReLU and residual add fused."""
    if has_res:
        x_ref, stat_ref, g_ref, b_ref, r_ref, o_ref = refs
    else:
        x_ref, stat_ref, g_ref, b_ref, o_ref = refs
        r_ref = None
    inv_n = 1.0 / count
    mean = stat_ref[0:1, :] * inv_n
    # TODO(synk): sum/sumsq variance is cancellation-prone for very large
    # activations; a centered second pass would be more robust.
    var = jnp.maximum(stat_ref[1:2, :] * inv_n - mean * mean, 0.0)
    inv = jax.lax.rsqrt(var + eps)
    y = (x_ref[...] - mean) * (inv * g_ref[...]) + b_ref[...]
    if relu:
        y = jnp.maximum(y, 0.0)
    if r_ref is not None:
        y = y + r_ref[...]
    o_ref[...] = y


# ----------------------------- Pallas wrappers ------------------------------

def pallas_matmul(a, b, bias=None, act="none"):
    """out = act(a @ b + bias); a:(M,K) b:(K,N), bf16 MXU path, f32 accumulate."""
    M, K = a.shape
    K2, N = b.shape
    assert K == K2
    tm = min(256, _round_up(M, 16))    # multiple of 16 for bf16 sublane packing
    tn = min(256, _round_up(N, 128))   # 256-aligned N tiles for v6e/v7x MXU
    tk = min(512, _round_up(K, 128))
    Mp, Np, Kp = _round_up(M, tm), _round_up(N, tn), _round_up(K, tk)

    a_p = jnp.pad(a.astype(jnp.bfloat16), ((0, Mp - M), (0, Kp - K)))
    b_p = jnp.pad(b.astype(jnp.bfloat16), ((0, Kp - K), (0, Np - N)))
    if bias is None:
        bias_p = jnp.zeros((1, Np), jnp.float32)
    else:
        bias_p = jnp.pad(bias.astype(jnp.float32), (0, Np - N)).reshape(1, Np)

    out = pl.pallas_call(
        functools.partial(_matmul_kernel, act=act),
        out_shape=jax.ShapeDtypeStruct((Mp, Np), jnp.float32),
        grid=(Mp // tm, Np // tn, Kp // tk),
        in_specs=[
            pl.BlockSpec((tm, tk), lambda i, j, k: (i, k)),
            pl.BlockSpec((tk, tn), lambda i, j, k: (k, j)),
            pl.BlockSpec((1, tn), lambda i, j, k: (0, j)),
        ],
        out_specs=pl.BlockSpec((tm, tn), lambda i, j, k: (i, j)),
        scratch_shapes=[pltpu.VMEM((tm, tn), jnp.float32)],
        compiler_params=pltpu.CompilerParams(
            dimension_semantics=("parallel", "parallel", "arbitrary"),
            vmem_limit_bytes=VMEM_LIMIT),
    )(a_p, b_p, bias_p)
    return out[:M, :N]


def pallas_batchnorm_nhwc(x, gamma, beta, residual=None, relu=False, eps=1e-5):
    """Training-mode BatchNorm over (N*H*W) rows, NHWC layout, tiled over rows.

    ReLU and (optional) residual add are fused into the normalize pass.
    BN math stays f32 (v5e VPU has no bf16)."""
    N, H, W, C = x.shape
    M = N * H * W
    tm = min(512, _round_up(M, 8))
    Mp, Cp = _round_up(M, tm), _round_up(C, 128)

    x_p = jnp.pad(x.reshape(M, C).astype(jnp.float32),
                  ((0, Mp - M), (0, Cp - C)))
    g_p = jnp.pad(gamma.astype(jnp.float32), (0, Cp - C)).reshape(1, Cp)
    b_p = jnp.pad(beta.astype(jnp.float32), (0, Cp - C)).reshape(1, Cp)

    # Pass 1: row-tiled sum / sumsq into a resident (8, Cp) accumulator.
    stats = pl.pallas_call(
        _bn_stats_kernel,
        out_shape=jax.ShapeDtypeStruct((8, Cp), jnp.float32),
        grid=(Mp // tm,),
        in_specs=[pl.BlockSpec((tm, Cp), lambda r: (r, 0))],
        out_specs=pl.BlockSpec((8, Cp), lambda r: (0, 0)),
        compiler_params=pltpu.CompilerParams(
            dimension_semantics=("arbitrary",), vmem_limit_bytes=VMEM_LIMIT),
    )(x_p)

    # Pass 2: row-tiled normalize (+ ReLU, + residual).
    has_res = residual is not None
    args = [x_p, stats, g_p, b_p]
    in_specs = [
        pl.BlockSpec((tm, Cp), lambda r: (r, 0)),
        pl.BlockSpec((8, Cp), lambda r: (0, 0)),
        pl.BlockSpec((1, Cp), lambda r: (0, 0)),
        pl.BlockSpec((1, Cp), lambda r: (0, 0)),
    ]
    if has_res:
        r_p = jnp.pad(residual.reshape(M, C).astype(jnp.float32),
                      ((0, Mp - M), (0, Cp - C)))
        args.append(r_p)
        in_specs.append(pl.BlockSpec((tm, Cp), lambda r: (r, 0)))

    out = pl.pallas_call(
        functools.partial(_bn_apply_kernel, count=float(M), eps=eps,
                          relu=relu, has_res=has_res),
        out_shape=jax.ShapeDtypeStruct((Mp, Cp), jnp.float32),
        grid=(Mp // tm,),
        in_specs=in_specs,
        out_specs=pl.BlockSpec((tm, Cp), lambda r: (r, 0)),
        compiler_params=pltpu.CompilerParams(
            dimension_semantics=("parallel",), vmem_limit_bytes=VMEM_LIMIT),
    )(*args)
    return out[:M, :C].reshape(N, H, W, C)


# ------------------------- conv glue (im2col + MXU) -------------------------

def reflection_pad_nhwc(x, p):
    return jnp.pad(x, ((0, 0), (p, p), (p, p), (0, 0)), mode="reflect")


def conv2d_nhwc(x, w, bias=None, stride=1, act="none"):
    """x: NHWC (already spatially padded), w: (Cout, Cin, kh, kw). Valid conv."""
    N, H, W, C = x.shape
    Cout, Cin, kh, kw = w.shape
    assert Cin == C
    Ho = (H - kh) // stride + 1
    Wo = (W - kw) // stride + 1
    # TODO(synk): im2col still materializes kh*kw shifted copies of the
    # activation in HBM; a per-tap K-loop with strided index_maps inside the
    # matmul grid would remove that bandwidth blowup entirely.
    taps = []
    for i in range(kh):
        for j in range(kw):
            taps.append(x[:, i:i + stride * (Ho - 1) + 1:stride,
                             j:j + stride * (Wo - 1) + 1:stride, :])
    patches = jnp.stack(taps, axis=3)                       # (N, Ho, Wo, kh*kw, C)
    patches = patches.reshape(N * Ho * Wo, kh * kw * C)
    wm = w.transpose(2, 3, 1, 0).reshape(kh * kw * C, Cout)  # (kh*kw*Cin, Cout)
    out = pallas_matmul(patches, wm, bias=bias, act=act)     # (N*Ho*Wo, Cout)
    return out.reshape(N, Ho, Wo, Cout)


def conv_transpose2d_nhwc(x, w):
    """PyTorch ConvTranspose2d(k=3, stride=2, padding=1, output_padding=1, bias=False).

    Sub-pixel decomposition: 4 small stride-1 convs on the undilated input,
    interleaved into the 2x output. No zero-tap MXU waste."""
    N, H, W, Cin = x.shape
    Cout = w.shape[1]
    wc = jnp.flip(w, axis=(2, 3)).transpose(1, 0, 2, 3)      # (Cout, Cin, 3, 3)
    x_r = jnp.pad(x, ((0, 0), (0, 0), (0, 1), (0, 0)))       # +1 col on the right
    x_b = jnp.pad(x, ((0, 0), (0, 1), (0, 0), (0, 0)))       # +1 row at the bottom
    x_br = jnp.pad(x, ((0, 0), (0, 1), (0, 1), (0, 0)))
    s00 = conv2d_nhwc(x, wc[:, :, 1:2, 1:2])                 # even row, even col
    s01 = conv2d_nhwc(x_r, wc[:, :, 1:2, 0::2])              # even row, odd col
    s10 = conv2d_nhwc(x_b, wc[:, :, 0::2, 1:2])              # odd row,  even col
    s11 = conv2d_nhwc(x_br, wc[:, :, 0::2, 0::2])            # odd row,  odd col
    row0 = jnp.stack([s00, s01], axis=3)                     # (N, H, W, 2, Cout)
    row1 = jnp.stack([s10, s11], axis=3)
    out = jnp.stack([row0, row1], axis=2)                    # (N, H, 2, W, 2, Cout)
    return out.reshape(N, 2 * H, 2 * W, Cout)


# ------------------------------ model forward -------------------------------

def resnet_generator_forward(params, x_in, cfg):
    ngf = cfg["ngf"]
    n_blocks = cfg["n_blocks"]
    output_nc = cfg["output_nc"]
    T = cfg["T"]
    B, T_, C, H, W = x_in.shape
    # torch: x = input.view(-1, C, H, W);  convert to NHWC exactly once.
    x = x_in.reshape(B * T_, C, H, W).transpose(0, 2, 3, 1)

    # c7s1-ngf
    h = reflection_pad_nhwc(x, 3)
    h = conv2d_nhwc(h, params["enc_conv1_w"])                 # bias=False (BatchNorm)
    h = pallas_batchnorm_nhwc(h, params["enc_bn1_g"], params["enc_bn1_b"], relu=True)

    # two stride-2 downsampling convs (zero pad 1)
    for i in range(2):
        h = jnp.pad(h, ((0, 0), (1, 1), (1, 1), (0, 0)))
        h = conv2d_nhwc(h, params[f"down{i}_w"], stride=2)
        h = pallas_batchnorm_nhwc(h, params[f"down{i}_bn_g"],
                                  params[f"down{i}_bn_b"], relu=True)

    # ResnetBlocks (reflect padding); residual add fused into the second BN
    for bi in range(n_blocks):
        r = reflection_pad_nhwc(h, 1)
        r = conv2d_nhwc(r, params[f"res{bi}_w1"])
        r = pallas_batchnorm_nhwc(r, params[f"res{bi}_bn1_g"],
                                  params[f"res{bi}_bn1_b"], relu=True)
        r = reflection_pad_nhwc(r, 1)
        r = conv2d_nhwc(r, params[f"res{bi}_w2"])
        h = pallas_batchnorm_nhwc(r, params[f"res{bi}_bn2_g"],
                                  params[f"res{bi}_bn2_b"], relu=False,
                                  residual=h)                 # out = x + conv_block(x)

    # two ConvTranspose2d upsampling layers
    for i in range(2):
        h = conv_transpose2d_nhwc(h, params[f"up{i}_w"])
        h = pallas_batchnorm_nhwc(h, params[f"up{i}_bn_g"],
                                  params[f"up{i}_bn_b"], relu=True)

    # c7s1-output_nc + Tanh (only conv with a bias)
    h = reflection_pad_nhwc(h, 3)
    y = conv2d_nhwc(h, params["dec_out_w"], bias=params["dec_out_b"], act="tanh")

    y = y.transpose(0, 3, 1, 2)                               # NHWC -> NCHW once
    return y.reshape(B, T * output_nc, y.shape[2], y.shape[3])


# ------------------------------ parameter init -------------------------------

def init_params(key, cfg):
    ngf, input_nc = cfg["ngf"], cfg["input_nc"]
    output_nc, n_blocks = cfg["output_nc"], cfg["n_blocks"]
    keys = iter(jax.random.split(key, 64))

    def nrm(shape, scale=0.05):
        return scale * jax.random.normal(next(keys), shape, jnp.float32)

    p = {}
    p["enc_conv1_w"] = nrm((ngf, input_nc, 7, 7))
    p["enc_bn1_g"], p["enc_bn1_b"] = jnp.ones((ngf,)), jnp.zeros((ngf,))
    for i in range(2):
        m = 2 ** i
        p[f"down{i}_w"] = nrm((ngf * m * 2, ngf * m, 3, 3))
        p[f"down{i}_bn_g"] = jnp.ones((ngf * m * 2,))
        p[f"down{i}_bn_b"] = jnp.zeros((ngf * m * 2,))
    dim = ngf * 4
    for bi in range(n_blocks):
        p[f"res{bi}_w1"] = nrm((dim, dim, 3, 3))
        p[f"res{bi}_bn1_g"], p[f"res{bi}_bn1_b"] = jnp.ones((dim,)), jnp.zeros((dim,))
        p[f"res{bi}_w2"] = nrm((dim, dim, 3, 3))
        p[f"res{bi}_bn2_g"], p[f"res{bi}_bn2_b"] = jnp.ones((dim,)), jnp.zeros((dim,))
    for i in range(2):
        m = 2 ** (2 - i)
        # ConvTranspose2d weight layout: (Cin, Cout, kh, kw)
        p[f"up{i}_w"] = nrm((ngf * m, ngf * m // 2, 3, 3))
        p[f"up{i}_bn_g"] = jnp.ones((ngf * m // 2,))
        p[f"up{i}_bn_b"] = jnp.zeros((ngf * m // 2,))
    p["dec_out_w"] = nrm((output_nc, ngf, 7, 7))
    p["dec_out_b"] = jnp.zeros((output_nc,))
    return p


# ----------------------------------- main ------------------------------------

if __name__ == "__main__":
    cfg = dict(input_nc=3, output_nc=3, T=2, ngf=8, n_blocks=2, H=16, W=16)
    key = jax.random.PRNGKey(0)
    pkey, xkey = jax.random.split(key)

    params = init_params(pkey, cfg)
    # input: (B, T, C, H, W) -> reshaped to (B*T, C, H, W) inside forward
    x = jax.random.normal(
        xkey, (1, cfg["T"], cfg["input_nc"], cfg["H"], cfg["W"]), jnp.float32)

    fwd = jax.jit(functools.partial(resnet_generator_forward, cfg=cfg))
    y = fwd(params, x)
    jax.block_until_ready(y)

    assert y.shape == (1, cfg["T"] * cfg["output_nc"], cfg["H"], cfg["W"])
    assert bool(jnp.all(jnp.isfinite(y))) and bool(jnp.all(jnp.abs(y) <= 1.0))
    print("KERNEL_OK")
</pallas_src>

<mosaic_0001>
module attributes {stable_mosaic.version = 11 : i64} {
  func.func @_matmul_kernel(%arg0: i32, %arg1: i32, %arg2: i32, %arg3: memref<256x256xbf16, #tpu.memory_space<vmem>>, %arg4: memref<256x128xbf16, #tpu.memory_space<vmem>>, %arg5: memref<1x128xf32, #tpu.memory_space<vmem>>, %arg6: memref<256x128xf32, #tpu.memory_space<vmem>>, %arg7: memref<256x128xf32, #tpu.memory_space<vmem>>) attributes {dimension_semantics = [#tpu.dimension_semantics<parallel>, #tpu.dimension_semantics<parallel>, #tpu.dimension_semantics<arbitrary>], iteration_bounds = array<i64: 2, 1, 1>, scalar_prefetch = 0 : i64, scratch_operands = 1 : i64, tpu.core_type = #tpu.core_type<tc>, window_params = [{transform_indices = @transform_0, window_bounds = array<i64: 256, 256>}, {transform_indices = @transform_1, window_bounds = array<i64: 256, 128>}, {transform_indices = @transform_2, window_bounds = array<i64: 1, 128>}, {transform_indices = @transform_3, window_bounds = array<i64: 256, 128>}]} {
    %c0_i32 = arith.constant 0 : i32
    %0 = arith.cmpi eq, %arg2, %c0_i32 : i32
    %1 = arith.extui %0 : i1 to i32
    %c0_i32_0 = arith.constant 0 : i32
    %2 = arith.cmpi ne, %1, %c0_i32_0 : i32
    scf.if %2 {
      %cst_10 = arith.constant 0.000000e+00 : f32
      %12 = vector.broadcast %cst_10 : f32 to vector<256x128xf32>
      %c0_11 = arith.constant 0 : index
      %c0_12 = arith.constant 0 : index
      %13 = vector.load %arg7[%c0_11, %c0_12] : memref<256x128xf32, #tpu.memory_space<vmem>>, vector<256x128xf32>
      tpu.vector_store %arg7[%c0_11, %c0_12], %12 {strides = array<i32>} : memref<256x128xf32, #tpu.memory_space<vmem>>, vector<256x128xf32>,
    } else {
    }
    %c0 = arith.constant 0 : index
    %c0_1 = arith.constant 0 : index
    %3 = vector.load %arg7[%c0, %c0_1] : memref<256x128xf32, #tpu.memory_space<vmem>>, vector<256x128xf32>
    %c0_2 = arith.constant 0 : index
    %c0_3 = arith.constant 0 : index
    %4 = vector.load %arg3[%c0_2, %c0_3] : memref<256x256xbf16, #tpu.memory_space<vmem>>, vector<256x256xbf16>
    %c0_4 = arith.constant 0 : index
    %c0_5 = arith.constant 0 : index
    %5 = vector.load %arg4[%c0_4, %c0_5] : memref<256x128xbf16, #tpu.memory_space<vmem>>, vector<256x128xbf16>
    %cst = arith.constant dense<0.000000e+00> : vector<256x128xf32>
    %6 = tpu.matmul %4, %5, %cst {dimension_numbers = #tpu.dot_dimension_numbers<[1], [0], [0], [1], [0, 0, 1, 1], [], []>} : vector<256x256xbf16>, vector<256x128xbf16>, vector<256x128xf32> -> vector<256x128xf32>
    %7 = arith.addf %3, %6 : vector<256x128xf32>
    %c0_6 = arith.constant 0 : index
    %c0_7 = arith.constant 0 : index
    %8 = vector.load %arg7[%c0_6, %c0_7] : memref<256x128xf32, #tpu.memory_space<vmem>>, vector<256x128xf32>
    tpu.vector_store %arg7[%c0_6, %c0_7], %7 {strides = array<i32>} : memref<256x128xf32, #tpu.memory_space<vmem>>, vector<256x128xf32>,
    %c0_i32_8 = arith.constant 0 : i32
    %9 = arith.cmpi eq, %arg2, %c0_i32_8 : i32
    %10 = arith.extui %9 : i1 to i32
    %c0_i32_9 = arith.constant 0 : i32
    %11 = arith.cmpi ne, %10, %c0_i32_9 : i32
    scf.if %11 {
      %c0_10 = arith.constant 0 : index
      %c0_11 = arith.constant 0 : index
      %12 = vector.load %arg7[%c0_10, %c0_11] : memref<256x128xf32, #tpu.memory_space<vmem>>, vector<256x128xf32>
      %c0_12 = arith.constant 0 : index
      %c0_13 = arith.constant 0 : index
      %13 = vector.load %arg5[%c0_12, %c0_13] : memref<1x128xf32, #tpu.memory_space<vmem>>, vector<1x128xf32>
      %14 = vector.broadcast %13 : vector<1x128xf32> to vector<256x128xf32>
      %15 = arith.addf %12, %14 : vector<256x128xf32>
      %c0_14 = arith.constant 0 : index
      %c0_15 = arith.constant 0 : index
      %16 = vector.load %arg6[%c0_14, %c0_15] : memref<256x128xf32, #tpu.memory_space<vmem>>, vector<256x128xf32>
      tpu.vector_store %arg6[%c0_14, %c0_15], %15 {strides = array<i32>} : memref<256x128xf32, #tpu.memory_space<vmem>>, vector<256x128xf32>,
    } else {
    }
    return
  }
  func.func @transform_0(%arg0: i32, %arg1: i32, %arg2: i32) -> (i32, i32) {
    %c0_i32 = arith.constant 0 : i32
    return %arg0, %arg2 : i32, i32
  }
  func.func @transform_1(%arg0: i32, %arg1: i32, %arg2: i32) -> (i32, i32) {
    %c0_i32 = arith.constant 0 : i32
    return %arg2, %arg1 : i32, i32
  }
  func.func @transform_2(%arg0: i32, %arg1: i32, %arg2: i32) -> (i32, i32) {
    %c0_i32 = arith.constant 0 : i32
    %c0_i32_0 = arith.constant 0 : i32
    return %c0_i32, %arg1 : i32, i32
  }
  func.func @transform_3(%arg0: i32, %arg1: i32, %arg2: i32) -> (i32, i32) {
    %c0_i32 = arith.constant 0 : i32
    return %arg0, %arg1 : i32, i32
  }
}

module attributes {stable_mosaic.version = 11 : i64} {
  func.func @_bn_stats_kernel(%arg0: i32, %arg1: memref<512x128xf32, #tpu.memory_space<vmem>>, %arg2: memref<8x128xf32, #tpu.memory_space<vmem>>) attributes {dimension_semantics = [#tpu.dimension_semantics<arbitrary>], iteration_bounds = array<i64: 1>, scalar_prefetch = 0 : i64, scratch_operands = 0 : i64, tpu.core_type = #tpu.core_type<tc>, window_params = [{transform_indices = @transform_0, window_bounds = array<i64: 512, 128>}, {pipeline_mode = #tpu.pipeline_mode<synchronous>, transform_indices = @transform_1, window_bounds = array<i64: 8, 128>}]} {
    %c0_i32 = arith.constant 0 : i32
    %0 = arith.cmpi eq, %arg0, %c0_i32 : i32
    %1 = arith.extui %0 : i1 to i32
    %c0_i32_0 = arith.constant 0 : i32
    %2 = arith.cmpi ne, %1, %c0_i32_0 : i32
    scf.if %2 {
      %cst_10 = arith.constant 0.000000e+00 : f32
      %15 = vector.broadcast %cst_10 : f32 to vector<8x128xf32>
      %c0_11 = arith.constant 0 : index
      %c0_12 = arith.constant 0 : index
      %16 = vector.load %arg2[%c0_11, %c0_12] : memref<8x128xf32, #tpu.memory_space<vmem>>, vector<8x128xf32>
      tpu.vector_store %arg2[%c0_11, %c0_12], %15 {strides = array<i32>} : memref<8x128xf32, #tpu.memory_space<vmem>>, vector<8x128xf32>,
    } else {
    }
    %c0 = arith.constant 0 : index
    %c0_1 = arith.constant 0 : index
    %3 = vector.load %arg1[%c0, %c0_1] : memref<512x128xf32, #tpu.memory_space<vmem>>, vector<512x128xf32>
    %c0_2 = arith.constant 0 : index
    %c0_3 = arith.constant 0 : index
    %4 = vector.load %arg2[%c0_2, %c0_3] : memref<8x128xf32, #tpu.memory_space<vmem>>, vector<1x128xf32>
    %cst = arith.constant dense<0.000000e+00> : vector<128xf32>
    %5 = vector.multi_reduction <add>, %3, %cst [0] : vector<512x128xf32> to vector<128xf32>
    %6 = vector.shape_cast %5 : vector<128xf32> to vector<1x128xf32>
    %7 = arith.addf %4, %6 : vector<1x128xf32>
    %c0_4 = arith.constant 0 : index
    %c0_5 = arith.constant 0 : index
    %8 = vector.load %arg2[%c0_4, %c0_5] : memref<8x128xf32, #tpu.memory_space<vmem>>, vector<1x128xf32>
    tpu.vector_store %arg2[%c0_4, %c0_5], %7 {strides = array<i32>} : memref<8x128xf32, #tpu.memory_space<vmem>>, vector<1x128xf32>,
    %c1 = arith.constant 1 : index
    %c0_6 = arith.constant 0 : index
    %9 = vector.load %arg2[%c1, %c0_6] : memref<8x128xf32, #tpu.memory_space<vmem>>, vector<1x128xf32>
    %10 = arith.mulf %3, %3 : vector<512x128xf32>
    %cst_7 = arith.constant dense<0.000000e+00> : vector<128xf32>
    %11 = vector.multi_reduction <add>, %10, %cst_7 [0] : vector<512x128xf32> to vector<128xf32>
    %12 = vector.shape_cast %11 : vector<128xf32> to vector<1x128xf32>
    %13 = arith.addf %9, %12 : vector<1x128xf32>
    %c1_8 = arith.constant 1 : index
    %c0_9 = arith.constant 0 : index
    %14 = vector.load %arg2[%c1_8, %c0_9] : memref<8x128xf32, #tpu.memory_space<vmem>>, vector<1x128xf32>
    tpu.vector_store %arg2[%c1_8, %c0_9], %13 {strides = array<i32>} : memref<8x128xf32, #tpu.memory_space<vmem>>, vector<1x128xf32>,
    return
  }
  func.func @transform_0(%arg0: i32) -> (i32, i32) {
    %c0_i32 = arith.constant 0 : i32
    %c0_i32_0 = arith.constant 0 : i32
    return %arg0, %c0_i32 : i32, i32
  }
  func.func @transform_1(%arg0: i32) -> (i32, i32) {
    %c0_i32 = arith.constant 0 : i32
    %c0_i32_0 = arith.constant 0 : i32
    %c0_i32_1 = arith.constant 0 : i32
    return %c0_i32, %c0_i32_0 : i32, i32
  }
}

module attributes {stable_mosaic.version = 11 : i64} {
  func.func @_bn_apply_kernel(%arg0: i32, %arg1: memref<512x128xf32, #tpu.memory_space<vmem>>, %arg2: memref<8x128xf32, #tpu.memory_space<vmem>>, %arg3: memref<1x128xf32, #tpu.memory_space<vmem>>, %arg4: memref<1x128xf32, #tpu.memory_space<vmem>>, %arg5: memref<512x128xf32, #tpu.memory_space<vmem>>) attributes {dimension_semantics = [#tpu.dimension_semantics<parallel>], iteration_bounds = array<i64: 1>, scalar_prefetch = 0 : i64, scratch_operands = 0 : i64, tpu.core_type = #tpu.core_type<tc>, window_params = [{transform_indices = @transform_0, window_bounds = array<i64: 512, 128>}, {pipeline_mode = #tpu.pipeline_mode<synchronous>, transform_indices = @transform_1, window_bounds = array<i64: 8, 128>}, {pipeline_mode = #tpu.pipeline_mode<synchronous>, transform_indices = @transform_2, window_bounds = array<i64: 1, 128>}, {pipeline_mode = #tpu.pipeline_mode<synchronous>, transform_indices = @transform_3, window_bounds = array<i64: 1, 128>}, {transform_indices = @transform_4, window_bounds = array<i64: 512, 128>}]} {
    %c0 = arith.constant 0 : index
    %c0_0 = arith.constant 0 : index
    %0 = vector.load %arg2[%c0, %c0_0] : memref<8x128xf32, #tpu.memory_space<vmem>>, vector<1x128xf32>
    %cst = arith.constant 0.001953125 : f32
    %1 = vector.broadcast %cst : f32 to vector<1x128xf32>
    %2 = arith.mulf %0, %1 : vector<1x128xf32>
    %c1 = arith.constant 1 : index
    %c0_1 = arith.constant 0 : index
    %3 = vector.load %arg2[%c1, %c0_1] : memref<8x128xf32, #tpu.memory_space<vmem>>, vector<1x128xf32>
    %cst_2 = arith.constant 0.001953125 : f32
    %4 = vector.broadcast %cst_2 : f32 to vector<1x128xf32>
    %5 = arith.mulf %3, %4 : vector<1x128xf32>
    %6 = arith.mulf %2, %2 : vector<1x128xf32>
    %7 = arith.subf %5, %6 : vector<1x128xf32>
    %cst_3 = arith.constant 0.000000e+00 : f32
    %8 = vector.broadcast %cst_3 : f32 to vector<1x128xf32>
    %9 = arith.maximumf %7, %8 : vector<1x128xf32>
    %cst_4 = arith.constant 9.99999974E-6 : f32
    %10 = vector.broadcast %cst_4 : f32 to vector<1x128xf32>
    %11 = arith.addf %9, %10 : vector<1x128xf32>
    %12 = math.rsqrt %11 : vector<1x128xf32>
    %c0_5 = arith.constant 0 : index
    %c0_6 = arith.constant 0 : index
    %13 = vector.load %arg1[%c0_5, %c0_6] : memref<512x128xf32, #tpu.memory_space<vmem>>, vector<512x128xf32>
    %14 = vector.broadcast %2 : vector<1x128xf32> to vector<512x128xf32>
    %15 = arith.subf %13, %14 : vector<512x128xf32>
    %c0_7 = arith.constant 0 : index
    %c0_8 = arith.constant 0 : index
    %16 = vector.load %arg3[%c0_7, %c0_8] : memref<1x128xf32, #tpu.memory_space<vmem>>, vector<1x128xf32>
    %17 = arith.mulf %12, %16 : vector<1x128xf32>
    %18 = vector.broadcast %17 : vector<1x128xf32> to vector<512x128xf32>
    %19 = arith.mulf %15, %18 : vector<512x128xf32>
    %c0_9 = arith.constant 0 : index
    %c0_10 = arith.constant 0 : index
    %20 = vector.load %arg4[%c0_9, %c0_10] : memref<1x128xf32, #tpu.memory_space<vmem>>, vector<1x128xf32>
    %21 = vector.broadcast %20 : vector<1x128xf32> to vector<512x128xf32>
    %22 = arith.addf %19, %21 : vector<512x128xf32>
    %cst_11 = arith.constant 0.000000e+00 : f32
    %23 = vector.broadcast %cst_11 : f32 to vector<512x128xf32>
    %24 = arith.maximumf %22, %23 : vector<512x128xf32>
    %c0_12 = arith.constant 0 : index
    %c0_13 = arith.constant 0 : index
    %25 = vector.load %arg5[%c0_12, %c0_13] : memref<512x128xf32, #tpu.memory_space<vmem>>, vector<512x128xf32>
    tpu.vector_store %arg5[%c0_12, %c0_13], %24 {strides = array<i32>} : memref<512x128xf32, #tpu.memory_space<vmem>>, vector<512x128xf32>,
    return
  }
  func.func @transform_0(%arg0: i32) -> (i32, i32) {
    %c0_i32 = arith.constant 0 : i32
    %c0_i32_0 = arith.constant 0 : i32
    return %arg0, %c0_i32 : i32, i32
  }
  func.func @transform_1(%arg0: i32) -> (i32, i32) {
    %c0_i32 = arith.constant 0 : i32
    %c0_i32_0 = arith.constant 0 : i32
    %c0_i32_1 = arith.constant 0 : i32
    return %c0_i32, %c0_i32_0 : i32, i32
  }
  func.func @transform_2(%arg0: i32) -> (i32, i32) {
    %c0_i32 = arith.constant 0 : i32
    %c0_i32_0 = arith.constant 0 : i32
    %c0_i32_1 = arith.constant 0 : i32
    return %c0_i32, %c0_i32_0 : i32, i32
  }
  func.func @transform_3(%arg0: i32) -> (i32, i32) {
    %c0_i32 = arith.constant 0 : i32
    %c0_i32_0 = arith.constant 0 : i32
    %c0_i32_1 = arith.constant 0 : i32
    return %c0_i32, %c0_i32_0 : i32, i32
  }
  func.func @transform_4(%arg0: i32) -> (i32, i32) {
    %c0_i32 = arith.constant 0 : i32
    %c0_i32_0 = arith.constant 0 : i32
    return %arg0, %c0_i32 : i32, i32
  }
}

module attributes {stable_mosaic.version = 11 : i64} {
  func.func @_matmul_kernel(%arg0: i32, %arg1: i32, %arg2: i32, %arg3: memref<128x128xbf16, #tpu.memory_space<vmem>>, %arg4: memref<128x128xbf16, #tpu.memory_space<vmem>>, %arg5: memref<1x128xf32, #tpu.memory_space<vmem>>, %arg6: memref<128x128xf32, #tpu.memory_space<vmem>>, %arg7: memref<128x128xf32, #tpu.memory_space<vmem>>) attributes {dimension_semantics = [#tpu.dimension_semantics<parallel>, #tpu.dimension_semantics<parallel>, #tpu.dimension_semantics<arbitrary>], iteration_bounds = array<i64: 1, 1, 1>, scalar_prefetch = 0 : i64, scratch_operands = 1 : i64, tpu.core_type = #tpu.core_type<tc>, window_params = [{transform_indices = @transform_0, window_bounds = array<i64: 128, 128>}, {transform_indices = @transform_1, window_bounds = array<i64: 128, 128>}, {transform_indices = @transform_2, window_bounds = array<i64: 1, 128>}, {transform_indices = @transform_3, window_bounds = array<i64: 128, 128>}]} {
    %c0_i32 = arith.constant 0 : i32
    %0 = arith.cmpi eq, %arg2, %c0_i32 : i32
    %1 = arith.extui %0 : i1 to i32
    %c0_i32_0 = arith.constant 0 : i32
    %2 = arith.cmpi ne, %1, %c0_i32_0 : i32
    scf.if %2 {
      %cst_10 = arith.constant 0.000000e+00 : f32
      %12 = vector.broadcast %cst_10 : f32 to vector<128x128xf32>
      %c0_11 = arith.constant 0 : index
      %c0_12 = arith.constant 0 : index
      %13 = vector.load %arg7[%c0_11, %c0_12] : memref<128x128xf32, #tpu.memory_space<vmem>>, vector<128x128xf32>
      tpu.vector_store %arg7[%c0_11, %c0_12], %12 {strides = array<i32>} : memref<128x128xf32, #tpu.memory_space<vmem>>, vector<128x128xf32>,
    } else {
    }
    %c0 = arith.constant 0 : index
    %c0_1 = arith.constant 0 : index
    %3 = vector.load %arg7[%c0, %c0_1] : memref<128x128xf32, #tpu.memory_space<vmem>>, vector<128x128xf32>
    %c0_2 = arith.constant 0 : index
    %c0_3 = arith.constant 0 : index
    %4 = vector.load %arg3[%c0_2, %c0_3] : memref<128x128xbf16, #tpu.memory_space<vmem>>, vector<128x128xbf16>
    %c0_4 = arith.constant 0 : index
    %c0_5 = arith.constant 0 : index
    %5 = vector.load %arg4[%c0_4, %c0_5] : memref<128x128xbf16, #tpu.memory_space<vmem>>, vector<128x128xbf16>
    %cst = arith.constant dense<0.000000e+00> : vector<128x128xf32>
    %6 = tpu.matmul %4, %5, %cst {dimension_numbers = #tpu.dot_dimension_numbers<[1], [0], [0], [1], [0, 0, 1, 1], [], []>} : vector<128x128xbf16>, vector<128x128xbf16>, vector<128x128xf32> -> vector<128x128xf32>
    %7 = arith.addf %3, %6 : vector<128x128xf32>
    %c0_6 = arith.constant 0 : index
    %c0_7 = arith.constant 0 : index
    %8 = vector.load %arg7[%c0_6, %c0_7] : memref<128x128xf32, #tpu.memory_space<vmem>>, vector<128x128xf32>
    tpu.vector_store %arg7[%c0_6, %c0_7], %7 {strides = array<i32>} : memref<128x128xf32, #tpu.memory_space<vmem>>, vector<128x128xf32>,
    %c0_i32_8 = arith.constant 0 : i32
    %9 = arith.cmpi eq, %arg2, %c0_i32_8 : i32
    %10 = arith.extui %9 : i1 to i32
    %c0_i32_9 = arith.constant 0 : i32
    %11 = arith.cmpi ne, %10, %c0_i32_9 : i32
    scf.if %11 {
      %c0_10 = arith.constant 0 : index
      %c0_11 = arith.constant 0 : index
      %12 = vector.load %arg7[%c0_10, %c0_11] : memref<128x128xf32, #tpu.memory_space<vmem>>, vector<128x128xf32>
      %c0_12 = arith.constant 0 : index
      %c0_13 = arith.constant 0 : index
      %13 = vector.load %arg5[%c0_12, %c0_13] : memref<1x128xf32, #tpu.memory_space<vmem>>, vector<1x128xf32>
      %14 = vector.broadcast %13 : vector<1x128xf32> to vector<128x128xf32>
      %15 = arith.addf %12, %14 : vector<128x128xf32>
      %c0_14 = arith.constant 0 : index
      %c0_15 = arith.constant 0 : index
      %16 = vector.load %arg6[%c0_14, %c0_15] : memref<128x128xf32, #tpu.memory_space<vmem>>, vector<128x128xf32>
      tpu.vector_store %arg6[%c0_14, %c0_15], %15 {strides = array<i32>} : memref<128x128xf32, #tpu.memory_space<vmem>>, vector<128x128xf32>,
    } else {
    }
    return
  }
  func.func @transform_0(%arg0: i32, %arg1: i32, %arg2: i32) -> (i32, i32) {
    %c0_i32 = arith.constant 0 : i32
    return %arg0, %arg2 : i32, i32
  }
  func.func @transform_1(%arg0: i32, %arg1: i32, %arg2: i32) -> (i32, i32) {
    %c0_i32 = arith.constant 0 : i32
    return %arg2, %arg1 : i32, i32
  }
  func.func @transform_2(%arg0: i32, %arg1: i32, %arg2: i32) -> (i32, i32) {
    %c0_i32 = arith.constant 0 : i32
    %c0_i32_0 = arith.constant 0 : i32
    return %c0_i32, %arg1 : i32, i32
  }
  func.func @transform_3(%arg0: i32, %arg1: i32, %arg2: i32) -> (i32, i32) {
    %c0_i32 = arith.constant 0 : i32
    return %arg0, %arg1 : i32, i32
  }
}

module attributes {stable_mosaic.version = 11 : i64} {
  func.func @_bn_stats_kernel(%arg0: i32, %arg1: memref<128x128xf32, #tpu.memory_space<vmem>>, %arg2: memref<8x128xf32, #tpu.memory_space<vmem>>) attributes {dimension_semantics = [#tpu.dimension_semantics<arbitrary>], iteration_bounds = array<i64: 1>, scalar_prefetch = 0 : i64, scratch_operands = 0 : i64, tpu.core_type = #tpu.core_type<tc>, window_params = [{transform_indices = @transform_0, window_bounds = array<i64: 128, 128>}, {pipeline_mode = #tpu.pipeline_mode<synchronous>, transform_indices = @transform_1, window_bounds = array<i64: 8, 128>}]} {
    %c0_i32 = arith.constant 0 : i32
    %0 = arith.cmpi eq, %arg0, %c0_i32 : i32
    %1 = arith.extui %0 : i1 to i32
    %c0_i32_0 = arith.constant 0 : i32
    %2 = arith.cmpi ne, %1, %c0_i32_0 : i32
    scf.if %2 {
      %cst_10 = arith.constant 0.000000e+00 : f32
      %15 = vector.broadcast %cst_10 : f32 to vector<8x128xf32>
      %c0_11 = arith.constant 0 : index
      %c0_12 = arith.constant 0 : index
      %16 = vector.load %arg2[%c0_11, %c0_12] : memref<8x128xf32, #tpu.memory_space<vmem>>, vector<8x128xf32>
      tpu.vector_store %arg2[%c0_11, %c0_12], %15 {strides = array<i32>} : memref<8x128xf32, #tpu.memory_space<vmem>>, vector<8x128xf32>,
    } else {
    }
    %c0 = arith.constant 0 : index
    %c0_1 = arith.constant 0 : index
    %3 = vector.load %arg1[%c0, %c0_1] : memref<128x128xf32, #tpu.memory_space<vmem>>, vector<128x128xf32>
    %c0_2 = arith.constant 0 : index
    %c0_3 = arith.constant 0 : index
    %4 = vector.load %arg2[%c0_2, %c0_3] : memref<8x128xf32, #tpu.memory_space<vmem>>, vector<1x128xf32>
    %cst = arith.constant dense<0.000000e+00> : vector<128xf32>
    %5 = vector.multi_reduction <add>, %3, %cst [0] : vector<128x128xf32> to vector<128xf32>
    %6 = vector.shape_cast %5 : vector<128xf32> to vector<1x128xf32>
    %7 = arith.addf %4, %6 : vector<1x128xf32>
    %c0_4 = arith.constant 0 : index
    %c0_5 = arith.constant 0 : index
    %8 = vector.load %arg2[%c0_4, %c0_5] : memref<8x128xf32, #tpu.memory_space<vmem>>, vector<1x128xf32>
    tpu.vector_store %arg2[%c0_4, %c0_5], %7 {strides = array<i32>} : memref<8x128xf32, #tpu.memory_space<vmem>>, vector<1x128xf32>,
    %c1 = arith.constant 1 : index
    %c0_6 = arith.constant 0 : index
    %9 = vector.load %arg2[%c1, %c0_6] : memref<8x128xf32, #tpu.memory_space<vmem>>, vector<1x128xf32>
    %10 = arith.mulf %3, %3 : vector<128x128xf32>
    %cst_7 = arith.constant dense<0.000000e+00> : vector<128xf32>
    %11 = vector.multi_reduction <add>, %10, %cst_7 [0] : vector<128x128xf32> to vector<128xf32>
    %12 = vector.shape_cast %11 : vector<128xf32> to vector<1x128xf32>
    %13 = arith.addf %9, %12 : vector<1x128xf32>
    %c1_8 = arith.constant 1 : index
    %c0_9 = arith.constant 0 : index
    %14 = vector.load %arg2[%c1_8, %c0_9] : memref<8x128xf32, #tpu.memory_space<vmem>>, vector<1x128xf32>
    tpu.vector_store %arg2[%c1_8, %c0_9], %13 {strides = array<i32>} : memref<8x128xf32, #tpu.memory_space<vmem>>, vector<1x128xf32>,
    return
  }
  func.func @transform_0(%arg0: i32) -> (i32, i32) {
    %c0_i32 = arith.constant 0 : i32
    %c0_i32_0 = arith.constant 0 : i32
    return %arg0, %c0_i32 : i32, i32
  }
  func.func @transform_1(%arg0: i32) -> (i32, i32) {
    %c0_i32 = arith.constant 0 : i32
    %c0_i32_0 = arith.constant 0 : i32
    %c0_i32_1 = arith.constant 0 : i32
    return %c0_i32, %c0_i32_0 : i32, i32
  }
}

module attributes {stable_mosaic.version = 11 : i64} {
  func.func @_bn_apply_kernel(%arg0: i32, %arg1: memref<128x128xf32, #tpu.memory_space<vmem>>, %arg2: memref<8x128xf32, #tpu.memory_space<vmem>>, %arg3: memref<1x128xf32, #tpu.memory_space<vmem>>, %arg4: memref<1x128xf32, #tpu.memory_space<vmem>>, %arg5: memref<128x128xf32, #tpu.memory_space<vmem>>) attributes {dimension_semantics = [#tpu.dimension_semantics<parallel>], iteration_bounds = array<i64: 1>, scalar_prefetch = 0 : i64, scratch_operands = 0 : i64, tpu.core_type = #tpu.core_type<tc>, window_params = [{transform_indices = @transform_0, window_bounds = array<i64: 128, 128>}, {pipeline_mode = #tpu.pipeline_mode<synchronous>, transform_indices = @transform_1, window_bounds = array<i64: 8, 128>}, {pipeline_mode = #tpu.pipeline_mode<synchronous>, transform_indices = @transform_2, window_bounds = array<i64: 1, 128>}, {pipeline_mode = #tpu.pipeline_mode<synchronous>, transform_indices = @transform_3, window_bounds = array<i64: 1, 128>}, {transform_indices = @transform_4, window_bounds = array<i64: 128, 128>}]} {
    %c0 = arith.constant 0 : index
    %c0_0 = arith.constant 0 : index
    %0 = vector.load %arg2[%c0, %c0_0] : memref<8x128xf32, #tpu.memory_space<vmem>>, vector<1x128xf32>
    %cst = arith.constant 7.812500e-03 : f32
    %1 = vector.broadcast %cst : f32 to vector<1x128xf32>
    %2 = arith.mulf %0, %1 : vector<1x128xf32>
    %c1 = arith.constant 1 : index
    %c0_1 = arith.constant 0 : index
    %3 = vector.load %arg2[%c1, %c0_1] : memref<8x128xf32, #tpu.memory_space<vmem>>, vector<1x128xf32>
    %cst_2 = arith.constant 7.812500e-03 : f32
    %4 = vector.broadcast %cst_2 : f32 to vector<1x128xf32>
    %5 = arith.mulf %3, %4 : vector<1x128xf32>
    %6 = arith.mulf %2, %2 : vector<1x128xf32>
    %7 = arith.subf %5, %6 : vector<1x128xf32>
    %cst_3 = arith.constant 0.000000e+00 : f32
    %8 = vector.broadcast %cst_3 : f32 to vector<1x128xf32>
    %9 = arith.maximumf %7, %8 : vector<1x128xf32>
    %cst_4 = arith.constant 9.99999974E-6 : f32
    %10 = vector.broadcast %cst_4 : f32 to vector<1x128xf32>
    %11 = arith.addf %9, %10 : vector<1x128xf32>
    %12 = math.rsqrt %11 : vector<1x128xf32>
    %c0_5 = arith.constant 0 : index
    %c0_6 = arith.constant 0 : index
    %13 = vector.load %arg1[%c0_5, %c0_6] : memref<128x128xf32, #tpu.memory_space<vmem>>, vector<128x128xf32>
    %14 = vector.broadcast %2 : vector<1x128xf32> to vector<128x128xf32>
    %15 = arith.subf %13, %14 : vector<128x128xf32>
    %c0_7 = arith.constant 0 : index
    %c0_8 = arith.constant 0 : index
    %16 = vector.load %arg3[%c0_7, %c0_8] : memref<1x128xf32, #tpu.memory_space<vmem>>, vector<1x128xf32>
    %17 = arith.mulf %12, %16 : vector<1x128xf32>
    %18 = vector.broadcast %17 : vector<1x128xf32> to vector<128x128xf32>
    %19 = arith.mulf %15, %18 : vector<128x128xf32>
    %c0_9 = arith.constant 0 : index
    %c0_10 = arith.constant 0 : index
    %20 = vector.load %arg4[%c0_9, %c0_10] : memref<1x128xf32, #tpu.memory_space<vmem>>, vector<1x128xf32>
    %21 = vector.broadcast %20 : vector<1x128xf32> to vector<128x128xf32>
    %22 = arith.addf %19, %21 : vector<128x128xf32>
    %cst_11 = arith.constant 0.000000e+00 : f32
    %23 = vector.broadcast %cst_11 : f32 to vector<128x128xf32>
    %24 = arith.maximumf %22, %23 : vector<128x128xf32>
    %c0_12 = arith.constant 0 : index
    %c0_13 = arith.constant 0 : index
    %25 = vector.load %arg5[%c0_12, %c0_13] : memref<128x128xf32, #tpu.memory_space<vmem>>, vector<128x128xf32>
    tpu.vector_store %arg5[%c0_12, %c0_13], %24 {strides = array<i32>} : memref<128x128xf32, #tpu.memory_space<vmem>>, vector<128x128xf32>,
    return
  }
  func.func @transform_0(%arg0: i32) -> (i32, i32) {
    %c0_i32 = arith.constant 0 : i32
    %c0_i32_0 = arith.constant 0 : i32
    return %arg0, %c0_i32 : i32, i32
  }
  func.func @transform_1(%arg0: i32) -> (i32, i32) {
    %c0_i32 = arith.constant 0 : i32
    %c0_i32_0 = arith.constant 0 : i32
    %c0_i32_1 = arith.constant 0 : i32
    return %c0_i32, %c0_i32_0 : i32, i32
  }
  func.func @transform_2(%arg0: i32) -> (i32, i32) {
    %c0_i32 = arith.constant 0 : i32
    %c0_i32_0 = arith.constant 0 : i32
    %c0_i32_1 = arith.constant 0 : i32
    return %c0_i32, %c0_i32_0 : i32, i32
  }
  func.func @transform_3(%arg0: i32) -> (i32, i32) {
    %c0_i32 = arith.constant 0 : i32
    %c0_i32_0 = arith.constant 0 : i32
    %c0_i32_1 = arith.constant 0 : i32
    return %c0_i32, %c0_i32_0 : i32, i32
  }
  func.func @transform_4(%arg0: i32) -> (i32, i32) {
    %c0_i32 = arith.constant 0 : i32
    %c0_i32_0 = arith.constant 0 : i32
    return %arg0, %c0_i32 : i32, i32
  }
}

module attributes {stable_mosaic.version = 11 : i64} {
  func.func @_matmul_kernel(%arg0: i32, %arg1: i32, %arg2: i32, %arg3: memref<32x256xbf16, #tpu.memory_space<vmem>>, %arg4: memref<256x128xbf16, #tpu.memory_space<vmem>>, %arg5: memref<1x128xf32, #tpu.memory_space<vmem>>, %arg6: memref<32x128xf32, #tpu.memory_space<vmem>>, %arg7: memref<32x128xf32, #tpu.memory_space<vmem>>) attributes {dimension_semantics = [#tpu.dimension_semantics<parallel>, #tpu.dimension_semantics<parallel>, #tpu.dimension_semantics<arbitrary>], iteration_bounds = array<i64: 1, 1, 1>, scalar_prefetch = 0 : i64, scratch_operands = 1 : i64, tpu.core_type = #tpu.core_type<tc>, window_params = [{transform_indices = @transform_0, window_bounds = array<i64: 32, 256>}, {transform_indices = @transform_1, window_bounds = array<i64: 256, 128>}, {transform_indices = @transform_2, window_bounds = array<i64: 1, 128>}, {transform_indices = @transform_3, window_bounds = array<i64: 32, 128>}]} {
    %c0_i32 = arith.constant 0 : i32
    %0 = arith.cmpi eq, %arg2, %c0_i32 : i32
    %1 = arith.extui %0 : i1 to i32
    %c0_i32_0 = arith.constant 0 : i32
    %2 = arith.cmpi ne, %1, %c0_i32_0 : i32
    scf.if %2 {
      %cst_10 = arith.constant 0.000000e+00 : f32
      %12 = vector.broadcast %cst_10 : f32 to vector<32x128xf32>
      %c0_11 = arith.constant 0 : index
      %c0_12 = arith.constant 0 : index
      %13 = vector.load %arg7[%c0_11, %c0_12] : memref<32x128xf32, #tpu.memory_space<vmem>>, vector<32x128xf32>
      tpu.vector_store %arg7[%c0_11, %c0_12], %12 {strides = array<i32>} : memref<32x128xf32, #tpu.memory_space<vmem>>, vector<32x128xf32>,
    } else {
    }
    %c0 = arith.constant 0 : index
    %c0_1 = arith.constant 0 : index
    %3 = vector.load %arg7[%c0, %c0_1] : memref<32x128xf32, #tpu.memory_space<vmem>>, vector<32x128xf32>
    %c0_2 = arith.constant 0 : index
    %c0_3 = arith.constant 0 : index
    %4 = vector.load %arg3[%c0_2, %c0_3] : memref<32x256xbf16, #tpu.memory_space<vmem>>, vector<32x256xbf16>
    %c0_4 = arith.constant 0 : index
    %c0_5 = arith.constant 0 : index
    %5 = vector.load %arg4[%c0_4, %c0_5] : memref<256x128xbf16, #tpu.memory_space<vmem>>, vector<256x128xbf16>
    %cst = arith.constant dense<0.000000e+00> : vector<32x128xf32>
    %6 = tpu.matmul %4, %5, %cst {dimension_numbers = #tpu.dot_dimension_numbers<[1], [0], [0], [1], [0, 0, 1, 1], [], []>} : vector<32x256xbf16>, vector<256x128xbf16>, vector<32x128xf32> -> vector<32x128xf32>
    %7 = arith.addf %3, %6 : vector<32x128xf32>
    %c0_6 = arith.constant 0 : index
    %c0_7 = arith.constant 0 : index
    %8 = vector.load %arg7[%c0_6, %c0_7] : memref<32x128xf32, #tpu.memory_space<vmem>>, vector<32x128xf32>
    tpu.vector_store %arg7[%c0_6, %c0_7], %7 {strides = array<i32>} : memref<32x128xf32, #tpu.memory_space<vmem>>, vector<32x128xf32>,
    %c0_i32_8 = arith.constant 0 : i32
    %9 = arith.cmpi eq, %arg2, %c0_i32_8 : i32
    %10 = arith.extui %9 : i1 to i32
    %c0_i32_9 = arith.constant 0 : i32
    %11 = arith.cmpi ne, %10, %c0_i32_9 : i32
    scf.if %11 {
      %c0_10 = arith.constant 0 : index
      %c0_11 = arith.constant 0 : index
      %12 = vector.load %arg7[%c0_10, %c0_11] : memref<32x128xf32, #tpu.memory_space<vmem>>, vector<32x128xf32>
      %c0_12 = arith.constant 0 : index
      %c0_13 = arith.constant 0 : index
      %13 = vector.load %arg5[%c0_12, %c0_13] : memref<1x128xf32, #tpu.memory_space<vmem>>, vector<1x128xf32>
      %14 = vector.broadcast %13 : vector<1x128xf32> to vector<32x128xf32>
      %15 = arith.addf %12, %14 : vector<32x128xf32>
      %c0_14 = arith.constant 0 : index
      %c0_15 = arith.constant 0 : index
      %16 = vector.load %arg6[%c0_14, %c0_15] : memref<32x128xf32, #tpu.memory_space<vmem>>, vector<32x128xf32>
      tpu.vector_store %arg6[%c0_14, %c0_15], %15 {strides = array<i32>} : memref<32x128xf32, #tpu.memory_space<vmem>>, vector<32x128xf32>,
    } else {
    }
    return
  }
  func.func @transform_0(%arg0: i32, %arg1: i32, %arg2: i32) -> (i32, i32) {
    %c0_i32 = arith.constant 0 : i32
    return %arg0, %arg2 : i32, i32
  }
  func.func @transform_1(%arg0: i32, %arg1: i32, %arg2: i32) -> (i32, i32) {
    %c0_i32 = arith.constant 0 : i32
    return %arg2, %arg1 : i32, i32
  }
  func.func @transform_2(%arg0: i32, %arg1: i32, %arg2: i32) -> (i32, i32) {
    %c0_i32 = arith.constant 0 : i32
    %c0_i32_0 = arith.constant 0 : i32
    return %c0_i32, %arg1 : i32, i32
  }
  func.func @transform_3(%arg0: i32, %arg1: i32, %arg2: i32) -> (i32, i32) {
    %c0_i32 = arith.constant 0 : i32
    return %arg0, %arg1 : i32, i32
  }
}

module attributes {stable_mosaic.version = 11 : i64} {
  func.func @_bn_stats_kernel(%arg0: i32, %arg1: memref<32x128xf32, #tpu.memory_space<vmem>>, %arg2: memref<8x128xf32, #tpu.memory_space<vmem>>) attributes {dimension_semantics = [#tpu.dimension_semantics<arbitrary>], iteration_bounds = array<i64: 1>, scalar_prefetch = 0 : i64, scratch_operands = 0 : i64, tpu.core_type = #tpu.core_type<tc>, window_params = [{transform_indices = @transform_0, window_bounds = array<i64: 32, 128>}, {pipeline_mode = #tpu.pipeline_mode<synchronous>, transform_indices = @transform_1, window_bounds = array<i64: 8, 128>}]} {
    %c0_i32 = arith.constant 0 : i32
    %0 = arith.cmpi eq, %arg0, %c0_i32 : i32
    %1 = arith.extui %0 : i1 to i32
    %c0_i32_0 = arith.constant 0 : i32
    %2 = arith.cmpi ne, %1, %c0_i32_0 : i32
    scf.if %2 {
      %cst_10 = arith.constant 0.000000e+00 : f32
      %15 = vector.broadcast %cst_10 : f32 to vector<8x128xf32>
      %c0_11 = arith.constant 0 : index
      %c0_12 = arith.constant 0 : index
      %16 = vector.load %arg2[%c0_11, %c0_12] : memref<8x128xf32, #tpu.memory_space<vmem>>, vector<8x128xf32>
      tpu.vector_store %arg2[%c0_11, %c0_12], %15 {strides = array<i32>} : memref<8x128xf32, #tpu.memory_space<vmem>>, vector<8x128xf32>,
    } else {
    }
    %c0 = arith.constant 0 : index
    %c0_1 = arith.constant 0 : index
    %3 = vector.load %arg1[%c0, %c0_1] : memref<32x128xf32, #tpu.memory_space<vmem>>, vector<32x128xf32>
    %c0_2 = arith.constant 0 : index
    %c0_3 = arith.constant 0 : index
    %4 = vector.load %arg2[%c0_2, %c0_3] : memref<8x128xf32, #tpu.memory_space<vmem>>, vector<1x128xf32>
    %cst = arith.constant dense<0.000000e+00> : vector<128xf32>
    %5 = vector.multi_reduction <add>, %3, %cst [0] : vector<32x128xf32> to vector<128xf32>
    %6 = vector.shape_cast %5 : vector<128xf32> to vector<1x128xf32>
    %7 = arith.addf %4, %6 : vector<1x128xf32>
    %c0_4 = arith.constant 0 : index
    %c0_5 = arith.constant 0 : index
    %8 = vector.load %arg2[%c0_4, %c0_5] : memref<8x128xf32, #tpu.memory_space<vmem>>, vector<1x128xf32>
    tpu.vector_store %arg2[%c0_4, %c0_5], %7 {strides = array<i32>} : memref<8x128xf32, #tpu.memory_space<vmem>>, vector<1x128xf32>,
    %c1 = arith.constant 1 : index
    %c0_6 = arith.constant 0 : index
    %9 = vector.load %arg2[%c1, %c0_6] : memref<8x128xf32, #tpu.memory_space<vmem>>, vector<1x128xf32>
    %10 = arith.mulf %3, %3 : vector<32x128xf32>
    %cst_7 = arith.constant dense<0.000000e+00> : vector<128xf32>
    %11 = vector.multi_reduction <add>, %10, %cst_7 [0] : vector<32x128xf32> to vector<128xf32>
    %12 = vector.shape_cast %11 : vector<128xf32> to vector<1x128xf32>
    %13 = arith.addf %9, %12 : vector<1x128xf32>
    %c1_8 = arith.constant 1 : index
    %c0_9 = arith.constant 0 : index
    %14 = vector.load %arg2[%c1_8, %c0_9] : memref<8x128xf32, #tpu.memory_space<vmem>>, vector<1x128xf32>
    tpu.vector_store %arg2[%c1_8, %c0_9], %13 {strides = array<i32>} : memref<8x128xf32, #tpu.memory_space<vmem>>, vector<1x128xf32>,
    return
  }
  func.func @transform_0(%arg0: i32) -> (i32, i32) {
    %c0_i32 = arith.constant 0 : i32
    %c0_i32_0 = arith.constant 0 : i32
    return %arg0, %c0_i32 : i32, i32
  }
  func.func @transform_1(%arg0: i32) -> (i32, i32) {
    %c0_i32 = arith.constant 0 : i32
    %c0_i32_0 = arith.constant 0 : i32
    %c0_i32_1 = arith.constant 0 : i32
    return %c0_i32, %c0_i32_0 : i32, i32
  }
}

module attributes {stable_mosaic.version = 11 : i64} {
  func.func @_bn_apply_kernel(%arg0: i32, %arg1: memref<32x128xf32, #tpu.memory_space<vmem>>, %arg2: memref<8x128xf32, #tpu.memory_space<vmem>>, %arg3: memref<1x128xf32, #tpu.memory_space<vmem>>, %arg4: memref<1x128xf32, #tpu.memory_space<vmem>>, %arg5: memref<32x128xf32, #tpu.memory_space<vmem>>) attributes {dimension_semantics = [#tpu.dimension_semantics<parallel>], iteration_bounds = array<i64: 1>, scalar_prefetch = 0 : i64, scratch_operands = 0 : i64, tpu.core_type = #tpu.core_type<tc>, window_params = [{transform_indices = @transform_0, window_bounds = array<i64: 32, 128>}, {pipeline_mode = #tpu.pipeline_mode<synchronous>, transform_indices = @transform_1, window_bounds = array<i64: 8, 128>}, {pipeline_mode = #tpu.pipeline_mode<synchronous>, transform_indices = @transform_2, window_bounds = array<i64: 1, 128>}, {pipeline_mode = #tpu.pipeline_mode<synchronous>, transform_indices = @transform_3, window_bounds = array<i64: 1, 128>}, {transform_indices = @transform_4, window_bounds = array<i64: 32, 128>}]} {
    %c0 = arith.constant 0 : index
    %c0_0 = arith.constant 0 : index
    %0 = vector.load %arg2[%c0, %c0_0] : memref<8x128xf32, #tpu.memory_space<vmem>>, vector<1x128xf32>
    %cst = arith.constant 3.125000e-02 : f32
    %1 = vector.broadcast %cst : f32 to vector<1x128xf32>
    %2 = arith.mulf %0, %1 : vector<1x128xf32>
    %c1 = arith.constant 1 : index
    %c0_1 = arith.constant 0 : index
    %3 = vector.load %arg2[%c1, %c0_1] : memref<8x128xf32, #tpu.memory_space<vmem>>, vector<1x128xf32>
    %cst_2 = arith.constant 3.125000e-02 : f32
    %4 = vector.broadcast %cst_2 : f32 to vector<1x128xf32>
    %5 = arith.mulf %3, %4 : vector<1x128xf32>
    %6 = arith.mulf %2, %2 : vector<1x128xf32>
    %7 = arith.subf %5, %6 : vector<1x128xf32>
    %cst_3 = arith.constant 0.000000e+00 : f32
    %8 = vector.broadcast %cst_3 : f32 to vector<1x128xf32>
    %9 = arith.maximumf %7, %8 : vector<1x128xf32>
    %cst_4 = arith.constant 9.99999974E-6 : f32
    %10 = vector.broadcast %cst_4 : f32 to vector<1x128xf32>
    %11 = arith.addf %9, %10 : vector<1x128xf32>
    %12 = math.rsqrt %11 : vector<1x128xf32>
    %c0_5 = arith.constant 0 : index
    %c0_6 = arith.constant 0 : index
    %13 = vector.load %arg1[%c0_5, %c0_6] : memref<32x128xf32, #tpu.memory_space<vmem>>, vector<32x128xf32>
    %14 = vector.broadcast %2 : vector<1x128xf32> to vector<32x128xf32>
    %15 = arith.subf %13, %14 : vector<32x128xf32>
    %c0_7 = arith.constant 0 : index
    %c0_8 = arith.constant 0 : index
    %16 = vector.load %arg3[%c0_7, %c0_8] : memref<1x128xf32, #tpu.memory_space<vmem>>, vector<1x128xf32>
    %17 = arith.mulf %12, %16 : vector<1x128xf32>
    %18 = vector.broadcast %17 : vector<1x128xf32> to vector<32x128xf32>
    %19 = arith.mulf %15, %18 : vector<32x128xf32>
    %c0_9 = arith.constant 0 : index
    %c0_10 = arith.constant 0 : index
    %20 = vector.load %arg4[%c0_9, %c0_10] : memref<1x128xf32, #tpu.memory_space<vmem>>, vector<1x128xf32>
    %21 = vector.broadcast %20 : vector<1x128xf32> to vector<32x128xf32>
    %22 = arith.addf %19, %21 : vector<32x128xf32>
    %cst_11 = arith.constant 0.000000e+00 : f32
    %23 = vector.broadcast %cst_11 : f32 to vector<32x128xf32>
    %24 = arith.maximumf %22, %23 : vector<32x128xf32>
    %c0_12 = arith.constant 0 : index
    %c0_13 = arith.constant 0 : index
    %25 = vector.load %arg5[%c0_12, %c0_13] : memref<32x128xf32, #tpu.memory_space<vmem>>, vector<32x128xf32>
    tpu.vector_store %arg5[%c0_12, %c0_13], %24 {strides = array<i32>} : memref<32x128xf32, #tpu.memory_space<vmem>>, vector<32x128xf32>,
    return
  }
  func.func @transform_0(%arg0: i32) -> (i32, i32) {
    %c0_i32 = arith.constant 0 : i32
    %c0_i32_0 = arith.constant 0 : i32
    return %arg0, %c0_i32 : i32, i32
  }
  func.func @transform_1(%arg0: i32) -> (i32, i32) {
    %c0_i32 = arith.constant 0 : i32
    %c0_i32_0 = arith.constant 0 : i32
    %c0_i32_1 = arith.constant 0 : i32
    return %c0_i32, %c0_i32_0 : i32, i32
  }
  func.func @transform_2(%arg0: i32) -> (i32, i32) {
    %c0_i32 = arith.constant 0 : i32
    %c0_i32_0 = arith.constant 0 : i32
    %c0_i32_1 = arith.constant 0 : i32
    return %c0_i32, %c0_i32_0 : i32, i32
  }
  func.func @transform_3(%arg0: i32) -> (i32, i32) {
    %c0_i32 = arith.constant 0 : i32
    %c0_i32_0 = arith.constant 0 : i32
    %c0_i32_1 = arith.constant 0 : i32
    return %c0_i32, %c0_i32_0 : i32, i32
  }
  func.func @transform_4(%arg0: i32) -> (i32, i32) {
    %c0_i32 = arith.constant 0 : i32
    %c0_i32_0 = arith.constant 0 : i32
    return %arg0, %c0_i32 : i32, i32
  }
}

module attributes {stable_mosaic.version = 11 : i64} {
  func.func @_bn_apply_kernel(%arg0: i32, %arg1: memref<32x128xf32, #tpu.memory_space<vmem>>, %arg2: memref<8x128xf32, #tpu.memory_space<vmem>>, %arg3: memref<1x128xf32, #tpu.memory_space<vmem>>, %arg4: memref<1x128xf32, #tpu.memory_space<vmem>>, %arg5: memref<32x128xf32, #tpu.memory_space<vmem>>, %arg6: memref<32x128xf32, #tpu.memory_space<vmem>>) attributes {dimension_semantics = [#tpu.dimension_semantics<parallel>], iteration_bounds = array<i64: 1>, scalar_prefetch = 0 : i64, scratch_operands = 0 : i64, tpu.core_type = #tpu.core_type<tc>, window_params = [{transform_indices = @transform_0, window_bounds = array<i64: 32, 128>}, {pipeline_mode = #tpu.pipeline_mode<synchronous>, transform_indices = @transform_1, window_bounds = array<i64: 8, 128>}, {pipeline_mode = #tpu.pipeline_mode<synchronous>, transform_indices = @transform_2, window_bounds = array<i64: 1, 128>}, {pipeline_mode = #tpu.pipeline_mode<synchronous>, transform_indices = @transform_3, window_bounds = array<i64: 1, 128>}, {transform_indices = @transform_4, window_bounds = array<i64: 32, 128>}, {transform_indices = @transform_5, window_bounds = array<i64: 32, 128>}]} {
    %c0 = arith.constant 0 : index
    %c0_0 = arith.constant 0 : index
    %0 = vector.load %arg2[%c0, %c0_0] : memref<8x128xf32, #tpu.memory_space<vmem>>, vector<1x128xf32>
    %cst = arith.constant 3.125000e-02 : f32
    %1 = vector.broadcast %cst : f32 to vector<1x128xf32>
    %2 = arith.mulf %0, %1 : vector<1x128xf32>
    %c1 = arith.constant 1 : index
    %c0_1 = arith.constant 0 : index
    %3 = vector.load %arg2[%c1, %c0_1] : memref<8x128xf32, #tpu.memory_space<vmem>>, vector<1x128xf32>
    %cst_2 = arith.constant 3.125000e-02 : f32
    %4 = vector.broadcast %cst_2 : f32 to vector<1x128xf32>
    %5 = arith.mulf %3, %4 : vector<1x128xf32>
    %6 = arith.mulf %2, %2 : vector<1x128xf32>
    %7 = arith.subf %5, %6 : vector<1x128xf32>
    %cst_3 = arith.constant 0.000000e+00 : f32
    %8 = vector.broadcast %cst_3 : f32 to vector<1x128xf32>
    %9 = arith.maximumf %7, %8 : vector<1x128xf32>
    %cst_4 = arith.constant 9.99999974E-6 : f32
    %10 = vector.broadcast %cst_4 : f32 to vector<1x128xf32>
    %11 = arith.addf %9, %10 : vector<1x128xf32>
    %12 = math.rsqrt %11 : vector<1x128xf32>
    %c0_5 = arith.constant 0 : index
    %c0_6 = arith.constant 0 : index
    %13 = vector.load %arg1[%c0_5, %c0_6] : memref<32x128xf32, #tpu.memory_space<vmem>>, vector<32x128xf32>
    %14 = vector.broadcast %2 : vector<1x128xf32> to vector<32x128xf32>
    %15 = arith.subf %13, %14 : vector<32x128xf32>
    %c0_7 = arith.constant 0 : index
    %c0_8 = arith.constant 0 : index
    %16 = vector.load %arg3[%c0_7, %c0_8] : memref<1x128xf32, #tpu.memory_space<vmem>>, vector<1x128xf32>
    %17 = arith.mulf %12, %16 : vector<1x128xf32>
    %18 = vector.broadcast %17 : vector<1x128xf32> to vector<32x128xf32>
    %19 = arith.mulf %15, %18 : vector<32x128xf32>
    %c0_9 = arith.constant 0 : index
    %c0_10 = arith.constant 0 : index
    %20 = vector.load %arg4[%c0_9, %c0_10] : memref<1x128xf32, #tpu.memory_space<vmem>>, vector<1x128xf32>
    %21 = vector.broadcast %20 : vector<1x128xf32> to vector<32x128xf32>
    %22 = arith.addf %19, %21 : vector<32x128xf32>
    %c0_11 = arith.constant 0 : index
    %c0_12 = arith.constant 0 : index
    %23 = vector.load %arg5[%c0_11, %c0_12] : memref<32x128xf32, #tpu.memory_space<vmem>>, vector<32x128xf32>
    %24 = arith.addf %22, %23 : vector<32x128xf32>
    %c0_13 = arith.constant 0 : index
    %c0_14 = arith.constant 0 : index
    %25 = vector.load %arg6[%c0_13, %c0_14] : memref<32x128xf32, #tpu.memory_space<vmem>>, vector<32x128xf32>
    tpu.vector_store %arg6[%c0_13, %c0_14], %24 {strides = array<i32>} : memref<32x128xf32, #tpu.memory_space<vmem>>, vector<32x128xf32>,
    return
  }
  func.func @transform_0(%arg0: i32) -> (i32, i32) {
    %c0_i32 = arith.constant 0 : i32
    %c0_i32_0 = arith.constant 0 : i32
    return %arg0, %c0_i32 : i32, i32
  }
  func.func @transform_1(%arg0: i32) -> (i32, i32) {
    %c0_i32 = arith.constant 0 : i32
    %c0_i32_0 = arith.constant 0 : i32
    %c0_i32_1 = arith.constant 0 : i32
    return %c0_i32, %c0_i32_0 : i32, i32
  }
  func.func @transform_2(%arg0: i32) -> (i32, i32) {
    %c0_i32 = arith.constant 0 : i32
    %c0_i32_0 = arith.constant 0 : i32
    %c0_i32_1 = arith.constant 0 : i32
    return %c0_i32, %c0_i32_0 : i32, i32
  }
  func.func @transform_3(%arg0: i32) -> (i32, i32) {
    %c0_i32 = arith.constant 0 : i32
    %c0_i32_0 = arith.constant 0 : i32
    %c0_i32_1 = arith.constant 0 : i32
    return %c0_i32, %c0_i32_0 : i32, i32
  }
  func.func @transform_4(%arg0: i32) -> (i32, i32) {
    %c0_i32 = arith.constant 0 : i32
    %c0_i32_0 = arith.constant 0 : i32
    return %arg0, %c0_i32 : i32, i32
  }
  func.func @transform_5(%arg0: i32) -> (i32, i32) {
    %c0_i32 = arith.constant 0 : i32
    %c0_i32_0 = arith.constant 0 : i32
    return %arg0, %c0_i32 : i32, i32
  }
}

module attributes {stable_mosaic.version = 11 : i64} {
  func.func @_matmul_kernel(%arg0: i32, %arg1: i32, %arg2: i32, %arg3: memref<32x384xbf16, #tpu.memory_space<vmem>>, %arg4: memref<384x128xbf16, #tpu.memory_space<vmem>>, %arg5: memref<1x128xf32, #tpu.memory_space<vmem>>, %arg6: memref<32x128xf32, #tpu.memory_space<vmem>>, %arg7: memref<32x128xf32, #tpu.memory_space<vmem>>) attributes {dimension_semantics = [#tpu.dimension_semantics<parallel>, #tpu.dimension_semantics<parallel>, #tpu.dimension_semantics<arbitrary>], iteration_bounds = array<i64: 1, 1, 1>, scalar_prefetch = 0 : i64, scratch_operands = 1 : i64, tpu.core_type = #tpu.core_type<tc>, window_params = [{transform_indices = @transform_0, window_bounds = array<i64: 32, 384>}, {transform_indices = @transform_1, window_bounds = array<i64: 384, 128>}, {transform_indices = @transform_2, window_bounds = array<i64: 1, 128>}, {transform_indices = @transform_3, window_bounds = array<i64: 32, 128>}]} {
    %c0_i32 = arith.constant 0 : i32
    %0 = arith.cmpi eq, %arg2, %c0_i32 : i32
    %1 = arith.extui %0 : i1 to i32
    %c0_i32_0 = arith.constant 0 : i32
    %2 = arith.cmpi ne, %1, %c0_i32_0 : i32
    scf.if %2 {
      %cst_10 = arith.constant 0.000000e+00 : f32
      %12 = vector.broadcast %cst_10 : f32 to vector<32x128xf32>
      %c0_11 = arith.constant 0 : index
      %c0_12 = arith.constant 0 : index
      %13 = vector.load %arg7[%c0_11, %c0_12] : memref<32x128xf32, #tpu.memory_space<vmem>>, vector<32x128xf32>
      tpu.vector_store %arg7[%c0_11, %c0_12], %12 {strides = array<i32>} : memref<32x128xf32, #tpu.memory_space<vmem>>, vector<32x128xf32>,
    } else {
    }
    %c0 = arith.constant 0 : index
    %c0_1 = arith.constant 0 : index
    %3 = vector.load %arg7[%c0, %c0_1] : memref<32x128xf32, #tpu.memory_space<vmem>>, vector<32x128xf32>
    %c0_2 = arith.constant 0 : index
    %c0_3 = arith.constant 0 : index
    %4 = vector.load %arg3[%c0_2, %c0_3] : memref<32x384xbf16, #tpu.memory_space<vmem>>, vector<32x384xbf16>
    %c0_4 = arith.constant 0 : index
    %c0_5 = arith.constant 0 : index
    %5 = vector.load %arg4[%c0_4, %c0_5] : memref<384x128xbf16, #tpu.memory_space<vmem>>, vector<384x128xbf16>
    %cst = arith.constant dense<0.000000e+00> : vector<32x128xf32>
    %6 = tpu.matmul %4, %5, %cst {dimension_numbers = #tpu.dot_dimension_numbers<[1], [0], [0], [1], [0, 0, 1, 1], [], []>} : vector<32x384xbf16>, vector<384x128xbf16>, vector<32x128xf32> -> vector<32x128xf32>
    %7 = arith.addf %3, %6 : vector<32x128xf32>
    %c0_6 = arith.constant 0 : index
    %c0_7 = arith.constant 0 : index
    %8 = vector.load %arg7[%c0_6, %c0_7] : memref<32x128xf32, #tpu.memory_space<vmem>>, vector<32x128xf32>
    tpu.vector_store %arg7[%c0_6, %c0_7], %7 {strides = array<i32>} : memref<32x128xf32, #tpu.memory_space<vmem>>, vector<32x128xf32>,
    %c0_i32_8 = arith.constant 0 : i32
    %9 = arith.cmpi eq, %arg2, %c0_i32_8 : i32
    %10 = arith.extui %9 : i1 to i32
    %c0_i32_9 = arith.constant 0 : i32
    %11 = arith.cmpi ne, %10, %c0_i32_9 : i32
    scf.if %11 {
      %c0_10 = arith.constant 0 : index
      %c0_11 = arith.constant 0 : index
      %12 = vector.load %arg7[%c0_10, %c0_11] : memref<32x128xf32, #tpu.memory_space<vmem>>, vector<32x128xf32>
      %c0_12 = arith.constant 0 : index
      %c0_13 = arith.constant 0 : index
      %13 = vector.load %arg5[%c0_12, %c0_13] : memref<1x128xf32, #tpu.memory_space<vmem>>, vector<1x128xf32>
      %14 = vector.broadcast %13 : vector<1x128xf32> to vector<32x128xf32>
      %15 = arith.addf %12, %14 : vector<32x128xf32>
      %c0_14 = arith.constant 0 : index
      %c0_15 = arith.constant 0 : index
      %16 = vector.load %arg6[%c0_14, %c0_15] : memref<32x128xf32, #tpu.memory_space<vmem>>, vector<32x128xf32>
      tpu.vector_store %arg6[%c0_14, %c0_15], %15 {strides = array<i32>} : memref<32x128xf32, #tpu.memory_space<vmem>>, vector<32x128xf32>,
    } else {
    }
    return
  }
  func.func @transform_0(%arg0: i32, %arg1: i32, %arg2: i32) -> (i32, i32) {
    %c0_i32 = arith.constant 0 : i32
    return %arg0, %arg2 : i32, i32
  }
  func.func @transform_1(%arg0: i32, %arg1: i32, %arg2: i32) -> (i32, i32) {
    %c0_i32 = arith.constant 0 : i32
    return %arg2, %arg1 : i32, i32
  }
  func.func @transform_2(%arg0: i32, %arg1: i32, %arg2: i32) -> (i32, i32) {
    %c0_i32 = arith.constant 0 : i32
    %c0_i32_0 = arith.constant 0 : i32
    return %c0_i32, %arg1 : i32, i32
  }
  func.func @transform_3(%arg0: i32, %arg1: i32, %arg2: i32) -> (i32, i32) {
    %c0_i32 = arith.constant 0 : i32
    return %arg0, %arg1 : i32, i32
  }
}

module attributes {stable_mosaic.version = 11 : i64} {
  func.func @_matmul_kernel(%arg0: i32, %arg1: i32, %arg2: i32, %arg3: memref<32x128xbf16, #tpu.memory_space<vmem>>, %arg4: memref<128x128xbf16, #tpu.memory_space<vmem>>, %arg5: memref<1x128xf32, #tpu.memory_space<vmem>>, %arg6: memref<32x128xf32, #tpu.memory_space<vmem>>, %arg7: memref<32x128xf32, #tpu.memory_space<vmem>>) attributes {dimension_semantics = [#tpu.dimension_semantics<parallel>, #tpu.dimension_semantics<parallel>, #tpu.dimension_semantics<arbitrary>], iteration_bounds = array<i64: 1, 1, 1>, scalar_prefetch = 0 : i64, scratch_operands = 1 : i64, tpu.core_type = #tpu.core_type<tc>, window_params = [{transform_indices = @transform_0, window_bounds = array<i64: 32, 128>}, {transform_indices = @transform_1, window_bounds = array<i64: 128, 128>}, {transform_indices = @transform_2, window_bounds = array<i64: 1, 128>}, {transform_indices = @transform_3, window_bounds = array<i64: 32, 128>}]} {
    %c0_i32 = arith.constant 0 : i32
    %0 = arith.cmpi eq, %arg2, %c0_i32 : i32
    %1 = arith.extui %0 : i1 to i32
    %c0_i32_0 = arith.constant 0 : i32
    %2 = arith.cmpi ne, %1, %c0_i32_0 : i32
    scf.if %2 {
      %cst_10 = arith.constant 0.000000e+00 : f32
      %12 = vector.broadcast %cst_10 : f32 to vector<32x128xf32>
      %c0_11 = arith.constant 0 : index
      %c0_12 = arith.constant 0 : index
      %13 = vector.load %arg7[%c0_11, %c0_12] : memref<32x128xf32, #tpu.memory_space<vmem>>, vector<32x128xf32>
      tpu.vector_store %arg7[%c0_11, %c0_12], %12 {strides = array<i32>} : memref<32x128xf32, #tpu.memory_space<vmem>>, vector<32x128xf32>,
    } else {
    }
    %c0 = arith.constant 0 : index
    %c0_1 = arith.constant 0 : index
    %3 = vector.load %arg7[%c0, %c0_1] : memref<32x128xf32, #tpu.memory_space<vmem>>, vector<32x128xf32>
    %c0_2 = arith.constant 0 : index
    %c0_3 = arith.constant 0 : index
    %4 = vector.load %arg3[%c0_2, %c0_3] : memref<32x128xbf16, #tpu.memory_space<vmem>>, vector<32x128xbf16>
    %c0_4 = arith.constant 0 : index
    %c0_5 = arith.constant 0 : index
    %5 = vector.load %arg4[%c0_4, %c0_5] : memref<128x128xbf16, #tpu.memory_space<vmem>>, vector<128x128xbf16>
    %cst = arith.constant dense<0.000000e+00> : vector<32x128xf32>
    %6 = tpu.matmul %4, %5, %cst {dimension_numbers = #tpu.dot_dimension_numbers<[1], [0], [0], [1], [0, 0, 1, 1], [], []>} : vector<32x128xbf16>, vector<128x128xbf16>, vector<32x128xf32> -> vector<32x128xf32>
    %7 = arith.addf %3, %6 : vector<32x128xf32>
    %c0_6 = arith.constant 0 : index
    %c0_7 = arith.constant 0 : index
    %8 = vector.load %arg7[%c0_6, %c0_7] : memref<32x128xf32, #tpu.memory_space<vmem>>, vector<32x128xf32>
    tpu.vector_store %arg7[%c0_6, %c0_7], %7 {strides = array<i32>} : memref<32x128xf32, #tpu.memory_space<vmem>>, vector<32x128xf32>,
    %c0_i32_8 = arith.constant 0 : i32
    %9 = arith.cmpi eq, %arg2, %c0_i32_8 : i32
    %10 = arith.extui %9 : i1 to i32
    %c0_i32_9 = arith.constant 0 : i32
    %11 = arith.cmpi ne, %10, %c0_i32_9 : i32
    scf.if %11 {
      %c0_10 = arith.constant 0 : index
      %c0_11 = arith.constant 0 : index
      %12 = vector.load %arg7[%c0_10, %c0_11] : memref<32x128xf32, #tpu.memory_space<vmem>>, vector<32x128xf32>
      %c0_12 = arith.constant 0 : index
      %c0_13 = arith.constant 0 : index
      %13 = vector.load %arg5[%c0_12, %c0_13] : memref<1x128xf32, #tpu.memory_space<vmem>>, vector<1x128xf32>
      %14 = vector.broadcast %13 : vector<1x128xf32> to vector<32x128xf32>
      %15 = arith.addf %12, %14 : vector<32x128xf32>
      %c0_14 = arith.constant 0 : index
      %c0_15 = arith.constant 0 : index
      %16 = vector.load %arg6[%c0_14, %c0_15] : memref<32x128xf32, #tpu.memory_space<vmem>>, vector<32x128xf32>
      tpu.vector_store %arg6[%c0_14, %c0_15], %15 {strides = array<i32>} : memref<32x128xf32, #tpu.memory_space<vmem>>, vector<32x128xf32>,
    } else {
    }
    return
  }
  func.func @transform_0(%arg0: i32, %arg1: i32, %arg2: i32) -> (i32, i32) {
    %c0_i32 = arith.constant 0 : i32
    return %arg0, %arg2 : i32, i32
  }
  func.func @transform_1(%arg0: i32, %arg1: i32, %arg2: i32) -> (i32, i32) {
    %c0_i32 = arith.constant 0 : i32
    return %arg2, %arg1 : i32, i32
  }
  func.func @transform_2(%arg0: i32, %arg1: i32, %arg2: i32) -> (i32, i32) {
    %c0_i32 = arith.constant 0 : i32
    %c0_i32_0 = arith.constant 0 : i32
    return %c0_i32, %arg1 : i32, i32
  }
  func.func @transform_3(%arg0: i32, %arg1: i32, %arg2: i32) -> (i32, i32) {
    %c0_i32 = arith.constant 0 : i32
    return %arg0, %arg1 : i32, i32
  }
}

module attributes {stable_mosaic.version = 11 : i64} {
  func.func @_matmul_kernel(%arg0: i32, %arg1: i32, %arg2: i32, %arg3: memref<256x512xbf16, #tpu.memory_space<vmem>>, %arg4: memref<512x128xbf16, #tpu.memory_space<vmem>>, %arg5: memref<1x128xf32, #tpu.memory_space<vmem>>, %arg6: memref<256x128xf32, #tpu.memory_space<vmem>>, %arg7: memref<256x128xf32, #tpu.memory_space<vmem>>) attributes {dimension_semantics = [#tpu.dimension_semantics<parallel>, #tpu.dimension_semantics<parallel>, #tpu.dimension_semantics<arbitrary>], iteration_bounds = array<i64: 2, 1, 1>, scalar_prefetch = 0 : i64, scratch_operands = 1 : i64, tpu.core_type = #tpu.core_type<tc>, window_params = [{transform_indices = @transform_0, window_bounds = array<i64: 256, 512>}, {transform_indices = @transform_1, window_bounds = array<i64: 512, 128>}, {transform_indices = @transform_2, window_bounds = array<i64: 1, 128>}, {transform_indices = @transform_3, window_bounds = array<i64: 256, 128>}]} {
    %c0_i32 = arith.constant 0 : i32
    %0 = arith.cmpi eq, %arg2, %c0_i32 : i32
    %1 = arith.extui %0 : i1 to i32
    %c0_i32_0 = arith.constant 0 : i32
    %2 = arith.cmpi ne, %1, %c0_i32_0 : i32
    scf.if %2 {
      %cst_10 = arith.constant 0.000000e+00 : f32
      %12 = vector.broadcast %cst_10 : f32 to vector<256x128xf32>
      %c0_11 = arith.constant 0 : index
      %c0_12 = arith.constant 0 : index
      %13 = vector.load %arg7[%c0_11, %c0_12] : memref<256x128xf32, #tpu.memory_space<vmem>>, vector<256x128xf32>
      tpu.vector_store %arg7[%c0_11, %c0_12], %12 {strides = array<i32>} : memref<256x128xf32, #tpu.memory_space<vmem>>, vector<256x128xf32>,
    } else {
    }
    %c0 = arith.constant 0 : index
    %c0_1 = arith.constant 0 : index
    %3 = vector.load %arg7[%c0, %c0_1] : memref<256x128xf32, #tpu.memory_space<vmem>>, vector<256x128xf32>
    %c0_2 = arith.constant 0 : index
    %c0_3 = arith.constant 0 : index
    %4 = vector.load %arg3[%c0_2, %c0_3] : memref<256x512xbf16, #tpu.memory_space<vmem>>, vector<256x512xbf16>
    %c0_4 = arith.constant 0 : index
    %c0_5 = arith.constant 0 : index
    %5 = vector.load %arg4[%c0_4, %c0_5] : memref<512x128xbf16, #tpu.memory_space<vmem>>, vector<512x128xbf16>
    %cst = arith.constant dense<0.000000e+00> : vector<256x128xf32>
    %6 = tpu.matmul %4, %5, %cst {dimension_numbers = #tpu.dot_dimension_numbers<[1], [0], [0], [1], [0, 0, 1, 1], [], []>} : vector<256x512xbf16>, vector<512x128xbf16>, vector<256x128xf32> -> vector<256x128xf32>
    %7 = arith.addf %3, %6 : vector<256x128xf32>
    %c0_6 = arith.constant 0 : index
    %c0_7 = arith.constant 0 : index
    %8 = vector.load %arg7[%c0_6, %c0_7] : memref<256x128xf32, #tpu.memory_space<vmem>>, vector<256x128xf32>
    tpu.vector_store %arg7[%c0_6, %c0_7], %7 {strides = array<i32>} : memref<256x128xf32, #tpu.memory_space<vmem>>, vector<256x128xf32>,
    %c0_i32_8 = arith.constant 0 : i32
    %9 = arith.cmpi eq, %arg2, %c0_i32_8 : i32
    %10 = arith.extui %9 : i1 to i32
    %c0_i32_9 = arith.constant 0 : i32
    %11 = arith.cmpi ne, %10, %c0_i32_9 : i32
    scf.if %11 {
      %c0_10 = arith.constant 0 : index
      %c0_11 = arith.constant 0 : index
      %12 = vector.load %arg7[%c0_10, %c0_11] : memref<256x128xf32, #tpu.memory_space<vmem>>, vector<256x128xf32>
      %c0_12 = arith.constant 0 : index
      %c0_13 = arith.constant 0 : index
      %13 = vector.load %arg5[%c0_12, %c0_13] : memref<1x128xf32, #tpu.memory_space<vmem>>, vector<1x128xf32>
      %14 = vector.broadcast %13 : vector<1x128xf32> to vector<256x128xf32>
      %15 = arith.addf %12, %14 : vector<256x128xf32>
      %16 = math.tanh %15 : vector<256x128xf32>
      %c0_14 = arith.constant 0 : index
      %c0_15 = arith.constant 0 : index
      %17 = vector.load %arg6[%c0_14, %c0_15] : memref<256x128xf32, #tpu.memory_space<vmem>>, vector<256x128xf32>
      tpu.vector_store %arg6[%c0_14, %c0_15], %16 {strides = array<i32>} : memref<256x128xf32, #tpu.memory_space<vmem>>, vector<256x128xf32>,
    } else {
    }
    return
  }
  func.func @transform_0(%arg0: i32, %arg1: i32, %arg2: i32) -> (i32, i32) {
    %c0_i32 = arith.constant 0 : i32
    return %arg0, %arg2 : i32, i32
  }
  func.func @transform_1(%arg0: i32, %arg1: i32, %arg2: i32) -> (i32, i32) {
    %c0_i32 = arith.constant 0 : i32
    return %arg2, %arg1 : i32, i32
  }
  func.func @transform_2(%arg0: i32, %arg1: i32, %arg2: i32) -> (i32, i32) {
    %c0_i32 = arith.constant 0 : i32
    %c0_i32_0 = arith.constant 0 : i32
    return %c0_i32, %arg1 : i32, i32
  }
  func.func @transform_3(%arg0: i32, %arg1: i32, %arg2: i32) -> (i32, i32) {
    %c0_i32 = arith.constant 0 : i32
    return %arg0, %arg1 : i32, i32
  }
}

</mosaic_0001>

<bundles_post_ra>
// kernel: resnet_generator_forward.35
= control target key start
LH: loop header
LB: loop body
LE: loop exit
PB: predicated region body
PF: predicated region fallthrough
CT: control target
= control target key end

     0   :  { %v290_v0 = vmov 0.0   ;;  %s508_s0 = inlined_call_operand.vmem [shape: f32[512,128], index: 0, kind: input, shape index: {}]   ;;  %s509_s1 = inlined_call_operand.vmem [shape: f32[8,128], index: 1, kind: output, shape index: {}]  }
   0x1   :  { %12 = vst [vmem:[%s509_s1] sm:$0xff] %v290_v0  ;;  %v13_v1 = vld [vmem:[%s508_s0] sm:$0xff]  ;;  %v14_v2 = vld [vmem:[%s508_s0 + $0x8] sm:$0xff]  ;;  %v15_v3 = vld [vmem:[%s508_s0 + $0x10] sm:$0xff] }
   0x2   :  { %v16_v4 = vld [vmem:[%s508_s0 + $0x18] sm:$0xff]  ;;  %v78_v5 = vadd.f32 %v14_v2, %v13_v1  ;;  %v150_v6 = vmul.f32 %v13_v1, %v13_v1  ;;  %v151_v7 = vmul.f32 %v14_v2, %v14_v2  ;;  %v152_v8 = vmul.f32 %v15_v3, %v15_v3  ;;  %v17_v9 = vld [vmem:[%s508_s0 + $0x20] sm:$0xff]  ;;  %v18_v13 = vld [vmem:[%s508_s0 + $0x28] sm:$0xff] }
   0x3   :  { %v153_v11 = vmul.f32 %v16_v4, %v16_v4  ;;  %v154_v15 = vmul.f32 %v17_v9, %v17_v9  ;;  %v19_v17 = vld [vmem:[%s508_s0 + $0x30] sm:$0xff]  ;;  %v155_v19 = vmul.f32 %v18_v13, %v18_v13  ;;  %v20_v21 = vld [vmem:[%s508_s0 + $0x38] sm:$0xff]  ;;  %v21_v25 = vld [vmem:[%s508_s0 + $0x40] sm:$0xff] }
   0x4   :  { %v79_v10 = vadd.f32 %v78_v5, %v15_v3  ;;  %v214_v12 = vadd.f32 %v151_v7, %v150_v6  ;;  %v156_v23 = vmul.f32 %v19_v17, %v19_v17  ;;  %v157_v27 = vmul.f32 %v20_v21, %v20_v21  ;;  %v22_v29 = vld [vmem:[%s508_s0 + $0x48] sm:$0xff]  ;;  %v23_v33 = vld [vmem:[%s508_s0 + $0x50] sm:$0xff]  ;;  %v24_v37 = vld [vmem:[%s508_s0 + $0x58] sm:$0xff] }
   0x5   :  { %v158_v31 = vmul.f32 %v21_v25, %v21_v25  ;;  %v159_v35 = vmul.f32 %v22_v29, %v22_v29  ;;  %v160_v39 = vmul.f32 %v23_v33, %v23_v33  ;;  %v25_v41 = vld [vmem:[%s508_s0 + $0x60] sm:$0xff]  ;;  %v161_v43 = vmul.f32 %v24_v37, %v24_v37  ;;  %v26_v45 = vld [vmem:[%s508_s0 + $0x68] sm:$0xff]  ;;  %v27_v49 = vld [vmem:[%s508_s0 + $0x70] sm:$0xff] }
   0x6   :  { %v80_v14 = vadd.f32 %v79_v10, %v16_v4  ;;  %v215_v16 = vadd.f32 %v214_v12, %v152_v8  ;;  %v162_v47 = vmul.f32 %v25_v41, %v25_v41  ;;  %v163_v51 = vmul.f32 %v26_v45, %v26_v45  ;;  %v28_v53 = vld [vmem:[%s508_s0 + $0x78] sm:$0xff]  ;;  %v29_v57 = vld [vmem:[%s508_s0 + $0x80] sm:$0xff]  ;;  %v30_v61 = vld [vmem:[%s508_s0 + $0x88] sm:$0xff] }
   0x7   :  { %v164_v55 = vmul.f32 %v27_v49, %v27_v49  ;;  %v165_v59 = vmul.f32 %v28_v53, %v28_v53  ;;  %v166_v63 = vmul.f32 %v29_v57, %v29_v57  ;;  %v31_v1 = vld [vmem:[%s508_s0 + $0x90] sm:$0xff]  ;;  %v167_v3 = vmul.f32 %v30_v61, %v30_v61  ;;  %v32_v5 = vld [vmem:[%s508_s0 + $0x98] sm:$0xff] }
   0x8   :  { %v81_v18 = vadd.f32 %v80_v14, %v17_v9  ;;  %v216_v20 = vadd.f32 %v215_v16, %v153_v11  ;;  %v168_v7 = vmul.f32 %v31_v1, %v31_v1  ;;  %v33_v9 = vld [vmem:[%s508_s0 + $0xa0] sm:$0xff]  ;;  %v169_v11 = vmul.f32 %v32_v5, %v32_v5 }
   0xa   :  { %v82_v22 = vadd.f32 %v81_v18, %v18_v13  ;;  %v217_v24 = vadd.f32 %v216_v20, %v154_v15  ;;  %v34_v13 = vld [vmem:[%s508_s0 + $0xa8] sm:$0xff]  ;;  %v170_v15 = vmul.f32 %v33_v9, %v33_v9 }
   0xc   :  { %v83_v26 = vadd.f32 %v82_v22, %v19_v17  ;;  %v218_v28 = vadd.f32 %v217_v24, %v155_v19  ;;  %v35_v17 = vld [vmem:[%s508_s0 + $0xb0] sm:$0xff]  ;;  %v171_v19 = vmul.f32 %v34_v13, %v34_v13 }
   0xe   :  { %v84_v30 = vadd.f32 %v83_v26, %v20_v21  ;;  %v219_v32 = vadd.f32 %v218_v28, %v156_v23  ;;  %v36_v21 = vld [vmem:[%s508_s0 + $0xb8] sm:$0xff]  ;;  %v172_v23 = vmul.f32 %v35_v17, %v35_v17 }
  0x10   :  { %v85_v34 = vadd.f32 %v84_v30, %v21_v25  ;;  %v220_v36 = vadd.f32 %v219_v32, %v157_v27  ;;  %v37_v25 = vld [vmem:[%s508_s0 + $0xc0] sm:$0xff]  ;;  %v173_v27 = vmul.f32 %v36_v21, %v36_v21 }
  0x12   :  { %v86_v38 = vadd.f32 %v85_v34, %v22_v29  ;;  %v221_v40 = vadd.f32 %v220_v36, %v158_v31  ;;  %v38_v29 = vld [vmem:[%s508_s0 + $0xc8] sm:$0xff]  ;;  %v174_v31 = vmul.f32 %v37_v25, %v37_v25 }
  0x14   :  { %v87_v42 = vadd.f32 %v86_v38, %v23_v33  ;;  %v222_v44 = vadd.f32 %v221_v40, %v159_v35  ;;  %v39_v33 = vld [vmem:[%s508_s0 + $0xd0] sm:$0xff]  ;;  %v175_v35 = vmul.f32 %v38_v29, %v38_v29 }
  0x16   :  { %v88_v46 = vadd.f32 %v87_v42, %v24_v37  ;;  %v223_v48 = vadd.f32 %v222_v44, %v160_v39  ;;  %v40_v37 = vld [vmem:[%s508_s0 + $0xd8] sm:$0xff]  ;;  %v176_v39 = vmul.f32 %v39_v33, %v39_v33 }
  0x18   :  { %v89_v50 = vadd.f32 %v88_v46, %v25_v41  ;;  %v224_v52 = vadd.f32 %v223_v48, %v161_v43  ;;  %v41_v41 = vld [vmem:[%s508_s0 + $0xe0] sm:$0xff]  ;;  %v177_v43 = vmul.f32 %v40_v37, %v40_v37 }
  0x1a   :  { %v90_v54 = vadd.f32 %v89_v50, %v26_v45  ;;  %v225_v56 = vadd.f32 %v224_v52, %v162_v47  ;;  %v42_v45 = vld [vmem:[%s508_s0 + $0xe8] sm:$0xff]  ;;  %v178_v47 = vmul.f32 %v41_v41, %v41_v41 }
  0x1c   :  { %v91_v58 = vadd.f32 %v90_v54, %v27_v49  ;;  %v226_v60 = vadd.f32 %v225_v56, %v163_v51  ;;  %v43_v49 = vld [vmem:[%s508_s0 + $0xf0] sm:$0xff]  ;;  %v179_v51 = vmul.f32 %v42_v45, %v42_v45 }
  0x1e   :  { %v92_v62 = vadd.f32 %v91_v58, %v28_v53  ;;  %v227_v0 = vadd.f32 %v226_v60, %v164_v55  ;;  %v44_v53 = vld [vmem:[%s508_s0 + $0xf8] sm:$0xff]  ;;  %v180_v55 = vmul.f32 %v43_v49, %v43_v49 }
  0x20   :  { %v93_v2 = vadd.f32 %v92_v62, %v29_v57  ;;  %v228_v4 = vadd.f32 %v227_v0, %v165_v59  ;;  %v45_v57 = vld [vmem:[%s508_s0 + $0x100] sm:$0xff]  ;;  %v181_v59 = vmul.f32 %v44_v53, %v44_v53 }
  0x22   :  { %v94_v6 = vadd.f32 %v93_v2, %v30_v61  ;;  %v229_v8 = vadd.f32 %v228_v4, %v166_v63  ;;  %v46_v61 = vld [vmem:[%s508_s0 + $0x108] sm:$0xff]  ;;  %v182_v63 = vmul.f32 %v45_v57, %v45_v57 }
  0x24   :  { %v95_v10 = vadd.f32 %v94_v6, %v31_v1  ;;  %v230_v12 = vadd.f32 %v229_v8, %v167_v3  ;;  %v47_v1 = vld [vmem:[%s508_s0 + $0x110] sm:$0xff]  ;;  %v183_v3 = vmul.f32 %v46_v61, %v46_v61 }
  0x26   :  { %v96_v14 = vadd.f32 %v95_v10, %v32_v5  ;;  %v231_v16 = vadd.f32 %v230_v12, %v168_v7  ;;  %v48_v5 = vld [vmem:[%s508_s0 + $0x118] sm:$0xff]  ;;  %v184_v7 = vmul.f32 %v47_v1, %v47_v1 }
  0x28   :  { %v97_v18 = vadd.f32 %v96_v14, %v33_v9  ;;  %v232_v20 = vadd.f32 %v231_v16, %v169_v11  ;;  %v49_v9 = vld [vmem:[%s508_s0 + $0x120] sm:$0xff]  ;;  %v185_v11 = vmul.f32 %v48_v5, %v48_v5 }
  0x2a   :  { %v98_v22 = vadd.f32 %v97_v18, %v34_v13  ;;  %v233_v24 = vadd.f32 %v232_v20, %v170_v15  ;;  %v50_v13 = vld [vmem:[%s508_s0 + $0x128] sm:$0xff]  ;;  %v186_v15 = vmul.f32 %v49_v9, %v49_v9 }
  0x2c   :  { %v99_v26 = vadd.f32 %v98_v22, %v35_v17  ;;  %v234_v28 = vadd.f32 %v233_v24, %v171_v19  ;;  %v51_v17 = vld [vmem:[%s508_s0 + $0x130] sm:$0xff]  ;;  %v187_v19 = vmul.f32 %v50_v13, %v50_v13 }
  0x2e   :  { %v100_v30 = vadd.f32 %v99_v26, %v36_v21  ;;  %v235_v32 = vadd.f32 %v234_v28, %v172_v23  ;;  %v52_v21 = vld [vmem:[%s508_s0 + $0x138] sm:$0xff]  ;;  %v188_v23 = vmul.f32 %v51_v17, %v51_v17 }
  0x30   :  { %v101_v34 = vadd.f32 %v100_v30, %v37_v25  ;;  %v236_v36 = vadd.f32 %v235_v32, %v173_v27  ;;  %v53_v25 = vld [vmem:[%s508_s0 + $0x140] sm:$0xff]  ;;  %v189_v27 = vmul.f32 %v52_v21, %v52_v21 }
  0x32   :  { %v102_v38 = vadd.f32 %v101_v34, %v38_v29  ;;  %v237_v40 = vadd.f32 %v236_v36, %v174_v31  ;;  %v54_v29 = vld [vmem:[%s508_s0 + $0x148] sm:$0xff]  ;;  %v190_v31 = vmul.f32 %v53_v25, %v53_v25 }
  0x34   :  { %v103_v42 = vadd.f32 %v102_v38, %v39_v33  ;;  %v238_v44 = vadd.f32 %v237_v40, %v175_v35  ;;  %v55_v33 = vld [vmem:[%s508_s0 + $0x150] sm:$0xff]  ;;  %v191_v35 = vmul.f32 %v54_v29, %v54_v29 }
  0x36   :  { %v104_v46 = vadd.f32 %v103_v42, %v40_v37  ;;  %v239_v48 = vadd.f32 %v238_v44, %v176_v39  ;;  %v56_v37 = vld [vmem:[%s508_s0 + $0x158] sm:$0xff]  ;;  %v192_v39 = vmul.f32 %v55_v33, %v55_v33 }
  0x38   :  { %v105_v50 = vadd.f32 %v104_v46, %v41_v41  ;;  %v240_v52 = vadd.f32 %v239_v48, %v177_v43  ;;  %v57_v41 = vld [vmem:[%s508_s0 + $0x160] sm:$0xff]  ;;  %v193_v43 = vmul.f32 %v56_v37, %v56_v37 }
  0x3a   :  { %v106_v54 = vadd.f32 %v105_v50, %v42_v45  ;;  %v241_v56 = vadd.f32 %v240_v52, %v178_v47  ;;  %v58_v45 = vld [vmem:[%s508_s0 + $0x168] sm:$0xff]  ;;  %v194_v47 = vmul.f32 %v57_v41, %v57_v41 }
  0x3c   :  { %v107_v58 = vadd.f32 %v106_v54, %v43_v49  ;;  %v242_v60 = vadd.f32 %v241_v56, %v179_v51  ;;  %v59_v49 = vld [vmem:[%s508_s0 + $0x170] sm:$0xff]  ;;  %v195_v51 = vmul.f32 %v58_v45, %v58_v45 }
  0x3e   :  { %v108_v62 = vadd.f32 %v107_v58, %v44_v53  ;;  %v243_v0 = vadd.f32 %v242_v60, %v180_v55  ;;  %v60_v53 = vld [vmem:[%s508_s0 + $0x178] sm:$0xff]  ;;  %v196_v55 = vmul.f32 %v59_v49, %v59_v49 }
  0x40   :  { %v109_v2 = vadd.f32 %v108_v62, %v45_v57  ;;  %v244_v4 = vadd.f32 %v243_v0, %v181_v59  ;;  %v61_v57 = vld [vmem:[%s508_s0 + $0x180] sm:$0xff]  ;;  %v197_v59 = vmul.f32 %v60_v53, %v60_v53 }
  0x42   :  { %v110_v6 = vadd.f32 %v109_v2, %v46_v61  ;;  %v245_v8 = vadd.f32 %v244_v4, %v182_v63  ;;  %v62_v61 = vld [vmem:[%s508_s0 + $0x188] sm:$0xff]  ;;  %v198_v63 = vmul.f32 %v61_v57, %v61_v57 }
  0x44   :  { %v111_v10 = vadd.f32 %v110_v6, %v47_v1  ;;  %v246_v12 = vadd.f32 %v245_v8, %v183_v3  ;;  %v63_v1 = vld [vmem:[%s508_s0 + $0x190] sm:$0xff]  ;;  %v199_v3 = vmul.f32 %v62_v61, %v62_v61 }
  0x46   :  { %v112_v14 = vadd.f32 %v111_v10, %v48_v5  ;;  %v247_v16 = vadd.f32 %v246_v12, %v184_v7  ;;  %v64_v5 = vld [vmem:[%s508_s0 + $0x198] sm:$0xff]  ;;  %v200_v7 = vmul.f32 %v63_v1, %v63_v1 }
  0x48   :  { %v113_v18 = vadd.f32 %v112_v14, %v49_v9  ;;  %v248_v20 = vadd.f32 %v247_v16, %v185_v11  ;;  %v65_v9 = vld [vmem:[%s508_s0 + $0x1a0] sm:$0xff]  ;;  %v201_v11 = vmul.f32 %v64_v5, %v64_v5 }
  0x4a   :  { %v114_v22 = vadd.f32 %v113_v18, %v50_v13  ;;  %v249_v24 = vadd.f32 %v248_v20, %v186_v15  ;;  %v66_v13 = vld [vmem:[%s508_s0 + $0x1a8] sm:$0xff]  ;;  %v202_v15 = vmul.f32 %v65_v9, %v65_v9 }
  0x4c   :  { %v115_v26 = vadd.f32 %v114_v22, %v51_v17  ;;  %v250_v28 = vadd.f32 %v249_v24, %v187_v19  ;;  %v67_v17 = vld [vmem:[%s508_s0 + $0x1b0] sm:$0xff]  ;;  %v203_v19 = vmul.f32 %v66_v13, %v66_v13 }
  0x4e   :  { %v116_v30 = vadd.f32 %v115_v26, %v52_v21  ;;  %v251_v32 = vadd.f32 %v250_v28, %v188_v23  ;;  %v68_v21 = vld [vmem:[%s508_s0 + $0x1b8] sm:$0xff]  ;;  %v204_v23 = vmul.f32 %v67_v17, %v67_v17 }
  0x50   :  { %v117_v34 = vadd.f32 %v116_v30, %v53_v25  ;;  %v252_v36 = vadd.f32 %v251_v32, %v189_v27  ;;  %v69_v25 = vld [vmem:[%s508_s0 + $0x1c0] sm:$0xff]  ;;  %v205_v27 = vmul.f32 %v68_v21, %v68_v21 }
  0x52   :  { %v118_v38 = vadd.f32 %v117_v34, %v54_v29  ;;  %v253_v40 = vadd.f32 %v252_v36, %v190_v31  ;;  %v70_v29 = vld [vmem:[%s508_s0 + $0x1c8] sm:$0xff]  ;;  %v206_v31 = vmul.f32 %v69_v25, %v69_v25 }
  0x54   :  { %v119_v42 = vadd.f32 %v118_v38, %v55_v33  ;;  %v254_v44 = vadd.f32 %v253_v40, %v191_v35  ;;  %v71_v33 = vld [vmem:[%s508_s0 + $0x1d0] sm:$0xff]  ;;  %v207_v35 = vmul.f32 %v70_v29, %v70_v29 }
  0x56   :  { %v120_v46 = vadd.f32 %v119_v42, %v56_v37  ;;  %v255_v48 = vadd.f32 %v254_v44, %v192_v39  ;;  %v72_v37 = vld [vmem:[%s508_s0 + $0x1d8] sm:$0xff]  ;;  %v208_v39 = vmul.f32 %v71_v33, %v71_v33 }
  0x58   :  { %v121_v50 = vadd.f32 %v120_v46, %v57_v41  ;;  %v256_v52 = vadd.f32 %v255_v48, %v193_v43  ;;  %v73_v41 = vld [vmem:[%s508_s0 + $0x1e0] sm:$0xff]  ;;  %v209_v43 = vmul.f32 %v72_v37, %v72_v37 }
  0x5a   :  { %v122_v54 = vadd.f32 %v121_v50, %v58_v45  ;;  %v257_v56 = vadd.f32 %v256_v52, %v194_v47  ;;  %v74_v45 = vld [vmem:[%s508_s0 + $0x1e8] sm:$0xff]  ;;  %v210_v47 = vmul.f32 %v73_v41, %v73_v41 }
  0x5c   :  { %v123_v58 = vadd.f32 %v122_v54, %v59_v49  ;;  %v258_v60 = vadd.f32 %v257_v56, %v195_v51  ;;  %v75_v49 = vld [vmem:[%s508_s0 + $0x1f0] sm:$0xff]  ;;  %v211_v51 = vmul.f32 %v74_v45, %v74_v45 }
  0x5e   :  { %v124_v62 = vadd.f32 %v123_v58, %v60_v53  ;;  %v259_v0 = vadd.f32 %v258_v60, %v196_v55  ;;  %v76_v53 = vld [vmem:[%s508_s0 + $0x1f8] sm:$0xff]  ;;  %v212_v55 = vmul.f32 %v75_v49, %v75_v49 }
  0x5f   :  { %v213_v58 = vmul.f32 %v76_v53, %v76_v53 }
  0x60   :  { %v125_v2 = vadd.f32 %v124_v62, %v61_v57  ;;  %v260_v4 = vadd.f32 %v259_v0, %v197_v59 }
  0x62   :  { %v126_v6 = vadd.f32 %v125_v2, %v62_v61  ;;  %v261_v8 = vadd.f32 %v260_v4, %v198_v63 }
  0x64   :  { %v127_v10 = vadd.f32 %v126_v6, %v63_v1  ;;  %v262_v12 = vadd.f32 %v261_v8, %v199_v3 }
  0x66   :  { %v128_v14 = vadd.f32 %v127_v10, %v64_v5  ;;  %v263_v16 = vadd.f32 %v262_v12, %v200_v7  ;;  %v77_v7 = vld [vmem:[%s509_s1] sm:$0x1]  ;;  %v149_v12 = vld [vmem:[%s509_s1 + $0x1] sm:$0x1] }
  0x68   :  { %v129_v18 = vadd.f32 %v128_v14, %v65_v9  ;;  %v264_v20 = vadd.f32 %v263_v16, %v201_v11 }
  0x6a   :  { %v130_v22 = vadd.f32 %v129_v18, %v66_v13  ;;  %v265_v24 = vadd.f32 %v264_v20, %v202_v15 }
  0x6c   :  { %v131_v26 = vadd.f32 %v130_v22, %v67_v17  ;;  %v266_v28 = vadd.f32 %v265_v24, %v203_v19 }
  0x6e   :  { %v132_v30 = vadd.f32 %v131_v26, %v68_v21  ;;  %v267_v32 = vadd.f32 %v266_v28, %v204_v23 }
  0x70   :  { %v133_v34 = vadd.f32 %v132_v30, %v69_v25  ;;  %v268_v36 = vadd.f32 %v267_v32, %v205_v27 }
  0x72   :  { %v134_v38 = vadd.f32 %v133_v34, %v70_v29  ;;  %v269_v40 = vadd.f32 %v268_v36, %v206_v31 }
  0x74   :  { %v135_v42 = vadd.f32 %v134_v38, %v71_v33  ;;  %v270_v44 = vadd.f32 %v269_v40, %v207_v35 }
  0x76   :  { %v136_v46 = vadd.f32 %v135_v42, %v72_v37  ;;  %v271_v48 = vadd.f32 %v270_v44, %v208_v39 }
  0x78   :  { %v137_v50 = vadd.f32 %v136_v46, %v73_v41  ;;  %v272_v52 = vadd.f32 %v271_v48, %v209_v43 }
  0x7a   :  { %v138_v54 = vadd.f32 %v137_v50, %v74_v45  ;;  %v273_v56 = vadd.f32 %v272_v52, %v210_v47 }
  0x7c   :  { %v139_v57 = vadd.f32 %v138_v54, %v75_v49  ;;  %v274_v59 = vadd.f32 %v273_v56, %v211_v51 }
  0x7e   :  { %v140_v60 = vadd.f32 %v139_v57, %v76_v53  ;;  %v275_v61 = vadd.f32 %v274_v59, %v212_v55 }
  0x80   :  { %v141_v62 = vrot.slane %v140_v60, 4  ;;  %v276_v63 = vadd.f32 %v275_v61, %v213_v58 }
  0x82   :  { %v142_v0 = vadd.f32 %v141_v62, %v140_v60  ;;  %v277_v1 = vrot.slane %v276_v63, 4 }
  0x84   :  { %v143_v2 = vrot.slane %v142_v0, 2  ;;  %v278_v3 = vadd.f32 %v277_v1, %v276_v63 }
  0x86   :  { %v144_v4 = vadd.f32 %v143_v2, %v142_v0  ;;  %v279_v5 = vrot.slane %v278_v3, 2 }
  0x88   :  { %v145_v6 = vrot.slane %v144_v4, 1  ;;  %v280_v8 = vadd.f32 %v279_v5, %v278_v3 }
  0x8a   :  { %v146_v9 = vadd.f32 %v145_v6, %v144_v4  ;;  %v281_v10 = vrot.slane %v280_v8, 1 }
  0x8c   :  { %v147_v11 = vadd.f32 %v146_v9, %v77_v7  ;;  %v282_v13 = vadd.f32 %v281_v10, %v280_v8 }
  0x8e   :  { %148 = vst [vmem:[%s509_s1] sm:$0x1] %v147_v11  ;;  %v283_v14 = vadd.f32 %v282_v13, %v149_v12 }
  0x90   :  { %284 = vst [vmem:[%s509_s1 + $0x1] sm:$0x1] %v283_v14 }

// kernel: resnet_generator_forward.36
= control target key start
LH: loop header
LB: loop body
LE: loop exit
PB: predicated region body
PF: predicated region fallthrough
CT: control target
= control target key end

     0   :  { %v90_v0 = vlaneseq  ;;  %s1444_s1 = inlined_call_operand.vmem [shape: f32[8,128], index: 1, kind: input, shape index: {}]   ;;  %s1445_s0 = inlined_call_operand.vmem [shape: f32[512,128], index: 0, kind: input, shape index: {}]   ;;  %s1446_s2 = inlined_call_operand.vmem [shape: f32[1,128], index: 2, kind: input, shape index: {}]   ;;  %s1447_s3 = inlined_call_operand.vmem [shape: f32[1,128], index: 3, kind: input, shape index: {}]   ;;  %s1448_s4 = inlined_call_operand.vmem [shape: f32[512,128], index: 4, kind: output, shape index: {}]  }
   0x1   :  { %v17_v1 = vld [vmem:[%s1444_s1] sm:$0x1]  ;;  %v19_v2 = vld [vmem:[%s1444_s1 + $0x1] sm:$0x1]  ;;  %v476_v9 = vld [vmem:[%s1445_s0 + $0x8] sm:$0xff] }
   0x2   :  { %v18_v3 = vmul.f32 0.001953125, %v17_v1  ;;  %v20_v4 = vmul.f32 0.001953125, %v19_v2  ;;  %v465_v5 = vshrl.u32 %v90_v0, 7  ;;  %v471_v8 = vld [vmem:[%s1445_s0] sm:$0xff]  ;;  %v481_v10 = vld [vmem:[%s1445_s0 + $0x10] sm:$0xff]  ;;  %v490_v13 = vld [vmem:[%s1445_s0 + $0x18] sm:$0xff] }
   0x3   :  { %v495_v14 = vld [vmem:[%s1445_s0 + $0x20] sm:$0xff]  ;;  %v500_v15 = vld [vmem:[%s1445_s0 + $0x28] sm:$0xff]  ;;  %v505_v16 = vld [vmem:[%s1445_s0 + $0x30] sm:$0xff] }
   0x4   :  { %v21_v6 = vmul.f32 %v18_v3, %v18_v3  ;;  %v1449_v7 = vsub.s32 0, %v465_v5  ;;  %v510_v17 = vld [vmem:[%s1445_s0 + $0x38] sm:$0xff]  ;;  %v515_v18 = vld [vmem:[%s1445_s0 + $0x40] sm:$0xff]  ;;  %v520_v19 = vld [vmem:[%s1445_s0 + $0x48] sm:$0xff] }
   0x5   :  { %v525_v21 = vld [vmem:[%s1445_s0 + $0x50] sm:$0xff]  ;;  %v530_v22 = vld [vmem:[%s1445_s0 + $0x58] sm:$0xff]  ;;  %v535_v23 = vld [vmem:[%s1445_s0 + $0x60] sm:$0xff] }
   0x6   :  { %v22_v11 = vsub.f32 %v20_v4, %v21_v6  ;;  %v485_v12 = vrot.slane %v18_v3, %v1449_v7  ;;  %v540_v24 = vld [vmem:[%s1445_s0 + $0x68] sm:$0xff]  ;;  %v545_v25 = vld [vmem:[%s1445_s0 + $0x70] sm:$0xff]  ;;  %v550_v26 = vld [vmem:[%s1445_s0 + $0x78] sm:$0xff] }
   0x7   :  { %v555_v27 = vld [vmem:[%s1445_s0 + $0x80] sm:$0xff]  ;;  %v560_v28 = vld [vmem:[%s1445_s0 + $0x88] sm:$0xff]  ;;  %v571_v33 = vld [vmem:[%s1445_s0 + $0x90] sm:$0xff] }
   0x8   :  { %v23_v20 = vmax.f32 %v22_v11, 0.0  ;;  %v576_v34 = vld [vmem:[%s1445_s0 + $0x98] sm:$0xff]  ;;  %v581_v35 = vld [vmem:[%s1445_s0 + $0xa0] sm:$0xff]  ;;  %v586_v36 = vld [vmem:[%s1445_s0 + $0xa8] sm:$0xff] }
   0x9   :  { %v599_v41 = vld [vmem:[%s1445_s0 + $0xb0] sm:$0xff]  ;;  %v604_v42 = vld [vmem:[%s1445_s0 + $0xb8] sm:$0xff]  ;;  %v609_v43 = vld [vmem:[%s1445_s0 + $0xc0] sm:$0xff] }
   0xa   :  { %v24_v29 = vadd.f32 1e-05, %v23_v20  ;;  %v614_v44 = vld [vmem:[%s1445_s0 + $0xc8] sm:$0xff]  ;;  %v625_v48 = vld [vmem:[%s1445_s0 + $0xd0] sm:$0xff]  ;;  %v630_v49 = vld [vmem:[%s1445_s0 + $0xd8] sm:$0xff] }
   0xb   :  { %v635_v50 = vld [vmem:[%s1445_s0 + $0xe0] sm:$0xff]  ;;  %v640_v51 = vld [vmem:[%s1445_s0 + $0xe8] sm:$0xff]  ;;  %v653_v56 = vld [vmem:[%s1445_s0 + $0xf0] sm:$0xff] }
   0xc   :  { %432 = vrsqrt.f32 %v24_v29  ;;  %v658_v57 = vld [vmem:[%s1445_s0 + $0xf8] sm:$0xff]  ;;  %v663_v58 = vld [vmem:[%s1445_s0 + $0x100] sm:$0xff]  ;;  %v668_v59 = vld [vmem:[%s1445_s0 + $0x108] sm:$0xff] }
   0xd   :  { %v681_v0 = vld [vmem:[%s1445_s0 + $0x110] sm:$0xff]  ;;  %v686_v1 = vld [vmem:[%s1445_s0 + $0x118] sm:$0xff]  ;;  %v691_v2 = vld [vmem:[%s1445_s0 + $0x120] sm:$0xff] }
   0xe   :  { %v704_v20 = vld [vmem:[%s1445_s0 + $0x128] sm:$0xff]  ;;  %v709_v29 = vld [vmem:[%s1445_s0 + $0x130] sm:$0xff]  ;;  %v714_v4 = vld [vmem:[%s1445_s0 + $0x138] sm:$0xff] }
   0xf   :  { %v727_v62 = vld [vmem:[%s1445_s0 + $0x140] sm:$0xff]  ;;  %v732_v61 = vld [vmem:[%s1445_s0 + $0x148] sm:$0xff]  ;;  %v737_v11 = vld [vmem:[%s1445_s0 + $0x150] sm:$0xff] }
  0x10   :  { %1467 = vst [vmem:[#allocation2_spill] sm:$0xff] %v737_v11  ;;  %v750_v55 = vld [vmem:[%s1445_s0 + $0x158] sm:$0xff]  ;;  %v755_v54 = vld [vmem:[%s1445_s0 + $0x160] sm:$0xff]  ;;  %v760_v63 = vld [vmem:[%s1445_s0 + $0x168] sm:$0xff] }
  0x11   :  { %1468 = vst [vmem:[#allocation3_spill] sm:$0xff] %v750_v55  ;;  %1469 = vst [vmem:[#allocation4_spill] sm:$0xff] %v755_v54  ;;  %v158_v6 = vld [vmem:[%s1446_s2] sm:$0x1]  ;;  %v776_v47 = vld [vmem:[%s1445_s0 + $0x170] sm:$0xff] }
  0x12   :  { %1470 = vst [vmem:[#allocation5_spill] sm:$0xff] %v760_v63  ;;  %1471 = vst [vmem:[#allocation6_spill] sm:$0xff] %v776_v47  ;;  %v781_v46 = vld [vmem:[%s1445_s0 + $0x178] sm:$0xff]  ;;  %v786_v3 = vld [vmem:[%s1445_s0 + $0x180] sm:$0xff]  ;;  %v1487_v63 = vsub.f32 %v481_v10, %v485_v12  ;;  %v1491_v10 = vsub.f32 %v505_v16, %v485_v12 }
  0x13   :  { %1472 = vst [vmem:[#allocation7_spill] sm:$0xff] %v781_v46  ;;  %1473 = vst [vmem:[#allocation8_spill] sm:$0xff] %v786_v3  ;;  %v799_v40 = vld [vmem:[%s1445_s0 + $0x188] sm:$0xff]  ;;  %v804_v39 = vld [vmem:[%s1445_s0 + $0x190] sm:$0xff] }
  0x14   :  { %1474 = vst [vmem:[#allocation9_spill] sm:$0xff] %v799_v40  ;;  %1475 = vst [vmem:[#allocation10_spill] sm:$0xff] %v804_v39  ;;  %v809_v52 = vld [vmem:[%s1445_s0 + $0x198] sm:$0xff]  ;;  %v822_v37 = vld [vmem:[%s1445_s0 + $0x1a0] sm:$0xff]  ;;  %v1486_v39 = vsub.f32 %v476_v9, %v485_v12  ;;  %v1490_v9 = vsub.f32 %v500_v15, %v485_v12 }
  0x15   :  { %1476 = vst [vmem:[#allocation11_spill] sm:$0xff] %v809_v52  ;;  %1477 = vst [vmem:[#allocation12_spill] sm:$0xff] %v822_v37  ;;  %v827_v32 = vld [vmem:[%s1445_s0 + $0x1a8] sm:$0xff]  ;;  %v832_v45 = vld [vmem:[%s1445_s0 + $0x1b0] sm:$0xff]  ;;  %v1484_v37 = vsub.s32 0, %v465_v5 }
  0x16   :  { %v845_v30 = vld [vmem:[%s1445_s0 + $0x1b8] sm:$0xff]  ;;  %v850_v7 = vld [vmem:[%s1445_s0 + $0x1c0] sm:$0xff]  ;;  %v855_v38 = vld [vmem:[%s1445_s0 + $0x1c8] sm:$0xff]  ;;  %v433_v53 = vpop.eup %432 }
  0x17   :  { %v868_v55 = vld [vmem:[%s1445_s0 + $0x1d0] sm:$0xff]  ;;  %v873_v11 = vld [vmem:[%s1445_s0 + $0x1d8] sm:$0xff]  ;;  %v878_v31 = vld [vmem:[%s1445_s0 + $0x1e0] sm:$0xff]  ;;  %v159_v60 = vmul.f32 %v433_v53, %v158_v6  ;;  %v1485_v6 = vsub.f32 %v471_v8, %v485_v12  ;;  %v1489_v8 = vsub.f32 %v495_v14, %v485_v12 }
  0x18   :  { %1478 = vst [vmem:[#allocation13_spill] sm:$0xff] %v868_v55  ;;  %1479 = vst [vmem:[#allocation14_spill] sm:$0xff] %v873_v11  ;;  %v889_v3 = vld [vmem:[%s1445_s0 + $0x1e8] sm:$0xff]  ;;  %v894_v46 = vld [vmem:[%s1445_s0 + $0x1f0] sm:$0xff] }
  0x19   :  { %1480 = vst [vmem:[#allocation15_spill] sm:$0xff] %v878_v31  ;;  %1481 = vst [vmem:[#allocation16_spill] sm:$0xff] %v889_v3  ;;  %v899_v53 = vld [vmem:[%s1445_s0 + $0x1f8] sm:$0xff]  ;;  %v911_v52 = vrot.slane %v159_v60, %v1484_v37  ;;  %v922_v54 = vld [vmem:[%s1447_s3] ss:$0 sm:$0xff]  ;;  %v1488_v37 = vsub.f32 %v490_v13, %v485_v12  ;;  %v1492_v13 = vsub.f32 %v510_v17, %v485_v12 }
  0x1a   :  { %1482 = vst [vmem:[#allocation17_spill] sm:$0xff] %v894_v46  ;;  %1483 = vst [vmem:[#allocation18_spill] sm:$0xff] %v899_v53 }
  0x1b   :  { %v164_v47 = vmul.f32 %v911_v52, %v1485_v6  ;;  %v165_v40 = vmul.f32 %v911_v52, %v1486_v39  ;;  %v166_v5 = vmul.f32 %v911_v52, %v1487_v63  ;;  %v167_v60 = vmul.f32 %v911_v52, %v1488_v37 }
  0x1c   :  { %v168_v6 = vmul.f32 %v911_v52, %v1489_v8  ;;  %v169_v39 = vmul.f32 %v911_v52, %v1490_v9  ;;  %v170_v63 = vmul.f32 %v911_v52, %v1491_v10  ;;  %v171_v37 = vmul.f32 %v911_v52, %v1492_v13 }
  0x1d   :  { %v235_v53 = vadd.f32 %v922_v54, %v164_v47  ;;  %v236_v14 = vadd.f32 %v922_v54, %v165_v40  ;;  %v237_v8 = vadd.f32 %v922_v54, %v166_v5  ;;  %v238_v15 = vadd.f32 %v922_v54, %v167_v60 }
  0x1e   :  { %v239_v9 = vadd.f32 %v922_v54, %v168_v6  ;;  %v240_v46 = vadd.f32 %v922_v54, %v169_v39  ;;  %v241_v16 = vadd.f32 %v922_v54, %v170_v63  ;;  %v242_v10 = vadd.f32 %v922_v54, %v171_v37 }
  0x1f   :  { %v299_v3 = vmax.f32 %v235_v53, 0.0  ;;  %v300_v17 = vmax.f32 %v236_v14, 0.0  ;;  %v301_v31 = vmax.f32 %v237_v8, 0.0  ;;  %v302_v13 = vmax.f32 %v238_v15, 0.0 }
  0x20   :  { %v303_v11 = vmax.f32 %v239_v9, 0.0  ;;  %v304_v47 = vmax.f32 %v240_v46, 0.0  ;;  %v305_v55 = vmax.f32 %v241_v16, 0.0  ;;  %v306_v40 = vmax.f32 %v242_v10, 0.0 }
  0x21   :  { %363 = vst [vmem:[%s1448_s4] sm:$0xff] %v299_v3  ;;  %364 = vst [vmem:[%s1448_s4 + $0x8] sm:$0xff] %v300_v17  ;;  %v1493_v46 = vsub.f32 %v515_v18, %v485_v12  ;;  %v1494_v3 = vsub.f32 %v520_v19, %v485_v12  ;;  %v1495_v60 = vsub.f32 %v525_v21, %v485_v12 }
  0x22   :  { %365 = vst [vmem:[%s1448_s4 + $0x10] sm:$0xff] %v301_v31  ;;  %366 = vst [vmem:[%s1448_s4 + $0x18] sm:$0xff] %v302_v13  ;;  %v1496_v31 = vsub.f32 %v530_v22, %v485_v12  ;;  %v1497_v18 = vsub.f32 %v535_v23, %v485_v12  ;;  %v1498_v21 = vsub.f32 %v540_v24, %v485_v12 }
  0x23   :  { %v172_v53 = vmul.f32 %v911_v52, %v1493_v46  ;;  %v173_v5 = vmul.f32 %v911_v52, %v1494_v3  ;;  %v174_v6 = vmul.f32 %v911_v52, %v1495_v60  ;;  %367 = vst [vmem:[%s1448_s4 + $0x20] sm:$0xff] %v303_v11  ;;  %368 = vst [vmem:[%s1448_s4 + $0x28] sm:$0xff] %v304_v47 }
  0x24   :  { %v175_v39 = vmul.f32 %v911_v52, %v1496_v31  ;;  %369 = vst [vmem:[%s1448_s4 + $0x30] sm:$0xff] %v305_v55  ;;  %370 = vst [vmem:[%s1448_s4 + $0x38] sm:$0xff] %v306_v40  ;;  %v176_v19 = vmul.f32 %v911_v52, %v1497_v18  ;;  %v177_v22 = vmul.f32 %v911_v52, %v1498_v21 }
  0x25   :  { %v1499_v11 = vsub.f32 %v545_v25, %v485_v12  ;;  %v1500_v55 = vsub.f32 %v550_v26, %v485_v12  ;;  %v243_v14 = vadd.f32 %v922_v54, %v172_v53  ;;  %v244_v23 = vadd.f32 %v922_v54, %v173_v5 }
  0x26   :  { %v245_v8 = vadd.f32 %v922_v54, %v174_v6  ;;  %v246_v24 = vadd.f32 %v922_v54, %v175_v39  ;;  %v247_v15 = vadd.f32 %v922_v54, %v176_v19  ;;  %v248_v9 = vadd.f32 %v922_v54, %v177_v22 }
  0x27   :  { %v178_v63 = vmul.f32 %v911_v52, %v1499_v11  ;;  %v179_v37 = vmul.f32 %v911_v52, %v1500_v55  ;;  %v307_v10 = vmax.f32 %v243_v14, 0.0  ;;  %v308_v26 = vmax.f32 %v244_v23, 0.0 }
  0x28   :  { %v309_v17 = vmax.f32 %v245_v8, 0.0  ;;  %v310_v13 = vmax.f32 %v246_v24, 0.0  ;;  %v311_v47 = vmax.f32 %v247_v15, 0.0  ;;  %v312_v40 = vmax.f32 %v248_v9, 0.0 }
  0x29   :  { %v249_v25 = vadd.f32 %v922_v54, %v178_v63  ;;  %v250_v16 = vadd.f32 %v922_v54, %v179_v37  ;;  %371 = vst [vmem:[%s1448_s4 + $0x40] sm:$0xff] %v307_v10  ;;  %372 = vst [vmem:[%s1448_s4 + $0x48] sm:$0xff] %v308_v26  ;;  %v1501_v3 = vsub.f32 %v555_v27, %v485_v12 }
  0x2a   :  { %373 = vst [vmem:[%s1448_s4 + $0x50] sm:$0xff] %v309_v17  ;;  %374 = vst [vmem:[%s1448_s4 + $0x58] sm:$0xff] %v310_v13  ;;  %v1502_v60 = vsub.f32 %v560_v28, %v485_v12  ;;  %v1503_v31 = vsub.f32 %v571_v33, %v485_v12  ;;  %v1504_v18 = vsub.f32 %v576_v34, %v485_v12 }
  0x2b   :  { %v313_v46 = vmax.f32 %v249_v25, 0.0  ;;  %v314_v53 = vmax.f32 %v250_v16, 0.0  ;;  %v180_v5 = vmul.f32 %v911_v52, %v1501_v3  ;;  %375 = vst [vmem:[%s1448_s4 + $0x60] sm:$0xff] %v311_v47  ;;  %376 = vst [vmem:[%s1448_s4 + $0x68] sm:$0xff] %v312_v40  ;;  %v1505_v27 = vsub.f32 %v581_v35, %v485_v12 }
  0x2c   :  { %v181_v6 = vmul.f32 %v911_v52, %v1502_v60  ;;  %v182_v39 = vmul.f32 %v911_v52, %v1503_v31  ;;  %v183_v19 = vmul.f32 %v911_v52, %v1504_v18  ;;  %v1506_v33 = vsub.f32 %v586_v36, %v485_v12 }
  0x2d   :  { %377 = vst [vmem:[%s1448_s4 + $0x70] sm:$0xff] %v313_v46  ;;  %378 = vst [vmem:[%s1448_s4 + $0x78] sm:$0xff] %v314_v53  ;;  %v184_v28 = vmul.f32 %v911_v52, %v1505_v27  ;;  %v1507_v21 = vsub.f32 %v599_v41, %v485_v12  ;;  %v1508_v11 = vsub.f32 %v604_v42, %v485_v12 }
  0x2e   :  { %v185_v34 = vmul.f32 %v911_v52, %v1506_v33  ;;  %v251_v55 = vadd.f32 %v922_v54, %v180_v5  ;;  %v252_v35 = vadd.f32 %v922_v54, %v181_v6  ;;  %v253_v37 = vadd.f32 %v922_v54, %v182_v39 }
  0x2f   :  { %v186_v22 = vmul.f32 %v911_v52, %v1507_v21  ;;  %v187_v63 = vmul.f32 %v911_v52, %v1508_v11  ;;  %v254_v36 = vadd.f32 %v922_v54, %v183_v19  ;;  %v255_v14 = vadd.f32 %v922_v54, %v184_v28 }
  0x30   :  { %v256_v23 = vadd.f32 %v922_v54, %v185_v34  ;;  %v315_v24 = vmax.f32 %v251_v55, 0.0  ;;  %v316_v42 = vmax.f32 %v252_v35, 0.0  ;;  %v317_v15 = vmax.f32 %v253_v37, 0.0 }
  0x31   :  { %v257_v41 = vadd.f32 %v922_v54, %v186_v22  ;;  %v258_v8 = vadd.f32 %v922_v54, %v187_v63  ;;  %v318_v9 = vmax.f32 %v254_v36, 0.0  ;;  %v319_v25 = vmax.f32 %v255_v14, 0.0 }
  0x32   :  { %v320_v16 = vmax.f32 %v256_v23, 0.0  ;;  %379 = vst [vmem:[%s1448_s4 + $0x80] sm:$0xff] %v315_v24  ;;  %380 = vst [vmem:[%s1448_s4 + $0x88] sm:$0xff] %v316_v42  ;;  %v1509_v17 = vsub.f32 %v609_v43, %v485_v12  ;;  %v1510_v47 = vsub.f32 %v614_v44, %v485_v12  ;;  %v1511_v46 = vsub.f32 %v625_v48, %v485_v12 }
  0x33   :  { %v321_v10 = vmax.f32 %v257_v41, 0.0  ;;  %v322_v26 = vmax.f32 %v258_v8, 0.0  ;;  %381 = vst [vmem:[%s1448_s4 + $0x90] sm:$0xff] %v317_v15  ;;  %382 = vst [vmem:[%s1448_s4 + $0x98] sm:$0xff] %v318_v9  ;;  %v1512_v3 = vsub.f32 %v630_v49, %v485_v12  ;;  %v1513_v43 = vsub.f32 %v635_v50, %v485_v12 }
  0x34   :  { %v188_v13 = vmul.f32 %v911_v52, %v1509_v17  ;;  %v189_v40 = vmul.f32 %v911_v52, %v1510_v47  ;;  %v190_v53 = vmul.f32 %v911_v52, %v1511_v46  ;;  %383 = vst [vmem:[%s1448_s4 + $0xa0] sm:$0xff] %v319_v25  ;;  %384 = vst [vmem:[%s1448_s4 + $0xa8] sm:$0xff] %v320_v16 }
  0x35   :  { %v191_v5 = vmul.f32 %v911_v52, %v1512_v3  ;;  %385 = vst [vmem:[%s1448_s4 + $0xb0] sm:$0xff] %v321_v10  ;;  %386 = vst [vmem:[%s1448_s4 + $0xb8] sm:$0xff] %v322_v26  ;;  %v192_v44 = vmul.f32 %v911_v52, %v1513_v43  ;;  %v1514_v48 = vsub.f32 %v640_v51, %v485_v12 }
  0x36   :  { %v1515_v60 = vsub.f32 %v653_v56, %v485_v12  ;;  %v1516_v31 = vsub.f32 %v658_v57, %v485_v12  ;;  %v259_v18 = vadd.f32 %v922_v54, %v188_v13  ;;  %v260_v50 = vadd.f32 %v922_v54, %v189_v40 }
  0x37   :  { %v193_v49 = vmul.f32 %v911_v52, %v1514_v48  ;;  %v261_v19 = vadd.f32 %v922_v54, %v190_v53  ;;  %v262_v51 = vadd.f32 %v922_v54, %v191_v5  ;;  %v263_v27 = vadd.f32 %v922_v54, %v192_v44 }
  0x38   :  { %v194_v6 = vmul.f32 %v911_v52, %v1515_v60  ;;  %v195_v39 = vmul.f32 %v911_v52, %v1516_v31  ;;  %v323_v34 = vmax.f32 %v259_v18, 0.0  ;;  %v324_v57 = vmax.f32 %v260_v50, 0.0  ;;  %v1527_v31 = vld [vmem:[#allocation2_spill] sm:$0xff]  ;;  %v1529_v50 = vld [vmem:[#allocation3_spill] sm:$0xff] }
  0x39   :  { %v264_v28 = vadd.f32 %v922_v54, %v193_v49  ;;  %v325_v21 = vmax.f32 %v261_v19, 0.0  ;;  %v326_v22 = vmax.f32 %v262_v51, 0.0  ;;  %v327_v11 = vmax.f32 %v263_v27, 0.0 }
  0x3a   :  { %v265_v56 = vadd.f32 %v922_v54, %v194_v6  ;;  %v266_v33 = vadd.f32 %v922_v54, %v195_v39  ;;  %387 = vst [vmem:[%s1448_s4 + $0xc0] sm:$0xff] %v323_v34  ;;  %388 = vst [vmem:[%s1448_s4 + $0xc8] sm:$0xff] %v324_v57  ;;  %v1517_v37 = vsub.f32 %v663_v58, %v485_v12  ;;  %v1535_v34 = vld [vmem:[#allocation6_spill] sm:$0xff] }
  0x3b   :  { %v328_v63 = vmax.f32 %v264_v28, 0.0  ;;  %389 = vst [vmem:[%s1448_s4 + $0xd0] sm:$0xff] %v325_v21  ;;  %390 = vst [vmem:[%s1448_s4 + $0xd8] sm:$0xff] %v326_v22  ;;  %v1518_v14 = vsub.f32 %v668_v59, %v485_v12  ;;  %v1519_v41 = vsub.f32 %v681_v0, %v485_v12  ;;  %v1520_v24 = vsub.f32 %v686_v1, %v485_v12  ;;  %v1533_v28 = vld [vmem:[#allocation5_spill] sm:$0xff]  ;;  %v1537_v22 = vld [vmem:[#allocation7_spill] sm:$0xff] }
  0x3c   :  { %v329_v55 = vmax.f32 %v265_v56, 0.0  ;;  %v330_v35 = vmax.f32 %v266_v33, 0.0  ;;  %v196_v36 = vmul.f32 %v911_v52, %v1517_v37  ;;  %391 = vst [vmem:[%s1448_s4 + $0xe0] sm:$0xff] %v327_v11  ;;  %v1521_v58 = vsub.f32 %v691_v2, %v485_v12 }
  0x3d   :  { %v197_v23 = vmul.f32 %v911_v52, %v1518_v14  ;;  %v198_v8 = vmul.f32 %v911_v52, %v1519_v41  ;;  %v199_v42 = vmul.f32 %v911_v52, %v1520_v24  ;;  %392 = vst [vmem:[%s1448_s4 + $0xe8] sm:$0xff] %v328_v63  ;;  %v1522_v0 = vsub.f32 %v704_v20, %v485_v12 }
  0x3e   :  { %393 = vst [vmem:[%s1448_s4 + $0xf0] sm:$0xff] %v329_v55  ;;  %394 = vst [vmem:[%s1448_s4 + $0xf8] sm:$0xff] %v330_v35  ;;  %v200_v59 = vmul.f32 %v911_v52, %v1521_v58  ;;  %v1523_v15 = vsub.f32 %v709_v29, %v485_v12  ;;  %v1524_v25 = vsub.f32 %v714_v4, %v485_v12 }
  0x3f   :  { %v201_v1 = vmul.f32 %v911_v52, %v1522_v0  ;;  %v267_v10 = vadd.f32 %v922_v54, %v196_v36  ;;  %v268_v2 = vadd.f32 %v922_v54, %v197_v23  ;;  %v269_v26 = vadd.f32 %v922_v54, %v198_v8 }
  0x40   :  { %v202_v9 = vmul.f32 %v911_v52, %v1523_v15  ;;  %v203_v16 = vmul.f32 %v911_v52, %v1524_v25  ;;  %v270_v20 = vadd.f32 %v922_v54, %v199_v42  ;;  %v271_v17 = vadd.f32 %v922_v54, %v200_v59  ;;  %v1539_v25 = vld [vmem:[#allocation8_spill] sm:$0xff] }
  0x41   :  { %v272_v13 = vadd.f32 %v922_v54, %v201_v1  ;;  %v331_v40 = vmax.f32 %v267_v10, 0.0  ;;  %v332_v4 = vmax.f32 %v268_v2, 0.0  ;;  %v333_v46 = vmax.f32 %v269_v26, 0.0  ;;  %v1541_v2 = vld [vmem:[#allocation9_spill] sm:$0xff] }
  0x42   :  { %v273_v29 = vadd.f32 %v922_v54, %v202_v9  ;;  %v274_v47 = vadd.f32 %v922_v54, %v203_v16  ;;  %v334_v53 = vmax.f32 %v270_v20, 0.0  ;;  %v335_v3 = vmax.f32 %v271_v17, 0.0  ;;  %v1543_v17 = vld [vmem:[#allocation10_spill] sm:$0xff] }
  0x43   :  { %v336_v5 = vmax.f32 %v272_v13, 0.0  ;;  %395 = vst [vmem:[%s1448_s4 + $0x100] sm:$0xff] %v331_v40  ;;  %396 = vst [vmem:[%s1448_s4 + $0x108] sm:$0xff] %v332_v4  ;;  %v1525_v48 = vsub.f32 %v727_v62, %v485_v12  ;;  %v1526_v60 = vsub.f32 %v732_v61, %v485_v12  ;;  %v1528_v39 = vsub.f32 %v1527_v31, %v485_v12  ;;  %v1531_v61 = vld [vmem:[#allocation4_spill] sm:$0xff] }
  0x44   :  { %v337_v43 = vmax.f32 %v273_v29, 0.0  ;;  %v338_v44 = vmax.f32 %v274_v47, 0.0  ;;  %397 = vst [vmem:[%s1448_s4 + $0x110] sm:$0xff] %v333_v46  ;;  %398 = vst [vmem:[%s1448_s4 + $0x118] sm:$0xff] %v334_v53  ;;  %v1530_v19 = vsub.f32 %v1529_v50, %v485_v12  ;;  %v1532_v62 = vsub.f32 %v1531_v61, %v485_v12  ;;  %v1545_v47 = vld [vmem:[#allocation11_spill] sm:$0xff]  ;;  %v1547_v46 = vld [vmem:[#allocation12_spill] sm:$0xff] }
  0x45   :  { %v204_v49 = vmul.f32 %v911_v52, %v1525_v48  ;;  %v205_v6 = vmul.f32 %v911_v52, %v1526_v60  ;;  %v206_v18 = vmul.f32 %v911_v52, %v1528_v39  ;;  %399 = vst [vmem:[%s1448_s4 + $0x120] sm:$0xff] %v335_v3  ;;  %400 = vst [vmem:[%s1448_s4 + $0x128] sm:$0xff] %v336_v5 }
  0x46   :  { %v207_v51 = vmul.f32 %v911_v52, %v1530_v19  ;;  %401 = vst [vmem:[%s1448_s4 + $0x130] sm:$0xff] %v337_v43  ;;  %402 = vst [vmem:[%s1448_s4 + $0x138] sm:$0xff] %v338_v44  ;;  %v208_v27 = vmul.f32 %v911_v52, %v1532_v62  ;;  %v1534_v56 = vsub.f32 %v1533_v28, %v485_v12 }
  0x47   :  { %v1536_v57 = vsub.f32 %v1535_v34, %v485_v12  ;;  %v1538_v11 = vsub.f32 %v1537_v22, %v485_v12  ;;  %v275_v55 = vadd.f32 %v922_v54, %v204_v49  ;;  %v276_v35 = vadd.f32 %v922_v54, %v205_v6 }
  0x48   :  { %v209_v33 = vmul.f32 %v911_v52, %v1534_v56  ;;  %v277_v37 = vadd.f32 %v922_v54, %v206_v18  ;;  %v278_v36 = vadd.f32 %v922_v54, %v207_v51  ;;  %v279_v14 = vadd.f32 %v922_v54, %v208_v27 }
  0x49   :  { %v210_v21 = vmul.f32 %v911_v52, %v1536_v57  ;;  %v211_v63 = vmul.f32 %v911_v52, %v1538_v11  ;;  %v339_v24 = vmax.f32 %v275_v55, 0.0  ;;  %v340_v42 = vmax.f32 %v276_v35, 0.0  ;;  %v1554_v11 = vld [vmem:[#allocation13_spill] sm:$0xff]  ;;  %v1556_v35 = vld [vmem:[#allocation14_spill] sm:$0xff] }
  0x4a   :  { %v280_v23 = vadd.f32 %v922_v54, %v209_v33  ;;  %v341_v58 = vmax.f32 %v277_v37, 0.0  ;;  %v342_v59 = vmax.f32 %v278_v36, 0.0  ;;  %v343_v0 = vmax.f32 %v279_v14, 0.0 }
  0x4b   :  { %v281_v41 = vadd.f32 %v922_v54, %v210_v21  ;;  %v282_v8 = vadd.f32 %v922_v54, %v211_v63  ;;  %403 = vst [vmem:[%s1448_s4 + $0x140] sm:$0xff] %v339_v24  ;;  %404 = vst [vmem:[%s1448_s4 + $0x148] sm:$0xff] %v340_v42  ;;  %v1540_v16 = vsub.f32 %v1539_v25, %v485_v12  ;;  %v1562_v24 = vld [vmem:[#allocation17_spill] sm:$0xff] }
  0x4c   :  { %v344_v1 = vmax.f32 %v280_v23, 0.0  ;;  %405 = vst [vmem:[%s1448_s4 + $0x150] sm:$0xff] %v341_v58  ;;  %406 = vst [vmem:[%s1448_s4 + $0x158] sm:$0xff] %v342_v59  ;;  %v1542_v26 = vsub.f32 %v1541_v2, %v485_v12  ;;  %v1544_v13 = vsub.f32 %v1543_v17, %v485_v12  ;;  %v1546_v40 = vsub.f32 %v1545_v47, %v485_v12  ;;  %v1560_v23 = vld [vmem:[#allocation16_spill] sm:$0xff]  ;;  %v1564_v59 = vld [vmem:[#allocation18_spill] sm:$0xff] }
  0x4d   :  { %v345_v15 = vmax.f32 %v281_v41, 0.0  ;;  %v346_v9 = vmax.f32 %v282_v8, 0.0  ;;  %v212_v10 = vmul.f32 %v911_v52, %v1540_v16  ;;  %407 = vst [vmem:[%s1448_s4 + $0x160] sm:$0xff] %v343_v0  ;;  %v1548_v53 = vsub.f32 %v1547_v46, %v485_v12 }
  0x4e   :  { %v213_v20 = vmul.f32 %v911_v52, %v1542_v26  ;;  %v214_v29 = vmul.f32 %v911_v52, %v1544_v13  ;;  %v215_v4 = vmul.f32 %v911_v52, %v1546_v40  ;;  %408 = vst [vmem:[%s1448_s4 + $0x168] sm:$0xff] %v344_v1  ;;  %v1549_v5 = vsub.f32 %v827_v32, %v485_v12 }
  0x4f   :  { %409 = vst [vmem:[%s1448_s4 + $0x170] sm:$0xff] %v345_v15  ;;  %410 = vst [vmem:[%s1448_s4 + $0x178] sm:$0xff] %v346_v9  ;;  %v216_v3 = vmul.f32 %v911_v52, %v1548_v53  ;;  %v1550_v44 = vsub.f32 %v832_v45, %v485_v12  ;;  %v1551_v49 = vsub.f32 %v845_v30, %v485_v12 }
  0x50   :  { %v217_v43 = vmul.f32 %v911_v52, %v1549_v5  ;;  %v283_v6 = vadd.f32 %v922_v54, %v212_v10  ;;  %v284_v31 = vadd.f32 %v922_v54, %v213_v20  ;;  %v285_v39 = vadd.f32 %v922_v54, %v214_v29 }
  0x51   :  { %v218_v48 = vmul.f32 %v911_v52, %v1550_v44  ;;  %v219_v60 = vmul.f32 %v911_v52, %v1551_v49  ;;  %v286_v32 = vadd.f32 %v922_v54, %v215_v4  ;;  %v287_v18 = vadd.f32 %v922_v54, %v216_v3 }
  0x52   :  { %v288_v50 = vadd.f32 %v922_v54, %v217_v43  ;;  %v347_v51 = vmax.f32 %v283_v6, 0.0  ;;  %v348_v30 = vmax.f32 %v284_v31, 0.0  ;;  %v349_v61 = vmax.f32 %v285_v39, 0.0 }
  0x53   :  { %v289_v45 = vadd.f32 %v922_v54, %v218_v48  ;;  %v290_v19 = vadd.f32 %v922_v54, %v219_v60  ;;  %v350_v62 = vmax.f32 %v286_v32, 0.0  ;;  %v351_v27 = vmax.f32 %v287_v18, 0.0 }
  0x54   :  { %v352_v28 = vmax.f32 %v288_v50, 0.0  ;;  %411 = vst [vmem:[%s1448_s4 + $0x180] sm:$0xff] %v347_v51  ;;  %412 = vst [vmem:[%s1448_s4 + $0x188] sm:$0xff] %v348_v30  ;;  %v1552_v34 = vsub.f32 %v850_v7, %v485_v12  ;;  %v1553_v21 = vsub.f32 %v855_v38, %v485_v12  ;;  %v1555_v63 = vsub.f32 %v1554_v11, %v485_v12  ;;  %v1558_v7 = vld [vmem:[#allocation15_spill] sm:$0xff] }
  0x55   :  { %v353_v56 = vmax.f32 %v289_v45, 0.0  ;;  %v354_v33 = vmax.f32 %v290_v19, 0.0  ;;  %413 = vst [vmem:[%s1448_s4 + $0x190] sm:$0xff] %v349_v61  ;;  %414 = vst [vmem:[%s1448_s4 + $0x198] sm:$0xff] %v350_v62  ;;  %v1557_v37 = vsub.f32 %v1556_v35, %v485_v12  ;;  %v1559_v38 = vsub.f32 %v1558_v7, %v485_v12 }
  0x56   :  { %v220_v57 = vmul.f32 %v911_v52, %v1552_v34  ;;  %v221_v22 = vmul.f32 %v911_v52, %v1553_v21  ;;  %v222_v55 = vmul.f32 %v911_v52, %v1555_v63  ;;  %415 = vst [vmem:[%s1448_s4 + $0x1a0] sm:$0xff] %v351_v27  ;;  %416 = vst [vmem:[%s1448_s4 + $0x1a8] sm:$0xff] %v352_v28 }
  0x57   :  { %v223_v36 = vmul.f32 %v911_v52, %v1557_v37  ;;  %417 = vst [vmem:[%s1448_s4 + $0x1b0] sm:$0xff] %v353_v56  ;;  %418 = vst [vmem:[%s1448_s4 + $0x1b8] sm:$0xff] %v354_v33  ;;  %v224_v14 = vmul.f32 %v911_v52, %v1559_v38  ;;  %v1561_v41 = vsub.f32 %v1560_v23, %v485_v12 }
  0x58   :  { %v1563_v42 = vsub.f32 %v1562_v24, %v485_v12  ;;  %v1565_v0 = vsub.f32 %v1564_v59, %v485_v12  ;;  %v291_v15 = vadd.f32 %v922_v54, %v220_v57  ;;  %v292_v9 = vadd.f32 %v922_v54, %v221_v22 }
  0x59   :  { %v225_v8 = vmul.f32 %v911_v52, %v1561_v41  ;;  %v293_v25 = vadd.f32 %v922_v54, %v222_v55  ;;  %v294_v16 = vadd.f32 %v922_v54, %v223_v36  ;;  %v295_v10 = vadd.f32 %v922_v54, %v224_v14 }
  0x5a   :  { %v226_v58 = vmul.f32 %v911_v52, %v1563_v42  ;;  %v227_v1 = vmul.f32 %v911_v52, %v1565_v0  ;;  %v355_v17 = vmax.f32 %v291_v15, 0.0  ;;  %v356_v12 = vmax.f32 %v292_v9, 0.0 }
  0x5b   :  { %v296_v2 = vadd.f32 %v922_v54, %v225_v8  ;;  %v357_v13 = vmax.f32 %v293_v25, 0.0  ;;  %v358_v52 = vmax.f32 %v294_v16, 0.0  ;;  %v359_v29 = vmax.f32 %v295_v10, 0.0 }
  0x5c   :  { %v297_v26 = vadd.f32 %v922_v54, %v226_v58  ;;  %v298_v20 = vadd.f32 %v922_v54, %v227_v1  ;;  %419 = vst [vmem:[%s1448_s4 + $0x1c0] sm:$0xff] %v355_v17  ;;  %420 = vst [vmem:[%s1448_s4 + $0x1c8] sm:$0xff] %v356_v12 }
  0x5d   :  { %v360_v47 = vmax.f32 %v296_v2, 0.0  ;;  %421 = vst [vmem:[%s1448_s4 + $0x1d0] sm:$0xff] %v357_v13  ;;  %422 = vst [vmem:[%s1448_s4 + $0x1d8] sm:$0xff] %v358_v52 }
  0x5e   :  { %v361_v40 = vmax.f32 %v297_v26, 0.0  ;;  %v362_v4 = vmax.f32 %v298_v20, 0.0  ;;  %423 = vst [vmem:[%s1448_s4 + $0x1e0] sm:$0xff] %v359_v29 }
  0x5f   :  { %424 = vst [vmem:[%s1448_s4 + $0x1e8] sm:$0xff] %v360_v47 }
  0x60   :  { %425 = vst [vmem:[%s1448_s4 + $0x1f0] sm:$0xff] %v361_v40  ;;  %426 = vst [vmem:[%s1448_s4 + $0x1f8] sm:$0xff] %v362_v4 }

// kernel: resnet_generator_forward.34
= control target key start
LH: loop header
LB: loop body
LE: loop exit
PB: predicated region body
PF: predicated region fallthrough
CT: control target
= control target key end

     0   :  { %s1425_s12 = smov 0   ;;  %s1427_s13 = smov 0   ;;  %s1618_s0 = inlined_call_operand.vmem [shape: bf16[512,256], index: 0, kind: input, shape index: {}]   ;;  %s1619_s1 = inlined_call_operand.vmem [shape: bf16[256,128], index: 1, kind: input, shape index: {}]   ;;  %s1620_s2 = inlined_call_operand.vmem [shape: f32[1,128], index: 2, kind: input, shape index: {}]   ;;  %s1621_s3 = inlined_call_operand.vmem [shape: f32[512,128], index: 3, kind: output, shape index: {}]  }
   0x1   :  { %s1429_s14 = smov 0  }
   0x2 LB: > { %s32_s15 = sadd.s32 1, %s1399_s13  ;;  %p1107_p0 = scmp.ge.s32.totalorder %s1403_s14, 1  ;;  %s1403_s14 = sphi %s1429_s14, %s13_s14   ;;  %s1399_s13 = sphi %s1427_s13, %s1623_s13   ;;  %s1395_s12 = sphi %s1425_s12, %s1622_s12  }
   0x3   : > { %p34_p1 = scmp.ge.s32.totalorder %s32_s15, 2  ;;  %p191_p2 = scmp.lt.s32.totalorder %s1403_s14, 3 }
   0x5   : > { %s1625_s15 = smov (%p34_p1, %s32_s15), 0  ;;  %p192_p3 = pnand %p1107_p0, %p191_p2 }
   0x6   : > { %v1317_v0 = vld [vmem:[%s1619_s1 + $0x40] sm:$0xff] (!%p192_p3)   ;;  %s1108_s18 = sshll.u32 (!%p192_p3), %s1395_s12, 5  ;;  %v1319_v2 = vld [vmem:[%s1619_s1 + $0x48] sm:$0xff] (!%p192_p3)   ;;  %v1321_v4 = vld [vmem:[%s1619_s1 + $0x50] sm:$0xff] (!%p192_p3)  }
   0x7   : > { %195 = sbr.rel (%p192_p3) target bundleno = 315 (0x13b), region = 32  ;;  %v1318_v1 = vld [vmem:[%s1619_s1] sm:$0xff] (!%p192_p3)   ;;  %1165 = vmatprep.subr.bf16.mxu0 (!%p192_p3), %v1317_v0  ;;  %1277 = vmatprep.subr.bf16.mxu1 (!%p192_p3), %v1317_v0  ;;  %v1320_v3 = vld [vmem:[%s1619_s1 + $0x8] sm:$0xff] (!%p192_p3)   ;;  %p236_p4 = scmp.lt.s32.totalorder (!%p192_p3), %s1108_s18, 63  ;;  %v1322_v5 = vld [vmem:[%s1619_s1 + $0x10] sm:$0xff] (!%p192_p3)  }
   0x8   : > { %1166 = vmatpush3.bf16.msra.mxu0 (!%p192_p3), %v1318_v1  ;;  %1285 = vmatpush3.bf16.msra.mxu1 (!%p192_p3), %v1318_v1  ;;  %v1323_v6 = vld [vmem:[%s1619_s1 + $0x58] sm:$0xff] (!%p192_p3)   ;;  %v1325_v8 = vld [vmem:[%s1619_s1 + $0x60] sm:$0xff] (!%p192_p3)   ;;  %v1327_v10 = vld [vmem:[%s1619_s1 + $0x68] sm:$0xff] (!%p192_p3)  }
   0x9   : > { %1167 = vmatprep.subr.bf16.mxu0 (!%p192_p3), %v1319_v2  ;;  %1278 = vmatprep.subr.bf16.mxu1 (!%p192_p3), %v1319_v2  ;;  %v1324_v7 = vld [vmem:[%s1619_s1 + $0x18] sm:$0xff] (!%p192_p3)   ;;  %v1326_v9 = vld [vmem:[%s1619_s1 + $0x20] sm:$0xff] (!%p192_p3)   ;;  %v1328_v13 = vld [vmem:[%s1619_s1 + $0x28] sm:$0xff] (!%p192_p3)  }
   0xa   : > { %v1329_v14 = vld [vmem:[%s1619_s1 + $0x70] sm:$0xff] (!%p192_p3)   ;;  %v1331_v16 = vld [vmem:[%s1619_s1 + $0x78] sm:$0xff] (!%p192_p3)   ;;  %v1536_v51 = vld [vmem:[%s1620_s2] ss:$0 sm:$0xff] (!%p192_p3) }
   0xb   : > { %v1330_v15 = vld [vmem:[%s1619_s1 + $0x30] sm:$0xff] (!%p192_p3)   ;;  %v1332_v17 = vld [vmem:[%s1619_s1 + $0x38] sm:$0xff] (!%p192_p3)  }
   0xc   : > { %1168 = vmatpush3.bf16.msra.mxu0 (!%p192_p3), %v1320_v3  ;;  %1286 = vmatpush3.bf16.msra.mxu1 (!%p192_p3), %v1320_v3 }
   0xd   : > { %1169 = vmatprep.subr.bf16.mxu0 (!%p192_p3), %v1321_v4  ;;  %1279 = vmatprep.subr.bf16.mxu1 (!%p192_p3), %v1321_v4 }
   0xe   : > { %s1627_s18 = smov (!%p236_p4, %s1108_s18), 63 }
   0xf   : > { %s1164_s6 = sshll.u32 %s1627_s18, 3 }
  0x10   : > { %1170 = vmatpush3.bf16.msra.mxu0 %v1322_v5  ;;  %1287 = vmatpush3.bf16.msra.mxu1 %v1322_v5  ;;  %s1478_s11 = scalar_lea.vmem %s1618_s0, %s1164_s6  ;;  %s1543_s8 = scalar_lea.vmem %s1621_s3, %s1164_s6 }
  0x11   : > { %1171 = vmatprep.subr.bf16.mxu0 %v1323_v6  ;;  %1280 = vmatprep.subr.bf16.mxu1 %v1323_v6  ;;  %v1335_v11 = vld [vmem:[%s1478_s11 + $0x4] ss:$8 sps:$4 sm:$0xff]   ;;  %v1333_v18 = vld [vmem:[%s1478_s11] ss:$8 sps:$4 sm:$0xff]   ;;  %v1339_v20 = vld [vmem:[%s1478_s11 + $0x14] ss:$8 sps:$4 sm:$0xff]  }
  0x12   : > { %v1338_v12 = vld [vmem:[%s1478_s11 + $0x84] ss:$8 sps:$4 sm:$0xff]   ;;  %688 = vmatprep.mubr.bf16.mxu0 %v1335_v11  ;;  %v1336_v19 = vld [vmem:[%s1478_s11 + $0x80] ss:$8 sps:$4 sm:$0xff]   ;;  %v1341_v21 = vld [vmem:[%s1478_s11 + $0x94] ss:$8 sps:$4 sm:$0xff]  }
  0x13   : > { %752 = vmatprep.mubr.bf16.mxu1 %v1338_v12  ;;  %v1343_v22 = vld [vmem:[%s1478_s11 + $0x10] ss:$8 sps:$4 sm:$0xff]   ;;  %v1345_v24 = vld [vmem:[%s1478_s11 + $0x24] ss:$8 sps:$4 sm:$0xff]   ;;  %v1349_v26 = vld [vmem:[%s1478_s11 + $0x20] ss:$8 sps:$4 sm:$0xff]  }
  0x14   : > { %1172 = vmatpush3.bf16.msra.mxu0 %v1324_v7  ;;  %1288 = vmatpush3.bf16.msra.mxu1 %v1324_v7  ;;  %v1344_v23 = vld [vmem:[%s1478_s11 + $0x90] ss:$8 sps:$4 sm:$0xff]   ;;  %v1347_v25 = vld [vmem:[%s1478_s11 + $0xa4] ss:$8 sps:$4 sm:$0xff]   ;;  %v1350_v27 = vld [vmem:[%s1478_s11 + $0xa0] ss:$8 sps:$4 sm:$0xff]  }
  0x15   : > { %1173 = vmatprep.subr.bf16.mxu0 %v1325_v8  ;;  %1281 = vmatprep.subr.bf16.mxu1 %v1325_v8  ;;  %v1351_v28 = vld [vmem:[%s1478_s11 + $0x34] ss:$8 sps:$4 sm:$0xff]   ;;  %v1355_v30 = vld [vmem:[%s1478_s11 + $0x30] ss:$8 sps:$4 sm:$0xff]   ;;  %v1357_v32 = vld [vmem:[%s1478_s11 + $0x44] ss:$8 sps:$4 sm:$0xff]  }
  0x16   : > { %v1353_v29 = vld [vmem:[%s1478_s11 + $0xb4] ss:$8 sps:$4 sm:$0xff]   ;;  %v1356_v31 = vld [vmem:[%s1478_s11 + $0xb0] ss:$8 sps:$4 sm:$0xff]   ;;  %v1359_v33 = vld [vmem:[%s1478_s11 + $0xc4] ss:$8 sps:$4 sm:$0xff]  }
  0x17   : > { %v1361_v34 = vld [vmem:[%s1478_s11 + $0x40] ss:$8 sps:$4 sm:$0xff]   ;;  %v1363_v36 = vld [vmem:[%s1478_s11 + $0x54] ss:$8 sps:$4 sm:$0xff]   ;;  %v1367_v38 = vld [vmem:[%s1478_s11 + $0x50] ss:$8 sps:$4 sm:$0xff]  }
  0x18   : > { %1174 = vmatpush3.bf16.msra.mxu0 %v1326_v9  ;;  %1289 = vmatpush3.bf16.msra.mxu1 %v1326_v9  ;;  %v1362_v35 = vld [vmem:[%s1478_s11 + $0xc0] ss:$8 sps:$4 sm:$0xff]   ;;  %v1365_v37 = vld [vmem:[%s1478_s11 + $0xd4] ss:$8 sps:$4 sm:$0xff]   ;;  %v1368_v39 = vld [vmem:[%s1478_s11 + $0xd0] ss:$8 sps:$4 sm:$0xff]  }
  0x19   : > { %1175 = vmatprep.subr.bf16.mxu0 %v1327_v10  ;;  %1282 = vmatprep.subr.bf16.mxu1 %v1327_v10  ;;  %v1369_v40 = vld [vmem:[%s1478_s11 + $0x64] ss:$8 sps:$4 sm:$0xff]   ;;  %v1373_v42 = vld [vmem:[%s1478_s11 + $0x60] ss:$8 sps:$4 sm:$0xff]   ;;  %v1375_v44 = vld [vmem:[%s1478_s11 + $0x74] ss:$8 sps:$4 sm:$0xff]  }
  0x1a   : > { %v1371_v41 = vld [vmem:[%s1478_s11 + $0xe4] ss:$8 sps:$4 sm:$0xff]   ;;  %v1374_v43 = vld [vmem:[%s1478_s11 + $0xe0] ss:$8 sps:$4 sm:$0xff]   ;;  %v1377_v45 = vld [vmem:[%s1478_s11 + $0xf4] ss:$8 sps:$4 sm:$0xff]  }
  0x1b   : > { %v1379_v46 = vld [vmem:[%s1478_s11 + $0x70] ss:$8 sps:$4 sm:$0xff]  }
  0x1c   : > { %1176 = vmatpush3.bf16.msra.mxu0 %v1328_v13  ;;  %1290 = vmatpush3.bf16.msra.mxu1 %v1328_v13  ;;  %v1380_v47 = vld [vmem:[%s1478_s11 + $0xf0] ss:$8 sps:$4 sm:$0xff]  }
  0x1d   : > { %1177 = vmatprep.subr.bf16.mxu0 %v1329_v14  ;;  %1283 = vmatprep.subr.bf16.mxu1 %v1329_v14 }
  0x20   : > { %1178 = vmatpush3.bf16.msra.mxu0 %v1330_v15  ;;  %1291 = vmatpush3.bf16.msra.mxu1 %v1330_v15 }
  0x21   : > { %1179 = vmatprep.subr.bf16.mxu0 %v1331_v16  ;;  %1284 = vmatprep.subr.bf16.mxu1 %v1331_v16 }
  0x24   : > { %1180 = vmatpush3.bf16.msra.mxu0 %v1332_v17  ;;  %1292 = vmatpush3.bf16.msra.mxu1 %v1332_v17 }
  0x27   : > { %689 = vmatmul.mubr.bf16.vlgmr.msra.gmra.mrb[0].mxu0 %v1333_v18  ;;  %753 = vmatmul.mubr.bf16.vlgmr.msra.gmra.mrb[0].mxu1 %v1336_v19 }
  0x28   : > { %696 = vmatprep.mubr.bf16.mxu0 %v1339_v20  ;;  %760 = vmatprep.mubr.bf16.mxu1 %v1341_v21 }
  0x2f   : > { %697 = vmatmul.mubr.bf16.gmra.mrb[4].mxu0 %v1343_v22  ;;  %761 = vmatmul.mubr.bf16.gmra.mrb[4].mxu1 %v1344_v23 }
  0x30   : > { %704 = vmatprep.mubr.bf16.mxu0 %v1345_v24  ;;  %768 = vmatprep.mubr.bf16.mxu1 %v1347_v25 }
  0x37   : > { %705 = vmatmul.mubr.bf16.gmra.mrb[8].mxu0 %v1349_v26  ;;  %769 = vmatmul.mubr.bf16.gmra.mrb[8].mxu1 %v1350_v27 }
  0x38   : > { %712 = vmatprep.mubr.bf16.mxu0 %v1351_v28  ;;  %776 = vmatprep.mubr.bf16.mxu1 %v1353_v29 }
  0x3f   : > { %713 = vmatmul.mubr.bf16.gmra.mrb[12].mxu0 %v1355_v30  ;;  %777 = vmatmul.mubr.bf16.gmra.mrb[12].mxu1 %v1356_v31 }
  0x40   : > { %720 = vmatprep.mubr.bf16.mxu0 %v1357_v32  ;;  %784 = vmatprep.mubr.bf16.mxu1 %v1359_v33 }
  0x47   : > { %721 = vmatmul.mubr.bf16.gmra.mrb[16].mxu0 %v1361_v34  ;;  %785 = vmatmul.mubr.bf16.gmra.mrb[16].mxu1 %v1362_v35 }
  0x48   : > { %728 = vmatprep.mubr.bf16.mxu0 %v1363_v36  ;;  %792 = vmatprep.mubr.bf16.mxu1 %v1365_v37 }
  0x4f   : > { %729 = vmatmul.mubr.bf16.gmra.mrb[20].mxu0 %v1367_v38  ;;  %793 = vmatmul.mubr.bf16.gmra.mrb[20].mxu1 %v1368_v39 }
  0x50   : > { %736 = vmatprep.mubr.bf16.mxu0 %v1369_v40  ;;  %800 = vmatprep.mubr.bf16.mxu1 %v1371_v41 }
  0x57   : > { %737 = vmatmul.mubr.bf16.gmra.mrb[24].mxu0 %v1373_v42  ;;  %801 = vmatmul.mubr.bf16.gmra.mrb[24].mxu1 %v1374_v43 }
  0x58   : > { %744 = vmatprep.mubr.bf16.mxu0 %v1375_v44  ;;  %808 = vmatprep.mubr.bf16.mxu1 %v1377_v45 }
  0x5f   : > { %745 = vmatmul.mubr.bf16.gmra.mrb[28].mxu0 %v1379_v46  ;;  %809 = vmatmul.mubr.bf16.gmra.mrb[28].mxu1 %v1380_v47 }
  0xfa   : > { %v1181_v48 = vpop.f32.mrb[0].mxu0  ;;  %v1229_v49 = vpop.f32.mrb[0].mxu1 }
  0xfb   : > { %v1182_v50 = vpop.f32.mrb[1].mxu0  ;;  %v1230_v52 = vpop.f32.mrb[1].mxu1 }
  0xfc   : > { %v1183_v53 = vadd.f32 %v1182_v50, %v1181_v48  ;;  %v1231_v54 = vadd.f32 %v1230_v52, %v1229_v49  ;;  %v1184_v55 = vpop.f32.mrb[2].mxu0  ;;  %v1232_v56 = vpop.f32.mrb[2].mxu1 }
  0xfd   : > { %v1185_v57 = vpop.f32.mrb[3].mxu0  ;;  %v1233_v58 = vpop.f32.mrb[3].mxu1 }
  0xfe   : > { %v923_v59 = vadd.f32 %v1183_v53, %v1536_v51  ;;  %v939_v60 = vadd.f32 %v1231_v54, %v1536_v51  ;;  %v1186_v61 = vadd.f32 %v1185_v57, %v1184_v55  ;;  %v1234_v62 = vadd.f32 %v1233_v58, %v1232_v56 }
 0x100   : > { %955 = vst [vmem:[%s1543_s8] sm:$0xff] %v923_v59  ;;  %971 = vst [vmem:[%s1543_s8 + $0x80] sm:$0xff] %v939_v60  ;;  %v924_v63 = vadd.f32 %v1186_v61, %v1536_v51  ;;  %v940_v0 = vadd.f32 %v1234_v62, %v1536_v51 }
 0x102   : > { %956 = vst [vmem:[%s1543_s8 + $0x8] sm:$0xff] %v924_v63  ;;  %972 = vst [vmem:[%s1543_s8 + $0x88] sm:$0xff] %v940_v0  ;;  %v1187_v1 = vpop.f32.mrb[4].mxu0  ;;  %v1235_v2 = vpop.f32.mrb[4].mxu1 }
 0x103   : > { %v1188_v3 = vpop.f32.mrb[5].mxu0  ;;  %v1236_v4 = vpop.f32.mrb[5].mxu1 }
 0x104   : > { %v1189_v5 = vadd.f32 %v1188_v3, %v1187_v1  ;;  %v1237_v6 = vadd.f32 %v1236_v4, %v1235_v2  ;;  %v1190_v7 = vpop.f32.mrb[6].mxu0  ;;  %v1238_v8 = vpop.f32.mrb[6].mxu1 }
 0x105   : > { %v1191_v9 = vpop.f32.mrb[7].mxu0  ;;  %v1239_v10 = vpop.f32.mrb[7].mxu1 }
 0x106   : > { %v925_v11 = vadd.f32 %v1189_v5, %v1536_v51  ;;  %v941_v12 = vadd.f32 %v1237_v6, %v1536_v51  ;;  %v1192_v13 = vadd.f32 %v1191_v9, %v1190_v7  ;;  %v1240_v14 = vadd.f32 %v1239_v10, %v1238_v8 }
 0x108   : > { %957 = vst [vmem:[%s1543_s8 + $0x10] sm:$0xff] %v925_v11  ;;  %973 = vst [vmem:[%s1543_s8 + $0x90] sm:$0xff] %v941_v12  ;;  %v926_v15 = vadd.f32 %v1192_v13, %v1536_v51  ;;  %v942_v16 = vadd.f32 %v1240_v14, %v1536_v51 }
 0x10a   : > { %958 = vst [vmem:[%s1543_s8 + $0x18] sm:$0xff] %v926_v15  ;;  %974 = vst [vmem:[%s1543_s8 + $0x98] sm:$0xff] %v942_v16  ;;  %v1193_v17 = vpop.f32.mrb[8].mxu0  ;;  %v1241_v18 = vpop.f32.mrb[8].mxu1 }
 0x10b   : > { %v1194_v19 = vpop.f32.mrb[9].mxu0  ;;  %v1242_v20 = vpop.f32.mrb[9].mxu1 }
 0x10c   : > { %v1195_v21 = vadd.f32 %v1194_v19, %v1193_v17  ;;  %v1243_v22 = vadd.f32 %v1242_v20, %v1241_v18  ;;  %v1196_v23 = vpop.f32.mrb[10].mxu0  ;;  %v1244_v24 = vpop.f32.mrb[10].mxu1 }
 0x10d   : > { %v1197_v25 = vpop.f32.mrb[11].mxu0  ;;  %v1245_v26 = vpop.f32.mrb[11].mxu1 }
 0x10e   : > { %v927_v27 = vadd.f32 %v1195_v21, %v1536_v51  ;;  %v943_v28 = vadd.f32 %v1243_v22, %v1536_v51  ;;  %v1198_v29 = vadd.f32 %v1197_v25, %v1196_v23  ;;  %v1246_v30 = vadd.f32 %v1245_v26, %v1244_v24 }
 0x110   : > { %959 = vst [vmem:[%s1543_s8 + $0x20] sm:$0xff] %v927_v27  ;;  %975 = vst [vmem:[%s1543_s8 + $0xa0] sm:$0xff] %v943_v28  ;;  %v928_v31 = vadd.f32 %v1198_v29, %v1536_v51  ;;  %v944_v32 = vadd.f32 %v1246_v30, %v1536_v51 }
 0x112   : > { %960 = vst [vmem:[%s1543_s8 + $0x28] sm:$0xff] %v928_v31  ;;  %976 = vst [vmem:[%s1543_s8 + $0xa8] sm:$0xff] %v944_v32  ;;  %v1199_v33 = vpop.f32.mrb[12].mxu0  ;;  %v1247_v34 = vpop.f32.mrb[12].mxu1 }
 0x113   : > { %v1200_v35 = vpop.f32.mrb[13].mxu0  ;;  %v1248_v36 = vpop.f32.mrb[13].mxu1 }
 0x114   : > { %v1201_v37 = vadd.f32 %v1200_v35, %v1199_v33  ;;  %v1249_v38 = vadd.f32 %v1248_v36, %v1247_v34  ;;  %v1202_v39 = vpop.f32.mrb[14].mxu0  ;;  %v1250_v40 = vpop.f32.mrb[14].mxu1 }
 0x115   : > { %v1203_v41 = vpop.f32.mrb[15].mxu0  ;;  %v1251_v42 = vpop.f32.mrb[15].mxu1 }
 0x116   : > { %v929_v43 = vadd.f32 %v1201_v37, %v1536_v51  ;;  %v945_v44 = vadd.f32 %v1249_v38, %v1536_v51  ;;  %v1204_v45 = vadd.f32 %v1203_v41, %v1202_v39  ;;  %v1252_v46 = vadd.f32 %v1251_v42, %v1250_v40 }
 0x118   : > { %961 = vst [vmem:[%s1543_s8 + $0x30] sm:$0xff] %v929_v43  ;;  %977 = vst [vmem:[%s1543_s8 + $0xb0] sm:$0xff] %v945_v44  ;;  %v930_v47 = vadd.f32 %v1204_v45, %v1536_v51  ;;  %v946_v48 = vadd.f32 %v1252_v46, %v1536_v51 }
 0x11a   : > { %962 = vst [vmem:[%s1543_s8 + $0x38] sm:$0xff] %v930_v47  ;;  %978 = vst [vmem:[%s1543_s8 + $0xb8] sm:$0xff] %v946_v48  ;;  %v1205_v49 = vpop.f32.mrb[16].mxu0  ;;  %v1253_v50 = vpop.f32.mrb[16].mxu1 }
 0x11b   : > { %v1206_v52 = vpop.f32.mrb[17].mxu0  ;;  %v1254_v53 = vpop.f32.mrb[17].mxu1 }
 0x11c   : > { %v1207_v54 = vadd.f32 %v1206_v52, %v1205_v49  ;;  %v1255_v55 = vadd.f32 %v1254_v53, %v1253_v50  ;;  %v1208_v56 = vpop.f32.mrb[18].mxu0  ;;  %v1256_v57 = vpop.f32.mrb[18].mxu1 }
 0x11d   : > { %v1209_v58 = vpop.f32.mrb[19].mxu0  ;;  %v1257_v59 = vpop.f32.mrb[19].mxu1 }
 0x11e   : > { %v931_v60 = vadd.f32 %v1207_v54, %v1536_v51  ;;  %v947_v61 = vadd.f32 %v1255_v55, %v1536_v51  ;;  %v1210_v62 = vadd.f32 %v1209_v58, %v1208_v56  ;;  %v1258_v63 = vadd.f32 %v1257_v59, %v1256_v57 }
 0x120   : > { %963 = vst [vmem:[%s1543_s8 + $0x40] sm:$0xff] %v931_v60  ;;  %979 = vst [vmem:[%s1543_s8 + $0xc0] sm:$0xff] %v947_v61  ;;  %v932_v0 = vadd.f32 %v1210_v62, %v1536_v51  ;;  %v948_v1 = vadd.f32 %v1258_v63, %v1536_v51 }
 0x122   : > { %964 = vst [vmem:[%s1543_s8 + $0x48] sm:$0xff] %v932_v0  ;;  %980 = vst [vmem:[%s1543_s8 + $0xc8] sm:$0xff] %v948_v1  ;;  %v1211_v2 = vpop.f32.mrb[20].mxu0  ;;  %v1259_v3 = vpop.f32.mrb[20].mxu1 }
 0x123   : > { %v1212_v4 = vpop.f32.mrb[21].mxu0  ;;  %v1260_v5 = vpop.f32.mrb[21].mxu1 }
 0x124   : > { %v1213_v6 = vadd.f32 %v1212_v4, %v1211_v2  ;;  %v1261_v7 = vadd.f32 %v1260_v5, %v1259_v3  ;;  %v1214_v8 = vpop.f32.mrb[22].mxu0  ;;  %v1262_v9 = vpop.f32.mrb[22].mxu1 }
 0x125   : > { %v1215_v10 = vpop.f32.mrb[23].mxu0  ;;  %v1263_v11 = vpop.f32.mrb[23].mxu1 }
 0x126   : > { %v933_v12 = vadd.f32 %v1213_v6, %v1536_v51  ;;  %v949_v13 = vadd.f32 %v1261_v7, %v1536_v51  ;;  %v1216_v14 = vadd.f32 %v1215_v10, %v1214_v8  ;;  %v1264_v15 = vadd.f32 %v1263_v11, %v1262_v9 }
 0x128   : > { %965 = vst [vmem:[%s1543_s8 + $0x50] sm:$0xff] %v933_v12  ;;  %981 = vst [vmem:[%s1543_s8 + $0xd0] sm:$0xff] %v949_v13  ;;  %v934_v16 = vadd.f32 %v1216_v14, %v1536_v51  ;;  %v950_v17 = vadd.f32 %v1264_v15, %v1536_v51 }
 0x12a   : > { %966 = vst [vmem:[%s1543_s8 + $0x58] sm:$0xff] %v934_v16  ;;  %982 = vst [vmem:[%s1543_s8 + $0xd8] sm:$0xff] %v950_v17  ;;  %v1217_v18 = vpop.f32.mrb[24].mxu0  ;;  %v1265_v19 = vpop.f32.mrb[24].mxu1 }
 0x12b   : > { %v1218_v20 = vpop.f32.mrb[25].mxu0  ;;  %v1266_v21 = vpop.f32.mrb[25].mxu1 }
 0x12c   : > { %v1219_v22 = vadd.f32 %v1218_v20, %v1217_v18  ;;  %v1267_v23 = vadd.f32 %v1266_v21, %v1265_v19  ;;  %v1220_v24 = vpop.f32.mrb[26].mxu0  ;;  %v1268_v25 = vpop.f32.mrb[26].mxu1 }
 0x12d   : > { %v1221_v26 = vpop.f32.mrb[27].mxu0  ;;  %v1269_v27 = vpop.f32.mrb[27].mxu1 }
 0x12e   : > { %v935_v28 = vadd.f32 %v1219_v22, %v1536_v51  ;;  %v951_v29 = vadd.f32 %v1267_v23, %v1536_v51  ;;  %v1222_v30 = vadd.f32 %v1221_v26, %v1220_v24  ;;  %v1270_v31 = vadd.f32 %v1269_v27, %v1268_v25 }
 0x130   : > { %967 = vst [vmem:[%s1543_s8 + $0x60] sm:$0xff] %v935_v28  ;;  %983 = vst [vmem:[%s1543_s8 + $0xe0] sm:$0xff] %v951_v29  ;;  %v936_v32 = vadd.f32 %v1222_v30, %v1536_v51  ;;  %v952_v33 = vadd.f32 %v1270_v31, %v1536_v51 }
 0x132   : > { %968 = vst [vmem:[%s1543_s8 + $0x68] sm:$0xff] %v936_v32  ;;  %984 = vst [vmem:[%s1543_s8 + $0xe8] sm:$0xff] %v952_v33  ;;  %v1223_v34 = vpop.f32.mrb[28].mxu0  ;;  %v1271_v35 = vpop.f32.mrb[28].mxu1 }
 0x133   : > { %v1224_v36 = vpop.f32.mrb[29].mxu0  ;;  %v1272_v37 = vpop.f32.mrb[29].mxu1 }
 0x134   : > { %v1225_v38 = vadd.f32 %v1224_v36, %v1223_v34  ;;  %v1273_v39 = vadd.f32 %v1272_v37, %v1271_v35  ;;  %v1226_v40 = vpop.f32.mrb[30].mxu0  ;;  %v1274_v41 = vpop.f32.mrb[30].mxu1 }
 0x135   : > { %v1227_v42 = vpop.f32.mrb[31].mxu0  ;;  %v1275_v43 = vpop.f32.mrb[31].mxu1 }
 0x136   : > { %v937_v44 = vadd.f32 %v1225_v38, %v1536_v51  ;;  %v953_v45 = vadd.f32 %v1273_v39, %v1536_v51  ;;  %v1228_v46 = vadd.f32 %v1227_v42, %v1226_v40  ;;  %v1276_v47 = vadd.f32 %v1275_v43, %v1274_v41 }
 0x138   : > { %969 = vst [vmem:[%s1543_s8 + $0x70] sm:$0xff] %v937_v44  ;;  %985 = vst [vmem:[%s1543_s8 + $0xf0] sm:$0xff] %v953_v45  ;;  %v938_v48 = vadd.f32 %v1228_v46, %v1536_v51  ;;  %v954_v49 = vadd.f32 %v1276_v47, %v1536_v51 }
 0x13a   : > { %970 = vst [vmem:[%s1543_s8 + $0x78] sm:$0xff] %v938_v48  ;;  %986 = vst [vmem:[%s1543_s8 + $0xf8] sm:$0xff] %v954_v49 }
 0x13b PF: > { %s13_s14 = sadd.s32 1, %s1403_s14   ;;  %s1622_s12 = smov %s1399_s13 }
 0x13c   : > { %p10_p5 = scmp.ge.s32.totalorder %s13_s14, 4   ;;  %s1623_s13 = smov %s1625_s15 }
 0x13e   :  { %12 = sbr.rel (!%p10_p5) target bundleno = 2 (0x2), region = 76 }

// kernel: resnet_generator_forward.37
= control target key start
LH: loop header
LB: loop body
LE: loop exit
PB: predicated region body
PF: predicated region fallthrough
CT: control target
= control target key end

     0   :  { %s586_s1 = inlined_call_operand.vmem [shape: bf16[128,128], index: 1, kind: input, shape index: {}]   ;;  %s587_s0 = inlined_call_operand.vmem [shape: bf16[128,128], index: 0, kind: input, shape index: {}]   ;;  %s588_s2 = inlined_call_operand.vmem [shape: f32[1,128], index: 2, kind: input, shape index: {}]   ;;  %s589_s3 = inlined_call_operand.vmem [shape: f32[128,128], index: 3, kind: output, shape index: {}]  }
   0x1   :  { %v451_v0 = vld [vmem:[%s586_s1] sm:$0xff]   ;;  %v452_v1 = vld [vmem:[%s586_s1 + $0x8] sm:$0xff]   ;;  %v453_v2 = vld [vmem:[%s586_s1 + $0x10] sm:$0xff]  }
   0x2   :  { %403 = vmatprep.subr.bf16.mxu0 %v451_v0  ;;  %435 = vmatprep.subr.bf16.mxu1 %v451_v0  ;;  %v454_v3 = vld [vmem:[%s586_s1 + $0x18] sm:$0xff]   ;;  %v459_v4 = vld [vmem:[%s587_s0] sm:$0xff]   ;;  %v456_v7 = vld [vmem:[%s586_s1 + $0x28] sm:$0xff]  }
   0x3   :  { %404 = vmatpush3.bf16.msra.mxu0 %v451_v0  ;;  %443 = vmatpush3.bf16.msra.mxu1 %v451_v0  ;;  %v460_v5 = vld [vmem:[%s587_s0 + $0x20] sm:$0xff]   ;;  %v457_v8 = vld [vmem:[%s586_s1 + $0x30] sm:$0xff]   ;;  %v458_v9 = vld [vmem:[%s586_s1 + $0x38] sm:$0xff]  }
   0x4   :  { %405 = vmatprep.subr.bf16.mxu0 %v452_v1  ;;  %436 = vmatprep.subr.bf16.mxu1 %v452_v1  ;;  %v455_v6 = vld [vmem:[%s586_s1 + $0x20] sm:$0xff]   ;;  %v461_v10 = vld [vmem:[%s587_s0 + $0x8] sm:$0xff]   ;;  %v463_v12 = vld [vmem:[%s587_s0 + $0x10] sm:$0xff]  }
   0x5   :  { %419 = vmatprep.mubr.bf16.mxu0 %v459_v4  ;;  %427 = vmatprep.mubr.bf16.mxu1 %v460_v5  ;;  %v462_v11 = vld [vmem:[%s587_s0 + $0x28] sm:$0xff]   ;;  %v464_v13 = vld [vmem:[%s587_s0 + $0x30] sm:$0xff]   ;;  %v465_v14 = vld [vmem:[%s587_s0 + $0x18] sm:$0xff]  }
   0x6   :  { %v466_v15 = vld [vmem:[%s587_s0 + $0x38] sm:$0xff]   ;;  %v386_v16 = vld [vmem:[%s588_s2] ss:$0 sm:$0xff] }
   0x7   :  { %406 = vmatpush3.bf16.msra.mxu0 %v452_v1  ;;  %444 = vmatpush3.bf16.msra.mxu1 %v452_v1 }
   0x8   :  { %407 = vmatprep.subr.bf16.mxu0 %v453_v2  ;;  %437 = vmatprep.subr.bf16.mxu1 %v453_v2 }
   0xb   :  { %408 = vmatpush3.bf16.msra.mxu0 %v453_v2  ;;  %445 = vmatpush3.bf16.msra.mxu1 %v453_v2 }
   0xc   :  { %409 = vmatprep.subr.bf16.mxu0 %v454_v3  ;;  %438 = vmatprep.subr.bf16.mxu1 %v454_v3 }
   0xf   :  { %410 = vmatpush3.bf16.msra.mxu0 %v454_v3  ;;  %446 = vmatpush3.bf16.msra.mxu1 %v454_v3 }
  0x10   :  { %411 = vmatprep.subr.bf16.mxu0 %v455_v6  ;;  %439 = vmatprep.subr.bf16.mxu1 %v455_v6 }
  0x13   :  { %412 = vmatpush3.bf16.msra.mxu0 %v455_v6  ;;  %447 = vmatpush3.bf16.msra.mxu1 %v455_v6 }
  0x14   :  { %413 = vmatprep.subr.bf16.mxu0 %v456_v7  ;;  %440 = vmatprep.subr.bf16.mxu1 %v456_v7 }
  0x17   :  { %414 = vmatpush3.bf16.msra.mxu0 %v456_v7  ;;  %448 = vmatpush3.bf16.msra.mxu1 %v456_v7 }
  0x18   :  { %415 = vmatprep.subr.bf16.mxu0 %v457_v8  ;;  %441 = vmatprep.subr.bf16.mxu1 %v457_v8 }
  0x1b   :  { %416 = vmatpush3.bf16.msra.mxu0 %v457_v8  ;;  %449 = vmatpush3.bf16.msra.mxu1 %v457_v8 }
  0x1c   :  { %417 = vmatprep.subr.bf16.mxu0 %v458_v9  ;;  %442 = vmatprep.subr.bf16.mxu1 %v458_v9 }
  0x1f   :  { %418 = vmatpush3.bf16.msra.mxu0 %v458_v9  ;;  %450 = vmatpush3.bf16.msra.mxu1 %v458_v9 }
  0x22   :  { %420 = vmatmul.mubr.bf16.vlgmr.msra.gmra.mrb[0].mxu0 %v461_v10  ;;  %428 = vmatmul.mubr.bf16.vlgmr.msra.gmra.mrb[0].mxu1 %v462_v11 }
  0x23   :  { %423 = vmatprep.mubr.bf16.mxu0 %v463_v12  ;;  %431 = vmatprep.mubr.bf16.mxu1 %v464_v13 }
  0x2a   :  { %424 = vmatmul.mubr.bf16.gmra.mrb[4].mxu0 %v465_v14  ;;  %432 = vmatmul.mubr.bf16.gmra.mrb[4].mxu1 %v466_v15 }
  0xf5   :  { %v421_v17 = vpop.f32.mrb[0].mxu0  ;;  %v429_v18 = vpop.f32.mrb[0].mxu1 }
  0xf6   :  { %v336_v19 = vadd.f32 %v421_v17, %v386_v16  ;;  %v344_v20 = vadd.f32 %v429_v18, %v386_v16  ;;  %v213_v21 = vpop.f32.mrb[1].mxu0  ;;  %v245_v22 = vpop.f32.mrb[1].mxu1 }
  0xf7   :  { %v334_v23 = vadd.f32 %v386_v16, %v213_v21  ;;  %v342_v24 = vadd.f32 %v386_v16, %v245_v22  ;;  %v422_v25 = vpop.f32.mrb[2].mxu0  ;;  %v430_v26 = vpop.f32.mrb[2].mxu1 }
  0xf8   :  { %352 = vst [vmem:[%s589_s3 + $0x10] sm:$0xff] %v336_v19  ;;  %360 = vst [vmem:[%s589_s3 + $0x50] sm:$0xff] %v344_v20  ;;  %v337_v27 = vadd.f32 %v422_v25, %v386_v16  ;;  %v345_v28 = vadd.f32 %v430_v26, %v386_v16  ;;  %v216_v29 = vpop.f32.mrb[3].mxu0  ;;  %v248_v30 = vpop.f32.mrb[3].mxu1 }
  0xf9   :  { %350 = vst [vmem:[%s589_s3] sm:$0xff] %v334_v23  ;;  %358 = vst [vmem:[%s589_s3 + $0x40] sm:$0xff] %v342_v24  ;;  %v335_v31 = vadd.f32 %v386_v16, %v216_v29  ;;  %v343_v32 = vadd.f32 %v386_v16, %v248_v30 }
  0xfa   :  { %353 = vst [vmem:[%s589_s3 + $0x18] sm:$0xff] %v337_v27  ;;  %361 = vst [vmem:[%s589_s3 + $0x58] sm:$0xff] %v345_v28 }
  0xfb   :  { %351 = vst [vmem:[%s589_s3 + $0x8] sm:$0xff] %v335_v31  ;;  %359 = vst [vmem:[%s589_s3 + $0x48] sm:$0xff] %v343_v32 }
  0xfd   :  { %v425_v33 = vpop.f32.mrb[4].mxu0  ;;  %v433_v34 = vpop.f32.mrb[4].mxu1 }
  0xfe   :  { %v340_v35 = vadd.f32 %v425_v33, %v386_v16  ;;  %v348_v36 = vadd.f32 %v433_v34, %v386_v16  ;;  %v229_v37 = vpop.f32.mrb[5].mxu0  ;;  %v261_v38 = vpop.f32.mrb[5].mxu1 }
  0xff   :  { %v338_v39 = vadd.f32 %v386_v16, %v229_v37  ;;  %v346_v40 = vadd.f32 %v386_v16, %v261_v38  ;;  %v426_v41 = vpop.f32.mrb[6].mxu0  ;;  %v434_v42 = vpop.f32.mrb[6].mxu1 }
 0x100   :  { %356 = vst [vmem:[%s589_s3 + $0x30] sm:$0xff] %v340_v35  ;;  %364 = vst [vmem:[%s589_s3 + $0x70] sm:$0xff] %v348_v36  ;;  %v341_v43 = vadd.f32 %v426_v41, %v386_v16  ;;  %v349_v44 = vadd.f32 %v434_v42, %v386_v16  ;;  %v232_v45 = vpop.f32.mrb[7].mxu0  ;;  %v264_v46 = vpop.f32.mrb[7].mxu1 }
 0x101   :  { %354 = vst [vmem:[%s589_s3 + $0x20] sm:$0xff] %v338_v39  ;;  %362 = vst [vmem:[%s589_s3 + $0x60] sm:$0xff] %v346_v40  ;;  %v339_v47 = vadd.f32 %v386_v16, %v232_v45  ;;  %v347_v48 = vadd.f32 %v386_v16, %v264_v46 }
 0x102   :  { %357 = vst [vmem:[%s589_s3 + $0x38] sm:$0xff] %v341_v43  ;;  %365 = vst [vmem:[%s589_s3 + $0x78] sm:$0xff] %v349_v44 }
 0x103   :  { %355 = vst [vmem:[%s589_s3 + $0x28] sm:$0xff] %v339_v47  ;;  %363 = vst [vmem:[%s589_s3 + $0x68] sm:$0xff] %v347_v48 }

// kernel: resnet_generator_forward.39
= control target key start
LH: loop header
LB: loop body
LE: loop exit
PB: predicated region body
PF: predicated region fallthrough
CT: control target
= control target key end

     0   :  { %v42_v6 = vlaneseq  ;;  %s297_s1 = inlined_call_operand.vmem [shape: f32[8,128], index: 1, kind: input, shape index: {}]   ;;  %s298_s0 = inlined_call_operand.vmem [shape: f32[128,128], index: 0, kind: input, shape index: {}]   ;;  %s299_s2 = inlined_call_operand.vmem [shape: f32[1,128], index: 2, kind: input, shape index: {}]   ;;  %s300_s3 = inlined_call_operand.vmem [shape: f32[1,128], index: 3, kind: input, shape index: {}]   ;;  %s301_s4 = inlined_call_operand.vmem [shape: f32[128,128], index: 4, kind: output, shape index: {}]  }
   0x1   :  { %v17_v0 = vld [vmem:[%s297_s1] sm:$0x1]  ;;  %v19_v1 = vld [vmem:[%s297_s1 + $0x1] sm:$0x1]  ;;  %v27_v14 = vld [vmem:[%s298_s0 + $0x8] sm:$0xff] }
   0x2   :  { %v18_v2 = vmul.f32 0.0078125, %v17_v0  ;;  %v20_v3 = vmul.f32 0.0078125, %v19_v1  ;;  %v43_v9 = vshrl.u32 %v42_v6, 7  ;;  %v26_v11 = vld [vmem:[%s298_s0] sm:$0xff]  ;;  %v28_v15 = vld [vmem:[%s298_s0 + $0x10] sm:$0xff]  ;;  %v29_v16 = vld [vmem:[%s298_s0 + $0x18] sm:$0xff] }
   0x3   :  { %v62_v13 = vld [vmem:[%s299_s2] sm:$0x1]  ;;  %v31_v18 = vld [vmem:[%s298_s0 + $0x28] sm:$0xff]  ;;  %v32_v19 = vld [vmem:[%s298_s0 + $0x30] sm:$0xff] }
   0x4   :  { %v21_v4 = vmul.f32 %v18_v2, %v18_v2  ;;  %v44_v10 = vsub.s32 0, %v43_v9  ;;  %v30_v17 = vld [vmem:[%s298_s0 + $0x20] sm:$0xff]  ;;  %v33_v20 = vld [vmem:[%s298_s0 + $0x38] sm:$0xff]  ;;  %v35_v22 = vld [vmem:[%s298_s0 + $0x48] sm:$0xff] }
   0x5   :  { %v34_v21 = vld [vmem:[%s298_s0 + $0x40] sm:$0xff]  ;;  %v36_v26 = vld [vmem:[%s298_s0 + $0x50] sm:$0xff]  ;;  %v37_v27 = vld [vmem:[%s298_s0 + $0x58] sm:$0xff] }
   0x6   :  { %v22_v5 = vsub.f32 %v20_v3, %v21_v4  ;;  %v180_v12 = vrot.slane %v18_v2, %v44_v10  ;;  %v38_v28 = vld [vmem:[%s298_s0 + $0x60] sm:$0xff]  ;;  %v39_v33 = vld [vmem:[%s298_s0 + $0x68] sm:$0xff]  ;;  %v40_v34 = vld [vmem:[%s298_s0 + $0x70] sm:$0xff] }
   0x7   :  { %v41_v35 = vld [vmem:[%s298_s0 + $0x78] sm:$0xff]  ;;  %v143_v44 = vld [vmem:[%s300_s3] ss:$0 sm:$0xff] }
   0x8   :  { %v23_v7 = vmax.f32 %v22_v5, 0.0  ;;  %v46_v24 = vsub.f32 %v26_v11, %v180_v12  ;;  %v47_v25 = vsub.f32 %v27_v14, %v180_v12  ;;  %v48_v30 = vsub.f32 %v28_v15, %v180_v12 }
   0x9   :  { %v49_v31 = vsub.f32 %v29_v16, %v180_v12  ;;  %v50_v32 = vsub.f32 %v30_v17, %v180_v12  ;;  %v51_v36 = vsub.f32 %v31_v18, %v180_v12  ;;  %v52_v37 = vsub.f32 %v32_v19, %v180_v12 }
   0xa   :  { %v24_v8 = vadd.f32 1e-05, %v23_v7  ;;  %v53_v38 = vsub.f32 %v33_v20, %v180_v12  ;;  %v54_v39 = vsub.f32 %v34_v21, %v180_v12  ;;  %v55_v41 = vsub.f32 %v35_v22, %v180_v12 }
   0xb   :  { %v56_v42 = vsub.f32 %v36_v26, %v180_v12  ;;  %v57_v43 = vsub.f32 %v37_v27, %v180_v12  ;;  %v58_v45 = vsub.f32 %v38_v28, %v180_v12  ;;  %v59_v46 = vsub.f32 %v39_v33, %v180_v12 }
   0xc   :  { %144 = vrsqrt.f32 %v24_v8  ;;  %v60_v47 = vsub.f32 %v40_v34, %v180_v12  ;;  %v61_v48 = vsub.f32 %v41_v35, %v180_v12 }
  0x16   :  { %v145_v23 = vpop.eup %144 }
  0x17   :  { %v63_v29 = vmul.f32 %v145_v23, %v62_v13 }
  0x19   :  { %v67_v40 = vrot.slane %v63_v29, %v44_v10 }
  0x1b   :  { %v68_v49 = vmul.f32 %v67_v40, %v46_v24  ;;  %v69_v50 = vmul.f32 %v67_v40, %v47_v25  ;;  %v70_v51 = vmul.f32 %v67_v40, %v48_v30  ;;  %v71_v52 = vmul.f32 %v67_v40, %v49_v31 }
  0x1c   :  { %v72_v53 = vmul.f32 %v67_v40, %v50_v32  ;;  %v73_v54 = vmul.f32 %v67_v40, %v51_v36  ;;  %v74_v55 = vmul.f32 %v67_v40, %v52_v37  ;;  %v75_v56 = vmul.f32 %v67_v40, %v53_v38 }
  0x1d   :  { %v91_v57 = vadd.f32 %v143_v44, %v68_v49  ;;  %v92_v58 = vadd.f32 %v143_v44, %v69_v50  ;;  %v93_v59 = vadd.f32 %v143_v44, %v70_v51  ;;  %v94_v60 = vadd.f32 %v143_v44, %v71_v52 }
  0x1e   :  { %v95_v61 = vadd.f32 %v143_v44, %v72_v53  ;;  %v96_v62 = vadd.f32 %v143_v44, %v73_v54  ;;  %v97_v63 = vadd.f32 %v143_v44, %v74_v55  ;;  %v98_v0 = vadd.f32 %v143_v44, %v75_v56 }
  0x1f   :  { %v107_v1 = vmax.f32 %v91_v57, 0.0  ;;  %v108_v2 = vmax.f32 %v92_v58, 0.0  ;;  %v109_v3 = vmax.f32 %v93_v59, 0.0  ;;  %v110_v4 = vmax.f32 %v94_v60, 0.0 }
  0x20   :  { %v111_v5 = vmax.f32 %v95_v61, 0.0  ;;  %v112_v6 = vmax.f32 %v96_v62, 0.0  ;;  %v113_v7 = vmax.f32 %v97_v63, 0.0  ;;  %v114_v8 = vmax.f32 %v98_v0, 0.0 }
  0x21   :  { %123 = vst [vmem:[%s301_s4] sm:$0xff] %v107_v1  ;;  %124 = vst [vmem:[%s301_s4 + $0x8] sm:$0xff] %v108_v2  ;;  %v76_v9 = vmul.f32 %v67_v40, %v54_v39  ;;  %v77_v10 = vmul.f32 %v67_v40, %v55_v41  ;;  %v78_v11 = vmul.f32 %v67_v40, %v56_v42 }
  0x22   :  { %125 = vst [vmem:[%s301_s4 + $0x10] sm:$0xff] %v109_v3  ;;  %126 = vst [vmem:[%s301_s4 + $0x18] sm:$0xff] %v110_v4  ;;  %v79_v12 = vmul.f32 %v67_v40, %v57_v43  ;;  %v80_v13 = vmul.f32 %v67_v40, %v58_v45  ;;  %v81_v14 = vmul.f32 %v67_v40, %v59_v46 }
  0x23   :  { %127 = vst [vmem:[%s301_s4 + $0x20] sm:$0xff] %v111_v5  ;;  %128 = vst [vmem:[%s301_s4 + $0x28] sm:$0xff] %v112_v6  ;;  %v82_v15 = vmul.f32 %v67_v40, %v60_v47  ;;  %v83_v16 = vmul.f32 %v67_v40, %v61_v48  ;;  %v99_v17 = vadd.f32 %v143_v44, %v76_v9 }
  0x24   :  { %129 = vst [vmem:[%s301_s4 + $0x30] sm:$0xff] %v113_v7  ;;  %130 = vst [vmem:[%s301_s4 + $0x38] sm:$0xff] %v114_v8  ;;  %v100_v18 = vadd.f32 %v143_v44, %v77_v10  ;;  %v101_v19 = vadd.f32 %v143_v44, %v78_v11  ;;  %v102_v20 = vadd.f32 %v143_v44, %v79_v12 }
  0x25   :  { %v103_v21 = vadd.f32 %v143_v44, %v80_v13  ;;  %v104_v22 = vadd.f32 %v143_v44, %v81_v14  ;;  %v105_v23 = vadd.f32 %v143_v44, %v82_v15  ;;  %v106_v24 = vadd.f32 %v143_v44, %v83_v16 }
  0x26   :  { %v115_v25 = vmax.f32 %v99_v17, 0.0  ;;  %v116_v26 = vmax.f32 %v100_v18, 0.0  ;;  %v117_v27 = vmax.f32 %v101_v19, 0.0  ;;  %v118_v28 = vmax.f32 %v102_v20, 0.0 }
  0x27   :  { %v119_v29 = vmax.f32 %v103_v21, 0.0  ;;  %v120_v30 = vmax.f32 %v104_v22, 0.0  ;;  %v121_v31 = vmax.f32 %v105_v23, 0.0  ;;  %v122_v32 = vmax.f32 %v106_v24, 0.0 }
  0x28   :  { %131 = vst [vmem:[%s301_s4 + $0x40] sm:$0xff] %v115_v25  ;;  %132 = vst [vmem:[%s301_s4 + $0x48] sm:$0xff] %v116_v26 }
  0x29   :  { %133 = vst [vmem:[%s301_s4 + $0x50] sm:$0xff] %v117_v27  ;;  %134 = vst [vmem:[%s301_s4 + $0x58] sm:$0xff] %v118_v28 }
  0x2a   :  { %135 = vst [vmem:[%s301_s4 + $0x60] sm:$0xff] %v119_v29  ;;  %136 = vst [vmem:[%s301_s4 + $0x68] sm:$0xff] %v120_v30 }
  0x2b   :  { %137 = vst [vmem:[%s301_s4 + $0x70] sm:$0xff] %v121_v31  ;;  %138 = vst [vmem:[%s301_s4 + $0x78] sm:$0xff] %v122_v32 }

// kernel: resnet_generator_forward.38
= control target key start
LH: loop header
LB: loop body
LE: loop exit
PB: predicated region body
PF: predicated region fallthrough
CT: control target
= control target key end

     0   :  { %v98_v0 = vmov 0.0   ;;  %s172_s1 = inlined_call_operand.vmem [shape: f32[8,128], index: 1, kind: output, shape index: {}]   ;;  %s173_s0 = inlined_call_operand.vmem [shape: f32[128,128], index: 0, kind: input, shape index: {}]  }
   0x1   :  { %12 = vst [vmem:[%s172_s1] sm:$0xff] %v98_v0  ;;  %v13_v1 = vld [vmem:[%s173_s0] sm:$0xff]  ;;  %v14_v2 = vld [vmem:[%s173_s0 + $0x8] sm:$0xff]  ;;  %v15_v3 = vld [vmem:[%s173_s0 + $0x10] sm:$0xff] }
   0x2   :  { %v16_v4 = vld [vmem:[%s173_s0 + $0x18] sm:$0xff]  ;;  %v30_v5 = vadd.f32 %v14_v2, %v13_v1  ;;  %v54_v6 = vmul.f32 %v13_v1, %v13_v1  ;;  %v55_v7 = vmul.f32 %v14_v2, %v14_v2  ;;  %v56_v8 = vmul.f32 %v15_v3, %v15_v3  ;;  %v17_v9 = vld [vmem:[%s173_s0 + $0x20] sm:$0xff]  ;;  %v18_v13 = vld [vmem:[%s173_s0 + $0x28] sm:$0xff] }
   0x3   :  { %v57_v11 = vmul.f32 %v16_v4, %v16_v4  ;;  %v58_v15 = vmul.f32 %v17_v9, %v17_v9  ;;  %v19_v17 = vld [vmem:[%s173_s0 + $0x30] sm:$0xff]  ;;  %v59_v19 = vmul.f32 %v18_v13, %v18_v13  ;;  %v20_v21 = vld [vmem:[%s173_s0 + $0x38] sm:$0xff]  ;;  %v21_v25 = vld [vmem:[%s173_s0 + $0x40] sm:$0xff] }
   0x4   :  { %v31_v10 = vadd.f32 %v30_v5, %v15_v3  ;;  %v70_v12 = vadd.f32 %v55_v7, %v54_v6  ;;  %v60_v23 = vmul.f32 %v19_v17, %v19_v17  ;;  %v61_v27 = vmul.f32 %v20_v21, %v20_v21  ;;  %v22_v29 = vld [vmem:[%s173_s0 + $0x48] sm:$0xff]  ;;  %v23_v33 = vld [vmem:[%s173_s0 + $0x50] sm:$0xff]  ;;  %v24_v37 = vld [vmem:[%s173_s0 + $0x58] sm:$0xff] }
   0x5   :  { %v62_v31 = vmul.f32 %v21_v25, %v21_v25  ;;  %v63_v35 = vmul.f32 %v22_v29, %v22_v29  ;;  %v64_v39 = vmul.f32 %v23_v33, %v23_v33  ;;  %v25_v41 = vld [vmem:[%s173_s0 + $0x60] sm:$0xff]  ;;  %v65_v43 = vmul.f32 %v24_v37, %v24_v37  ;;  %v26_v45 = vld [vmem:[%s173_s0 + $0x68] sm:$0xff]  ;;  %v27_v49 = vld [vmem:[%s173_s0 + $0x70] sm:$0xff] }
   0x6   :  { %v32_v14 = vadd.f32 %v31_v10, %v16_v4  ;;  %v71_v16 = vadd.f32 %v70_v12, %v56_v8  ;;  %v66_v47 = vmul.f32 %v25_v41, %v25_v41  ;;  %v67_v51 = vmul.f32 %v26_v45, %v26_v45  ;;  %v28_v53 = vld [vmem:[%s173_s0 + $0x78] sm:$0xff] }
   0x7   :  { %v68_v55 = vmul.f32 %v27_v49, %v27_v49  ;;  %v69_v58 = vmul.f32 %v28_v53, %v28_v53 }
   0x8   :  { %v33_v18 = vadd.f32 %v32_v14, %v17_v9  ;;  %v72_v20 = vadd.f32 %v71_v16, %v57_v11  ;;  %v29_v7 = vld [vmem:[%s172_s1] sm:$0x1]  ;;  %v53_v12 = vld [vmem:[%s172_s1 + $0x1] sm:$0x1] }
   0xa   :  { %v34_v22 = vadd.f32 %v33_v18, %v18_v13  ;;  %v73_v24 = vadd.f32 %v72_v20, %v58_v15 }
   0xc   :  { %v35_v26 = vadd.f32 %v34_v22, %v19_v17  ;;  %v74_v28 = vadd.f32 %v73_v24, %v59_v19 }
   0xe   :  { %v36_v30 = vadd.f32 %v35_v26, %v20_v21  ;;  %v75_v32 = vadd.f32 %v74_v28, %v60_v23 }
  0x10   :  { %v37_v34 = vadd.f32 %v36_v30, %v21_v25  ;;  %v76_v36 = vadd.f32 %v75_v32, %v61_v27 }
  0x12   :  { %v38_v38 = vadd.f32 %v37_v34, %v22_v29  ;;  %v77_v40 = vadd.f32 %v76_v36, %v62_v31 }
  0x14   :  { %v39_v42 = vadd.f32 %v38_v38, %v23_v33  ;;  %v78_v44 = vadd.f32 %v77_v40, %v63_v35 }
  0x16   :  { %v40_v46 = vadd.f32 %v39_v42, %v24_v37  ;;  %v79_v48 = vadd.f32 %v78_v44, %v64_v39 }
  0x18   :  { %v41_v50 = vadd.f32 %v40_v46, %v25_v41  ;;  %v80_v52 = vadd.f32 %v79_v48, %v65_v43 }
  0x1a   :  { %v42_v54 = vadd.f32 %v41_v50, %v26_v45  ;;  %v81_v56 = vadd.f32 %v80_v52, %v66_v47 }
  0x1c   :  { %v43_v57 = vadd.f32 %v42_v54, %v27_v49  ;;  %v82_v59 = vadd.f32 %v81_v56, %v67_v51 }
  0x1e   :  { %v44_v60 = vadd.f32 %v43_v57, %v28_v53  ;;  %v83_v61 = vadd.f32 %v82_v59, %v68_v55 }
  0x20   :  { %v45_v62 = vrot.slane %v44_v60, 4  ;;  %v84_v63 = vadd.f32 %v83_v61, %v69_v58 }
  0x22   :  { %v46_v0 = vadd.f32 %v45_v62, %v44_v60  ;;  %v85_v1 = vrot.slane %v84_v63, 4 }
  0x24   :  { %v47_v2 = vrot.slane %v46_v0, 2  ;;  %v86_v3 = vadd.f32 %v85_v1, %v84_v63 }
  0x26   :  { %v48_v4 = vadd.f32 %v47_v2, %v46_v0  ;;  %v87_v5 = vrot.slane %v86_v3, 2 }
  0x28   :  { %v49_v6 = vrot.slane %v48_v4, 1  ;;  %v88_v8 = vadd.f32 %v87_v5, %v86_v3 }
  0x2a   :  { %v50_v9 = vadd.f32 %v49_v6, %v48_v4  ;;  %v89_v10 = vrot.slane %v88_v8, 1 }
  0x2c   :  { %v51_v11 = vadd.f32 %v50_v9, %v29_v7  ;;  %v90_v13 = vadd.f32 %v89_v10, %v88_v8 }
  0x2e   :  { %52 = vst [vmem:[%s172_s1] sm:$0x1] %v51_v11  ;;  %v91_v14 = vadd.f32 %v90_v13, %v53_v12 }
  0x30   :  { %92 = vst [vmem:[%s172_s1 + $0x1] sm:$0x1] %v91_v14 }

// kernel: resnet_generator_forward.41
= control target key start
LH: loop header
LB: loop body
LE: loop exit
PB: predicated region body
PF: predicated region fallthrough
CT: control target
= control target key end

     0   :  { %v50_v0 = vmov 0.0   ;;  %s88_s1 = inlined_call_operand.vmem [shape: f32[8,128], index: 1, kind: output, shape index: {}]   ;;  %s89_s0 = inlined_call_operand.vmem [shape: f32[32,128], index: 0, kind: input, shape index: {}]  }
   0x1   :  { %12 = vst [vmem:[%s88_s1] sm:$0xff] %v50_v0  ;;  %v13_v1 = vld [vmem:[%s89_s0] sm:$0xff]  ;;  %v14_v2 = vld [vmem:[%s89_s0 + $0x8] sm:$0xff]  ;;  %v15_v3 = vld [vmem:[%s89_s0 + $0x10] sm:$0xff] }
   0x2   :  { %v16_v4 = vld [vmem:[%s89_s0 + $0x18] sm:$0xff]  ;;  %v18_v5 = vadd.f32 %v14_v2, %v13_v1  ;;  %v30_v6 = vmul.f32 %v13_v1, %v13_v1  ;;  %v31_v7 = vmul.f32 %v14_v2, %v14_v2  ;;  %v32_v8 = vmul.f32 %v15_v3, %v15_v3 }
   0x3   :  { %v33_v10 = vmul.f32 %v16_v4, %v16_v4 }
   0x4   :  { %v19_v9 = vadd.f32 %v18_v5, %v15_v3  ;;  %v34_v11 = vadd.f32 %v31_v7, %v30_v6 }
   0x6   :  { %v20_v12 = vadd.f32 %v19_v9, %v16_v4  ;;  %v35_v13 = vadd.f32 %v34_v11, %v32_v8 }
   0x8   :  { %v21_v14 = vrot.slane %v20_v12, 4  ;;  %v36_v15 = vadd.f32 %v35_v13, %v33_v10  ;;  %v17_v24 = vld [vmem:[%s88_s1] sm:$0x1]  ;;  %v29_v27 = vld [vmem:[%s88_s1 + $0x1] sm:$0x1] }
   0xa   :  { %v22_v16 = vadd.f32 %v21_v14, %v20_v12  ;;  %v37_v17 = vrot.slane %v36_v15, 4 }
   0xc   :  { %v23_v18 = vrot.slane %v22_v16, 2  ;;  %v38_v19 = vadd.f32 %v37_v17, %v36_v15 }
   0xe   :  { %v24_v20 = vadd.f32 %v23_v18, %v22_v16  ;;  %v39_v21 = vrot.slane %v38_v19, 2 }
  0x10   :  { %v25_v22 = vrot.slane %v24_v20, 1  ;;  %v40_v23 = vadd.f32 %v39_v21, %v38_v19 }
  0x12   :  { %v26_v25 = vadd.f32 %v25_v22, %v24_v20  ;;  %v41_v26 = vrot.slane %v40_v23, 1 }
  0x14   :  { %v27_v28 = vadd.f32 %v26_v25, %v17_v24  ;;  %v42_v29 = vadd.f32 %v41_v26, %v40_v23 }
  0x16   :  { %28 = vst [vmem:[%s88_s1] sm:$0x1] %v27_v28  ;;  %v43_v30 = vadd.f32 %v42_v29, %v29_v27 }
  0x18   :  { %44 = vst [vmem:[%s88_s1 + $0x1] sm:$0x1] %v43_v30 }

// kernel: resnet_generator_forward.40
= control target key start
LH: loop header
LB: loop body
LE: loop exit
PB: predicated region body
PF: predicated region fallthrough
CT: control target
= control target key end

     0   :  { %s444_s1 = inlined_call_operand.vmem [shape: bf16[256,128], index: 1, kind: input, shape index: {}]   ;;  %s445_s0 = inlined_call_operand.vmem [shape: bf16[32,256], index: 0, kind: input, shape index: {}]   ;;  %s446_s2 = inlined_call_operand.vmem [shape: f32[1,128], index: 2, kind: input, shape index: {}]   ;;  %s447_s3 = inlined_call_operand.vmem [shape: f32[32,128], index: 3, kind: output, shape index: {}]  }
   0x1   :  { %v327_v0 = vld [vmem:[%s444_s1 + $0x40] sm:$0xff]   ;;  %v329_v2 = vld [vmem:[%s444_s1 + $0x48] sm:$0xff]   ;;  %v331_v4 = vld [vmem:[%s444_s1 + $0x50] sm:$0xff]  }
   0x2   :  { %v328_v1 = vld [vmem:[%s444_s1] sm:$0xff]   ;;  %283 = vmatprep.subr.bf16.mxu0 %v327_v0  ;;  %311 = vmatprep.subr.bf16.mxu1 %v327_v0  ;;  %v330_v3 = vld [vmem:[%s444_s1 + $0x8] sm:$0xff]   ;;  %v332_v5 = vld [vmem:[%s444_s1 + $0x10] sm:$0xff]  }
   0x3   :  { %284 = vmatpush3.bf16.msra.mxu0 %v328_v1  ;;  %319 = vmatpush3.bf16.msra.mxu1 %v328_v1  ;;  %v333_v6 = vld [vmem:[%s444_s1 + $0x58] sm:$0xff]   ;;  %v335_v8 = vld [vmem:[%s444_s1 + $0x60] sm:$0xff]   ;;  %v337_v10 = vld [vmem:[%s444_s1 + $0x68] sm:$0xff]  }
   0x4   :  { %285 = vmatprep.subr.bf16.mxu0 %v329_v2  ;;  %312 = vmatprep.subr.bf16.mxu1 %v329_v2  ;;  %v334_v7 = vld [vmem:[%s444_s1 + $0x18] sm:$0xff]   ;;  %v336_v9 = vld [vmem:[%s444_s1 + $0x20] sm:$0xff]   ;;  %v338_v13 = vld [vmem:[%s444_s1 + $0x28] sm:$0xff]  }
   0x5   :  { %v345_v11 = vld [vmem:[%s445_s0 + $0x4] ss:$8 sps:$4 sm:$0xff]   ;;  %v348_v12 = vld [vmem:[%s445_s0 + $0x14] ss:$8 sps:$4 sm:$0xff]   ;;  %v343_v18 = vld [vmem:[%s445_s0] ss:$8 sps:$4 sm:$0xff]  }
   0x6   :  { %v339_v14 = vld [vmem:[%s444_s1 + $0x70] sm:$0xff]   ;;  %211 = vmatprep.mubr.bf16.mxu0 %v345_v11  ;;  %219 = vmatprep.mubr.bf16.mxu1 %v348_v12  ;;  %v341_v16 = vld [vmem:[%s444_s1 + $0x78] sm:$0xff]   ;;  %v282_v23 = vld [vmem:[%s446_s2] ss:$0 sm:$0xff] }
   0x7   :  { %286 = vmatpush3.bf16.msra.mxu0 %v330_v3  ;;  %320 = vmatpush3.bf16.msra.mxu1 %v330_v3  ;;  %v340_v15 = vld [vmem:[%s444_s1 + $0x30] sm:$0xff]   ;;  %v342_v17 = vld [vmem:[%s444_s1 + $0x38] sm:$0xff]  }
   0x8   :  { %287 = vmatprep.subr.bf16.mxu0 %v331_v4  ;;  %313 = vmatprep.subr.bf16.mxu1 %v331_v4  ;;  %v346_v19 = vld [vmem:[%s445_s0 + $0x10] ss:$8 sps:$4 sm:$0xff]  }
   0xb   :  { %288 = vmatpush3.bf16.msra.mxu0 %v332_v5  ;;  %321 = vmatpush3.bf16.msra.mxu1 %v332_v5 }
   0xc   :  { %289 = vmatprep.subr.bf16.mxu0 %v333_v6  ;;  %314 = vmatprep.subr.bf16.mxu1 %v333_v6 }
   0xf   :  { %290 = vmatpush3.bf16.msra.mxu0 %v334_v7  ;;  %322 = vmatpush3.bf16.msra.mxu1 %v334_v7 }
  0x10   :  { %291 = vmatprep.subr.bf16.mxu0 %v335_v8  ;;  %315 = vmatprep.subr.bf16.mxu1 %v335_v8 }
  0x13   :  { %292 = vmatpush3.bf16.msra.mxu0 %v336_v9  ;;  %323 = vmatpush3.bf16.msra.mxu1 %v336_v9 }
  0x14   :  { %293 = vmatprep.subr.bf16.mxu0 %v337_v10  ;;  %316 = vmatprep.subr.bf16.mxu1 %v337_v10 }
  0x17   :  { %294 = vmatpush3.bf16.msra.mxu0 %v338_v13  ;;  %324 = vmatpush3.bf16.msra.mxu1 %v338_v13 }
  0x18   :  { %295 = vmatprep.subr.bf16.mxu0 %v339_v14  ;;  %317 = vmatprep.subr.bf16.mxu1 %v339_v14 }
  0x1b   :  { %296 = vmatpush3.bf16.msra.mxu0 %v340_v15  ;;  %325 = vmatpush3.bf16.msra.mxu1 %v340_v15 }
  0x1c   :  { %297 = vmatprep.subr.bf16.mxu0 %v341_v16  ;;  %318 = vmatprep.subr.bf16.mxu1 %v341_v16 }
  0x1f   :  { %298 = vmatpush3.bf16.msra.mxu0 %v342_v17  ;;  %326 = vmatpush3.bf16.msra.mxu1 %v342_v17 }
  0x22   :  { %212 = vmatmul.mubr.bf16.vlgmr.msra.gmra.mrb[0].mxu0 %v343_v18  ;;  %220 = vmatmul.mubr.bf16.vlgmr.msra.gmra.mrb[0].mxu1 %v346_v19 }
  0xf5   :  { %v299_v20 = vpop.f32.mrb[0].mxu0  ;;  %v305_v21 = vpop.f32.mrb[0].mxu1 }
  0xf6   :  { %v300_v22 = vpop.f32.mrb[1].mxu0  ;;  %v306_v24 = vpop.f32.mrb[1].mxu1 }
  0xf7   :  { %v301_v25 = vadd.f32 %v300_v22, %v299_v20  ;;  %v307_v26 = vadd.f32 %v306_v24, %v305_v21  ;;  %v302_v27 = vpop.f32.mrb[2].mxu0  ;;  %v308_v28 = vpop.f32.mrb[2].mxu1 }
  0xf8   :  { %v303_v29 = vpop.f32.mrb[3].mxu0  ;;  %v309_v30 = vpop.f32.mrb[3].mxu1 }
  0xf9   :  { %v250_v31 = vadd.f32 %v301_v25, %v282_v23  ;;  %v252_v32 = vadd.f32 %v307_v26, %v282_v23  ;;  %v304_v33 = vadd.f32 %v303_v29, %v302_v27  ;;  %v310_v34 = vadd.f32 %v309_v30, %v308_v28 }
  0xfb   :  { %254 = vst [vmem:[%s447_s3] sm:$0xff] %v250_v31  ;;  %256 = vst [vmem:[%s447_s3 + $0x10] sm:$0xff] %v252_v32  ;;  %v251_v35 = vadd.f32 %v304_v33, %v282_v23  ;;  %v253_v36 = vadd.f32 %v310_v34, %v282_v23 }
  0xfd   :  { %255 = vst [vmem:[%s447_s3 + $0x8] sm:$0xff] %v251_v35  ;;  %257 = vst [vmem:[%s447_s3 + $0x18] sm:$0xff] %v253_v36 }

// kernel: resnet_generator_forward.42
= control target key start
LH: loop header
LB: loop body
LE: loop exit
PB: predicated region body
PF: predicated region fallthrough
CT: control target
= control target key end

     0   :  { %v30_v6 = vlaneseq  ;;  %s135_s1 = inlined_call_operand.vmem [shape: f32[8,128], index: 1, kind: input, shape index: {}]   ;;  %s136_s0 = inlined_call_operand.vmem [shape: f32[32,128], index: 0, kind: input, shape index: {}]   ;;  %s137_s2 = inlined_call_operand.vmem [shape: f32[1,128], index: 2, kind: input, shape index: {}]   ;;  %s138_s3 = inlined_call_operand.vmem [shape: f32[1,128], index: 3, kind: input, shape index: {}]   ;;  %s139_s4 = inlined_call_operand.vmem [shape: f32[32,128], index: 4, kind: output, shape index: {}]  }
   0x1   :  { %v17_v0 = vld [vmem:[%s135_s1] sm:$0x1]  ;;  %v19_v1 = vld [vmem:[%s135_s1 + $0x1] sm:$0x1]  ;;  %v27_v14 = vld [vmem:[%s136_s0 + $0x8] sm:$0xff] }
   0x2   :  { %v18_v2 = vmul.f32 0.03125, %v17_v0  ;;  %v20_v3 = vmul.f32 0.03125, %v19_v1  ;;  %v31_v9 = vshrl.u32 %v30_v6, 7  ;;  %v26_v12 = vld [vmem:[%s136_s0] sm:$0xff]  ;;  %v28_v15 = vld [vmem:[%s136_s0 + $0x10] sm:$0xff]  ;;  %v29_v16 = vld [vmem:[%s136_s0 + $0x18] sm:$0xff] }
   0x3   :  { %v38_v13 = vld [vmem:[%s137_s2] sm:$0x1] }
   0x4   :  { %v21_v4 = vmul.f32 %v18_v2, %v18_v2  ;;  %v32_v10 = vsub.s32 0, %v31_v9  ;;  %v71_v24 = vld [vmem:[%s138_s3] ss:$0 sm:$0xff] }
   0x6   :  { %v22_v5 = vsub.f32 %v20_v3, %v21_v4  ;;  %v33_v11 = vrot.slane %v18_v2, %v32_v10 }
   0x8   :  { %v23_v7 = vmax.f32 %v22_v5, 0.0  ;;  %v34_v18 = vsub.f32 %v26_v12, %v33_v11  ;;  %v35_v20 = vsub.f32 %v27_v14, %v33_v11  ;;  %v36_v21 = vsub.f32 %v28_v15, %v33_v11 }
   0x9   :  { %v37_v22 = vsub.f32 %v29_v16, %v33_v11 }
   0xa   :  { %v24_v8 = vadd.f32 1e-05, %v23_v7 }
   0xc   :  { %72 = vrsqrt.f32 %v24_v8 }
  0x16   :  { %v73_v17 = vpop.eup %72 }
  0x17   :  { %v39_v19 = vmul.f32 %v73_v17, %v38_v13 }
  0x19   :  { %v43_v23 = vrot.slane %v39_v19, %v32_v10 }
  0x1b   :  { %v44_v25 = vmul.f32 %v43_v23, %v34_v18  ;;  %v45_v26 = vmul.f32 %v43_v23, %v35_v20  ;;  %v46_v27 = vmul.f32 %v43_v23, %v36_v21  ;;  %v47_v28 = vmul.f32 %v43_v23, %v37_v22 }
  0x1d   :  { %v55_v29 = vadd.f32 %v71_v24, %v44_v25  ;;  %v56_v30 = vadd.f32 %v71_v24, %v45_v26  ;;  %v57_v31 = vadd.f32 %v71_v24, %v46_v27  ;;  %v58_v32 = vadd.f32 %v71_v24, %v47_v28 }
  0x1f   :  { %v59_v33 = vmax.f32 %v55_v29, 0.0  ;;  %v60_v34 = vmax.f32 %v56_v30, 0.0  ;;  %v61_v35 = vmax.f32 %v57_v31, 0.0  ;;  %v62_v36 = vmax.f32 %v58_v32, 0.0 }
  0x21   :  { %63 = vst [vmem:[%s139_s4] sm:$0xff] %v59_v33  ;;  %64 = vst [vmem:[%s139_s4 + $0x8] sm:$0xff] %v60_v34 }
  0x22   :  { %65 = vst [vmem:[%s139_s4 + $0x10] sm:$0xff] %v61_v35  ;;  %66 = vst [vmem:[%s139_s4 + $0x18] sm:$0xff] %v62_v36 }

// kernel: resnet_generator_forward.48
= control target key start
LH: loop header
LB: loop body
LE: loop exit
PB: predicated region body
PF: predicated region fallthrough
CT: control target
= control target key end

     0   :  { %v33_v6 = vlaneseq  ;;  %s159_s1 = inlined_call_operand.vmem [shape: f32[8,128], index: 1, kind: input, shape index: {}]   ;;  %s160_s0 = inlined_call_operand.vmem [shape: f32[32,128], index: 0, kind: input, shape index: {}]   ;;  %s161_s2 = inlined_call_operand.vmem [shape: f32[1,128], index: 2, kind: input, shape index: {}]   ;;  %s162_s3 = inlined_call_operand.vmem [shape: f32[1,128], index: 3, kind: input, shape index: {}]   ;;  %s163_s4 = inlined_call_operand.vmem [shape: f32[32,128], index: 4, kind: input, shape index: {}]   ;;  %s164_s5 = inlined_call_operand.vmem [shape: f32[32,128], index: 5, kind: output, shape index: {}]  }
   0x1   :  { %v20_v0 = vld [vmem:[%s159_s1] sm:$0x1]  ;;  %v22_v1 = vld [vmem:[%s159_s1 + $0x1] sm:$0x1]  ;;  %v30_v14 = vld [vmem:[%s160_s0 + $0x8] sm:$0xff] }
   0x2   :  { %v21_v2 = vmul.f32 0.03125, %v20_v0  ;;  %v23_v3 = vmul.f32 0.03125, %v22_v1  ;;  %v34_v9 = vshrl.u32 %v33_v6, 7  ;;  %v29_v12 = vld [vmem:[%s160_s0] sm:$0xff]  ;;  %v31_v15 = vld [vmem:[%s160_s0 + $0x10] sm:$0xff]  ;;  %v32_v16 = vld [vmem:[%s160_s0 + $0x18] sm:$0xff] }
   0x3   :  { %v41_v13 = vld [vmem:[%s161_s2] sm:$0x1]  ;;  %v63_v30 = vld [vmem:[%s163_s4 + $0x8] sm:$0xff]  ;;  %v64_v31 = vld [vmem:[%s163_s4 + $0x10] sm:$0xff] }
   0x4   :  { %v24_v4 = vmul.f32 %v21_v2, %v21_v2  ;;  %v35_v10 = vsub.s32 0, %v34_v9  ;;  %v78_v24 = vld [vmem:[%s162_s3] ss:$0 sm:$0xff]  ;;  %v65_v32 = vld [vmem:[%s163_s4 + $0x18] sm:$0xff] }
   0x5   :  { %v62_v26 = vld [vmem:[%s163_s4] sm:$0xff] }
   0x6   :  { %v25_v5 = vsub.f32 %v23_v3, %v24_v4  ;;  %v36_v11 = vrot.slane %v21_v2, %v35_v10 }
   0x8   :  { %v26_v7 = vmax.f32 %v25_v5, 0.0  ;;  %v37_v18 = vsub.f32 %v29_v12, %v36_v11  ;;  %v38_v20 = vsub.f32 %v30_v14, %v36_v11  ;;  %v39_v21 = vsub.f32 %v31_v15, %v36_v11 }
   0x9   :  { %v40_v22 = vsub.f32 %v32_v16, %v36_v11 }
   0xa   :  { %v27_v8 = vadd.f32 1e-05, %v26_v7 }
   0xc   :  { %79 = vrsqrt.f32 %v27_v8 }
  0x16   :  { %v80_v17 = vpop.eup %79 }
  0x17   :  { %v42_v19 = vmul.f32 %v80_v17, %v41_v13 }
  0x19   :  { %v46_v23 = vrot.slane %v42_v19, %v35_v10 }
  0x1b   :  { %v47_v25 = vmul.f32 %v46_v23, %v37_v18  ;;  %v48_v27 = vmul.f32 %v46_v23, %v38_v20  ;;  %v49_v28 = vmul.f32 %v46_v23, %v39_v21  ;;  %v50_v29 = vmul.f32 %v46_v23, %v40_v22 }
  0x1d   :  { %v58_v33 = vadd.f32 %v78_v24, %v47_v25  ;;  %v59_v34 = vadd.f32 %v78_v24, %v48_v27  ;;  %v60_v35 = vadd.f32 %v78_v24, %v49_v28  ;;  %v61_v36 = vadd.f32 %v78_v24, %v50_v29 }
  0x1f   :  { %v66_v37 = vadd.f32 %v62_v26, %v58_v33  ;;  %v67_v38 = vadd.f32 %v63_v30, %v59_v34  ;;  %v68_v39 = vadd.f32 %v64_v31, %v60_v35  ;;  %v69_v40 = vadd.f32 %v65_v32, %v61_v36 }
  0x21   :  { %70 = vst [vmem:[%s164_s5] sm:$0xff] %v66_v37  ;;  %71 = vst [vmem:[%s164_s5 + $0x8] sm:$0xff] %v67_v38 }
  0x22   :  { %72 = vst [vmem:[%s164_s5 + $0x10] sm:$0xff] %v68_v39  ;;  %73 = vst [vmem:[%s164_s5 + $0x18] sm:$0xff] %v69_v40 }

// kernel: resnet_generator_forward.43
= control target key start
LH: loop header
LB: loop body
LE: loop exit
PB: predicated region body
PF: predicated region fallthrough
CT: control target
= control target key end

     0   :  { %s637_s1 = inlined_call_operand.vmem [shape: bf16[384,128], index: 1, kind: input, shape index: {}]   ;;  %s638_s0 = inlined_call_operand.vmem [shape: bf16[32,384], index: 0, kind: input, shape index: {}]   ;;  %s639_s2 = inlined_call_operand.vmem [shape: f32[1,128], index: 2, kind: input, shape index: {}]   ;;  %s640_s3 = inlined_call_operand.vmem [shape: f32[32,128], index: 3, kind: output, shape index: {}]  }
   0x1   :  { %v480_v0 = vld [vmem:[%s637_s1 + $0x40] sm:$0xff]   ;;  %v483_v3 = vld [vmem:[%s637_s1 + $0x48] sm:$0xff]   ;;  %v486_v6 = vld [vmem:[%s637_s1 + $0x50] sm:$0xff]  }
   0x2   :  { %v481_v1 = vld [vmem:[%s637_s1] sm:$0xff]   ;;  %422 = vmatprep.subr.bf16.mxu0 %v480_v0  ;;  %v484_v4 = vld [vmem:[%s637_s1 + $0x8] sm:$0xff]   ;;  %v487_v7 = vld [vmem:[%s637_s1 + $0x10] sm:$0xff]  }
   0x3   :  { %v482_v2 = vld [vmem:[%s637_s1 + $0x80] sm:$0xff]   ;;  %423 = vmatpush3.bf16.msra.mxu0 %v481_v1  ;;  %v485_v5 = vld [vmem:[%s637_s1 + $0x88] sm:$0xff]   ;;  %v488_v8 = vld [vmem:[%s637_s1 + $0x90] sm:$0xff]  }
   0x4   :  { %460 = vmatprep.subr.bf16.mxu1 %v482_v2  ;;  %424 = vmatprep.subr.bf16.mxu0 %v483_v3  ;;  %v489_v9 = vld [vmem:[%s637_s1 + $0x58] sm:$0xff]   ;;  %v492_v12 = vld [vmem:[%s637_s1 + $0x60] sm:$0xff]   ;;  %v495_v15 = vld [vmem:[%s637_s1 + $0x68] sm:$0xff]  }
   0x5   :  { %461 = vmatpush3.bf16.msra.mxu1 %v482_v2  ;;  %v490_v10 = vld [vmem:[%s637_s1 + $0x18] sm:$0xff]   ;;  %v494_v13 = vld [vmem:[%s637_s1 + $0xa0] sm:$0xff]   ;;  %v497_v16 = vld [vmem:[%s637_s1 + $0xa8] sm:$0xff]  }
   0x6   :  { %462 = vmatprep.subr.bf16.mxu1 %v485_v5  ;;  %v491_v11 = vld [vmem:[%s637_s1 + $0x98] sm:$0xff]   ;;  %v493_v14 = vld [vmem:[%s637_s1 + $0x20] sm:$0xff]   ;;  %v496_v17 = vld [vmem:[%s637_s1 + $0x28] sm:$0xff]  }
   0x7   :  { %425 = vmatpush3.bf16.msra.mxu0 %v484_v4  ;;  %v498_v18 = vld [vmem:[%s637_s1 + $0x70] sm:$0xff]   ;;  %v501_v21 = vld [vmem:[%s637_s1 + $0x78] sm:$0xff]   ;;  %v504_v26 = vld [vmem:[%s638_s0] ss:$12 sps:$4 sm:$0xff]  }
   0x8   :  { %426 = vmatprep.subr.bf16.mxu0 %v486_v6  ;;  %v499_v19 = vld [vmem:[%s637_s1 + $0x30] sm:$0xff]   ;;  %v503_v22 = vld [vmem:[%s637_s1 + $0xb8] sm:$0xff]   ;;  %v508_v28 = vld [vmem:[%s638_s0 + $0x20] ss:$12 sps:$4 sm:$0xff]  }
   0x9   :  { %463 = vmatpush3.bf16.msra.mxu1 %v485_v5  ;;  %v500_v20 = vld [vmem:[%s637_s1 + $0xb0] sm:$0xff]   ;;  %v502_v25 = vld [vmem:[%s637_s1 + $0x38] sm:$0xff]   ;;  %v421_v37 = vld [vmem:[%s639_s2] ss:$0 sm:$0xff] }
   0xa   :  { %464 = vmatprep.subr.bf16.mxu1 %v488_v8  ;;  %v506_v23 = vld [vmem:[%s638_s0 + $0x4] ss:$12 sps:$4 sm:$0xff]   ;;  %v507_v24 = vld [vmem:[%s638_s0 + $0x8] ss:$12 sps:$4 sm:$0xff]  }
   0xb   :  { %427 = vmatpush3.bf16.msra.mxu0 %v487_v7  ;;  %291 = vmatprep.mubr.bf16.mxu0 %v506_v23  ;;  %v509_v27 = vld [vmem:[%s638_s0 + $0x1c] ss:$12 sps:$4 sm:$0xff]   ;;  %v511_v29 = vld [vmem:[%s638_s0 + $0x18] ss:$12 sps:$4 sm:$0xff]  }
   0xc   :  { %428 = vmatprep.subr.bf16.mxu0 %v489_v9  ;;  %476 = vmatprep.mubr.bf16.mxu1 %v507_v24 }
   0xd   :  { %465 = vmatpush3.bf16.msra.mxu1 %v488_v8 }
   0xe   :  { %466 = vmatprep.subr.bf16.mxu1 %v491_v11 }
   0xf   :  { %429 = vmatpush3.bf16.msra.mxu0 %v490_v10 }
  0x10   :  { %430 = vmatprep.subr.bf16.mxu0 %v492_v12 }
  0x11   :  { %467 = vmatpush3.bf16.msra.mxu1 %v491_v11 }
  0x12   :  { %468 = vmatprep.subr.bf16.mxu1 %v494_v13 }
  0x13   :  { %431 = vmatpush3.bf16.msra.mxu0 %v493_v14 }
  0x14   :  { %432 = vmatprep.subr.bf16.mxu0 %v495_v15 }
  0x15   :  { %469 = vmatpush3.bf16.msra.mxu1 %v494_v13 }
  0x16   :  { %470 = vmatprep.subr.bf16.mxu1 %v497_v16 }
  0x17   :  { %433 = vmatpush3.bf16.msra.mxu0 %v496_v17 }
  0x18   :  { %434 = vmatprep.subr.bf16.mxu0 %v498_v18 }
  0x19   :  { %471 = vmatpush3.bf16.msra.mxu1 %v497_v16 }
  0x1a   :  { %472 = vmatprep.subr.bf16.mxu1 %v500_v20 }
  0x1b   :  { %435 = vmatpush3.bf16.msra.mxu0 %v499_v19 }
  0x1c   :  { %436 = vmatprep.subr.bf16.mxu0 %v501_v21 }
  0x1d   :  { %473 = vmatpush3.bf16.msra.mxu1 %v500_v20 }
  0x1e   :  { %474 = vmatprep.subr.bf16.mxu1 %v503_v22 }
  0x1f   :  { %437 = vmatpush3.bf16.msra.mxu0 %v502_v25 }
  0x21   :  { %475 = vmatpush3.bf16.msra.mxu1 %v503_v22 }
  0x22   :  { %292 = vmatmul.mubr.bf16.vlgmr.msra.gmra.mrb[0].mxu0 %v504_v26 }
  0x23   :  { %299 = vmatprep.mubr.bf16.mxu0 %v509_v27 }
  0x24   :  { %477 = vmatmul.mubr.bf16.vlgmr.msra.gmra.mrb[0].mxu1 %v508_v28 }
  0x2a   :  { %300 = vmatmul.mubr.bf16.gmra.mrb[4].mxu0 %v511_v29 }
  0xf5   :  { %v438_v30 = vpop.f32.mrb[0].mxu0 }
  0xf6   :  { %v439_v31 = vpop.f32.mrb[1].mxu0 }
  0xf7   :  { %v440_v32 = vadd.f32 %v439_v31, %v438_v30  ;;  %v441_v33 = vpop.f32.mrb[2].mxu0  ;;  %v478_v34 = vpop.f32.mrb[0].mxu1 }
  0xf8   :  { %v442_v35 = vpop.f32.mrb[3].mxu0  ;;  %v342_v36 = vpop.f32.mrb[1].mxu1 }
  0xf9   :  { %v443_v38 = vadd.f32 %v442_v35, %v441_v33  ;;  %v343_v39 = vadd.f32 %v440_v32, %v342_v36  ;;  %v479_v40 = vpop.f32.mrb[2].mxu1 }
  0xfa   :  { %v345_v41 = vpop.f32.mrb[3].mxu1 }
  0xfb   :  { %v379_v42 = vadd.f32 %v421_v37, %v343_v39  ;;  %v346_v43 = vadd.f32 %v443_v38, %v345_v41 }
  0xfd   :  { %383 = vst [vmem:[%s640_s3] sm:$0xff] %v379_v42  ;;  %v380_v44 = vadd.f32 %v421_v37, %v346_v43  ;;  %v444_v45 = vpop.f32.mrb[4].mxu0 }
  0xfe   :  { %v445_v46 = vpop.f32.mrb[5].mxu0 }
  0xff   :  { %384 = vst [vmem:[%s640_s3 + $0x8] sm:$0xff] %v380_v44  ;;  %v446_v47 = vadd.f32 %v445_v46, %v444_v45  ;;  %v447_v48 = vpop.f32.mrb[6].mxu0 }
 0x100   :  { %v448_v49 = vpop.f32.mrb[7].mxu0 }
 0x101   :  { %v351_v50 = vadd.f32 %v478_v34, %v446_v47  ;;  %v449_v51 = vadd.f32 %v448_v49, %v447_v48 }
 0x103   :  { %v381_v52 = vadd.f32 %v421_v37, %v351_v50  ;;  %v354_v53 = vadd.f32 %v479_v40, %v449_v51 }
 0x105   :  { %385 = vst [vmem:[%s640_s3 + $0x10] sm:$0xff] %v381_v52  ;;  %v382_v54 = vadd.f32 %v421_v37, %v354_v53 }
 0x107   :  { %386 = vst [vmem:[%s640_s3 + $0x18] sm:$0xff] %v382_v54 }

// kernel: resnet_generator_forward.56
= control target key start
LH: loop header
LB: loop body
LE: loop exit
PB: predicated region body
PF: predicated region fallthrough
CT: control target
= control target key end

     0   :  { %s306_s1 = inlined_call_operand.vmem [shape: bf16[128,128], index: 1, kind: input, shape index: {}]   ;;  %s307_s0 = inlined_call_operand.vmem [shape: bf16[32,128], index: 0, kind: input, shape index: {}]   ;;  %s308_s2 = inlined_call_operand.vmem [shape: f32[1,128], index: 2, kind: input, shape index: {}]   ;;  %s309_s3 = inlined_call_operand.vmem [shape: f32[32,128], index: 3, kind: output, shape index: {}]  }
   0x1   :  { %v231_v0 = vld [vmem:[%s306_s1] sm:$0xff]   ;;  %v232_v1 = vld [vmem:[%s306_s1 + $0x8] sm:$0xff]   ;;  %v233_v2 = vld [vmem:[%s306_s1 + $0x10] sm:$0xff]  }
   0x2   :  { %211 = vmatprep.subr.bf16.mxu0 %v231_v0  ;;  %v234_v3 = vld [vmem:[%s306_s1 + $0x18] sm:$0xff]   ;;  %v239_v4 = vld [vmem:[%s307_s0] sm:$0xff]   ;;  %v236_v6 = vld [vmem:[%s306_s1 + $0x28] sm:$0xff]  }
   0x3   :  { %212 = vmatpush3.bf16.msra.mxu0 %v231_v0  ;;  %227 = vmatprep.mubr.bf16.mxu0 %v239_v4  ;;  %v235_v5 = vld [vmem:[%s306_s1 + $0x20] sm:$0xff]   ;;  %v237_v7 = vld [vmem:[%s306_s1 + $0x30] sm:$0xff]   ;;  %v238_v8 = vld [vmem:[%s306_s1 + $0x38] sm:$0xff]  }
   0x4   :  { %213 = vmatprep.subr.bf16.mxu0 %v232_v1  ;;  %v240_v9 = vld [vmem:[%s307_s0 + $0x8] sm:$0xff]   ;;  %v200_v10 = vld [vmem:[%s308_s2] ss:$0 sm:$0xff] }
   0x7   :  { %214 = vmatpush3.bf16.msra.mxu0 %v232_v1 }
   0x8   :  { %215 = vmatprep.subr.bf16.mxu0 %v233_v2 }
   0xb   :  { %216 = vmatpush3.bf16.msra.mxu0 %v233_v2 }
   0xc   :  { %217 = vmatprep.subr.bf16.mxu0 %v234_v3 }
   0xf   :  { %218 = vmatpush3.bf16.msra.mxu0 %v234_v3 }
  0x10   :  { %219 = vmatprep.subr.bf16.mxu0 %v235_v5 }
  0x13   :  { %220 = vmatpush3.bf16.msra.mxu0 %v235_v5 }
  0x14   :  { %221 = vmatprep.subr.bf16.mxu0 %v236_v6 }
  0x17   :  { %222 = vmatpush3.bf16.msra.mxu0 %v236_v6 }
  0x18   :  { %223 = vmatprep.subr.bf16.mxu0 %v237_v7 }
  0x1b   :  { %224 = vmatpush3.bf16.msra.mxu0 %v237_v7 }
  0x1c   :  { %225 = vmatprep.subr.bf16.mxu0 %v238_v8 }
  0x1f   :  { %226 = vmatpush3.bf16.msra.mxu0 %v238_v8 }
  0x22   :  { %228 = vmatmul.mubr.bf16.vlgmr.msra.gmra.mrb[0].mxu0 %v240_v9 }
  0xf5   :  { %v229_v11 = vpop.f32.mrb[0].mxu0 }
  0xf6   :  { %v180_v12 = vadd.f32 %v229_v11, %v200_v10  ;;  %v141_v13 = vpop.f32.mrb[1].mxu0 }
  0xf7   :  { %v178_v14 = vadd.f32 %v200_v10, %v141_v13  ;;  %v230_v15 = vpop.f32.mrb[2].mxu0 }
  0xf8   :  { %184 = vst [vmem:[%s309_s3 + $0x10] sm:$0xff] %v180_v12  ;;  %v181_v16 = vadd.f32 %v230_v15, %v200_v10  ;;  %v144_v17 = vpop.f32.mrb[3].mxu0 }
  0xf9   :  { %182 = vst [vmem:[%s309_s3] sm:$0xff] %v178_v14  ;;  %v179_v18 = vadd.f32 %v200_v10, %v144_v17 }
  0xfa   :  { %185 = vst [vmem:[%s309_s3 + $0x18] sm:$0xff] %v181_v16 }
  0xfb   :  { %183 = vst [vmem:[%s309_s3 + $0x8] sm:$0xff] %v179_v18 }

// kernel: resnet_generator_forward.67
= control target key start
LH: loop header
LB: loop body
LE: loop exit
PB: predicated region body
PF: predicated region fallthrough
CT: control target
= control target key end

     0   :  { %s2210_s12 = smov 0   ;;  %s2212_s13 = smov 0   ;;  %s2483_s0 = inlined_call_operand.vmem [shape: bf16[512,512], index: 0, kind: input, shape index: {}]   ;;  %s2484_s1 = inlined_call_operand.vmem [shape: bf16[512,128], index: 1, kind: input, shape index: {}]   ;;  %s2485_s2 = inlined_call_operand.vmem [shape: f32[1,128], index: 2, kind: input, shape index: {}]   ;;  %s2486_s3 = inlined_call_operand.vmem [shape: f32[512,128], index: 3, kind: output, shape index: {}]  }
   0x1   :  { %s2214_s14 = smov 0  }
   0x2 LB: > { %s32_s15 = sadd.s32 1, %s2184_s13  ;;  %p1620_p0 = scmp.ge.s32.totalorder %s2188_s14, 1  ;;  %s2188_s14 = sphi %s2214_s14, %s13_s14   ;;  %s2184_s13 = sphi %s2212_s13, %s2488_s13   ;;  %s2180_s12 = sphi %s2210_s12, %s2487_s12  }
   0x3   : > { %p34_p1 = scmp.ge.s32.totalorder %s32_s15, 2  ;;  %p191_p2 = scmp.lt.s32.totalorder %s2188_s14, 3 }
   0x5   : > { %s2490_s15 = smov (%p34_p1, %s32_s15), 0  ;;  %p192_p3 = pnand %p1620_p0, %p191_p2 }
   0x6   : > { %v1974_v0 = vld [vmem:[%s2484_s1 + $0x40] sm:$0xff] (!%p192_p3)   ;;  %v1978_v4 = vld [vmem:[%s2484_s1 + $0x48] sm:$0xff] (!%p192_p3)   ;;  %v1982_v8 = vld [vmem:[%s2484_s1 + $0x50] sm:$0xff] (!%p192_p3)   ;;  %s1621_s25 = sshll.u32 (!%p192_p3), %s2180_s12, 5 }
   0x7   : > { %195 = sbr.rel (%p192_p3) target bundleno = 394 (0x18a), region = 32  ;;  %v1975_v1 = vld [vmem:[%s2484_s1 + $0xc0] sm:$0xff] (!%p192_p3)   ;;  %1726 = vmatprep.subr.bf16.mxu0 (!%p192_p3), %v1974_v0  ;;  %v1979_v5 = vld [vmem:[%s2484_s1 + $0xc8] sm:$0xff] (!%p192_p3)   ;;  %v1983_v9 = vld [vmem:[%s2484_s1 + $0xd0] sm:$0xff] (!%p192_p3)   ;;  %p236_p4 = scmp.lt.s32.totalorder (!%p192_p3), %s1621_s25, 63 }
   0x8   : > { %v1976_v2 = vld [vmem:[%s2484_s1] sm:$0xff] (!%p192_p3)   ;;  %1838 = vmatprep.subr.bf16.mxu1 (!%p192_p3), %v1975_v1  ;;  %v1980_v6 = vld [vmem:[%s2484_s1 + $0x8] sm:$0xff] (!%p192_p3)   ;;  %v1984_v10 = vld [vmem:[%s2484_s1 + $0x10] sm:$0xff] (!%p192_p3)  }
   0x9   : > { %v1977_v3 = vld [vmem:[%s2484_s1 + $0x80] sm:$0xff] (!%p192_p3)   ;;  %1727 = vmatpush3.bf16.msra.mxu0 (!%p192_p3), %v1976_v2  ;;  %v1981_v7 = vld [vmem:[%s2484_s1 + $0x88] sm:$0xff] (!%p192_p3)   ;;  %v1985_v11 = vld [vmem:[%s2484_s1 + $0x90] sm:$0xff] (!%p192_p3)  }
   0xa   : > { %1839 = vmatpush3.bf16.msra.mxu1 (!%p192_p3), %v1977_v3  ;;  %1728 = vmatprep.subr.bf16.mxu0 (!%p192_p3), %v1978_v4  ;;  %v1986_v12 = vld [vmem:[%s2484_s1 + $0x58] sm:$0xff] (!%p192_p3)   ;;  %v1990_v16 = vld [vmem:[%s2484_s1 + $0x60] sm:$0xff] (!%p192_p3)   ;;  %v1994_v20 = vld [vmem:[%s2484_s1 + $0x68] sm:$0xff] (!%p192_p3)  }
   0xb   : > { %1840 = vmatprep.subr.bf16.mxu1 (!%p192_p3), %v1979_v5  ;;  %v1987_v13 = vld [vmem:[%s2484_s1 + $0xd8] sm:$0xff] (!%p192_p3)   ;;  %v1991_v17 = vld [vmem:[%s2484_s1 + $0xe0] sm:$0xff] (!%p192_p3)   ;;  %v1995_v21 = vld [vmem:[%s2484_s1 + $0xe8] sm:$0xff] (!%p192_p3)  }
   0xc   : > { %v1988_v14 = vld [vmem:[%s2484_s1 + $0x18] sm:$0xff] (!%p192_p3)   ;;  %v1992_v18 = vld [vmem:[%s2484_s1 + $0x20] sm:$0xff] (!%p192_p3)   ;;  %v1996_v22 = vld [vmem:[%s2484_s1 + $0x28] sm:$0xff] (!%p192_p3)  }
   0xd   : > { %1729 = vmatpush3.bf16.msra.mxu0 (!%p192_p3), %v1980_v6  ;;  %v1989_v15 = vld [vmem:[%s2484_s1 + $0x98] sm:$0xff] (!%p192_p3)   ;;  %v1993_v19 = vld [vmem:[%s2484_s1 + $0xa0] sm:$0xff] (!%p192_p3)   ;;  %v1997_v23 = vld [vmem:[%s2484_s1 + $0xa8] sm:$0xff] (!%p192_p3)  }
   0xe   : > { %1841 = vmatpush3.bf16.msra.mxu1 %v1981_v7  ;;  %1730 = vmatprep.subr.bf16.mxu0 %v1982_v8  ;;  %s2492_s25 = smov (!%p236_p4, %s1621_s25), 63  ;;  %v1998_v24 = vld [vmem:[%s2484_s1 + $0x70] sm:$0xff]   ;;  %v2002_v28 = vld [vmem:[%s2484_s1 + $0x78] sm:$0xff]  }
   0xf   : > { %1842 = vmatprep.subr.bf16.mxu1 %v1983_v9  ;;  %v1999_v25 = vld [vmem:[%s2484_s1 + $0xf0] sm:$0xff]   ;;  %s1725_s24 = sshll.u32 %s2492_s25, 4  ;;  %v2003_v29 = vld [vmem:[%s2484_s1 + $0xf8] sm:$0xff]   ;;  %s1625_s17 = sshll.u32 %s2492_s25, 3 }
  0x10   : > { %v2000_v26 = vld [vmem:[%s2484_s1 + $0x30] sm:$0xff]   ;;  %s2327_s12 = scalar_lea.vmem %s2483_s0, %s1725_s24  ;;  %v2004_v30 = vld [vmem:[%s2484_s1 + $0x38] sm:$0xff]   ;;  %s2411_s20 = scalar_lea.vmem %s2486_s3, %s1625_s17 }
  0x11   : > { %1731 = vmatpush3.bf16.msra.mxu0 %v1984_v10  ;;  %v2001_v27 = vld [vmem:[%s2484_s1 + $0xb0] sm:$0xff]   ;;  %v2005_v31 = vld [vmem:[%s2484_s1 + $0xb8] sm:$0xff]  }
  0x12   : > { %1843 = vmatpush3.bf16.msra.mxu1 %v1985_v11  ;;  %1732 = vmatprep.subr.bf16.mxu0 %v1986_v12  ;;  %v2006_v32 = vld [vmem:[%s2327_s12] ss:$16 sps:$4 sm:$0xff]   ;;  %v2008_v33 = vld [vmem:[%s2327_s12 + $0x4] ss:$16 sps:$4 sm:$0xff]   ;;  %v2009_v34 = vld [vmem:[%s2327_s12 + $0x8] ss:$16 sps:$4 sm:$0xff]  }
  0x13   : > { %1844 = vmatprep.subr.bf16.mxu1 %v1987_v13  ;;  %v2011_v35 = vld [vmem:[%s2327_s12 + $0xc] ss:$16 sps:$4 sm:$0xff]   ;;  %1008 = vmatprep.mubr.bf16.mxu0 %v2008_v33  ;;  %v2012_v36 = vld [vmem:[%s2327_s12 + $0x24] ss:$16 sps:$4 sm:$0xff]   ;;  %v2016_v38 = vld [vmem:[%s2327_s12 + $0x20] ss:$16 sps:$4 sm:$0xff]  }
  0x14   : > { %1169 = vmatprep.mubr.bf16.mxu1 %v2011_v35  ;;  %v2014_v37 = vld [vmem:[%s2327_s12 + $0x2c] ss:$16 sps:$4 sm:$0xff]   ;;  %v2017_v39 = vld [vmem:[%s2327_s12 + $0x28] ss:$16 sps:$4 sm:$0xff]   ;;  %v2018_v40 = vld [vmem:[%s2327_s12 + $0x44] ss:$16 sps:$4 sm:$0xff]  }
  0x15   : > { %1733 = vmatpush3.bf16.msra.mxu0 %v1988_v14  ;;  %v2020_v41 = vld [vmem:[%s2327_s12 + $0x4c] ss:$16 sps:$4 sm:$0xff]   ;;  %v2022_v42 = vld [vmem:[%s2327_s12 + $0x40] ss:$16 sps:$4 sm:$0xff]   ;;  %v2023_v43 = vld [vmem:[%s2327_s12 + $0x48] ss:$16 sps:$4 sm:$0xff]  }
  0x16   : > { %1845 = vmatpush3.bf16.msra.mxu1 %v1989_v15  ;;  %1734 = vmatprep.subr.bf16.mxu0 %v1990_v16  ;;  %v2024_v44 = vld [vmem:[%s2327_s12 + $0x64] ss:$16 sps:$4 sm:$0xff]   ;;  %v2026_v45 = vld [vmem:[%s2327_s12 + $0x6c] ss:$16 sps:$4 sm:$0xff]   ;;  %v2028_v46 = vld [vmem:[%s2327_s12 + $0x60] ss:$16 sps:$4 sm:$0xff]  }
  0x17   : > { %1846 = vmatprep.subr.bf16.mxu1 %v1991_v17  ;;  %v2029_v47 = vld [vmem:[%s2327_s12 + $0x68] ss:$16 sps:$4 sm:$0xff]   ;;  %v2030_v48 = vld [vmem:[%s2327_s12 + $0x84] ss:$16 sps:$4 sm:$0xff]   ;;  %v2032_v49 = vld [vmem:[%s2327_s12 + $0x8c] ss:$16 sps:$4 sm:$0xff]  }
  0x18   : > { %v2034_v50 = vld [vmem:[%s2327_s12 + $0x80] ss:$16 sps:$4 sm:$0xff]   ;;  %v2035_v51 = vld [vmem:[%s2327_s12 + $0x88] ss:$16 sps:$4 sm:$0xff]   ;;  %v2036_v52 = vld [vmem:[%s2327_s12 + $0xa4] ss:$16 sps:$4 sm:$0xff]  }
  0x19   : > { %1735 = vmatpush3.bf16.msra.mxu0 %v1992_v18  ;;  %v2038_v53 = vld [vmem:[%s2327_s12 + $0xac] ss:$16 sps:$4 sm:$0xff]   ;;  %v2040_v54 = vld [vmem:[%s2327_s12 + $0xa0] ss:$16 sps:$4 sm:$0xff]   ;;  %v2041_v55 = vld [vmem:[%s2327_s12 + $0xa8] ss:$16 sps:$4 sm:$0xff]  }
  0x1a   : > { %1847 = vmatpush3.bf16.msra.mxu1 %v1993_v19  ;;  %1736 = vmatprep.subr.bf16.mxu0 %v1994_v20  ;;  %v2042_v56 = vld [vmem:[%s2327_s12 + $0xc4] ss:$16 sps:$4 sm:$0xff]   ;;  %v2044_v57 = vld [vmem:[%s2327_s12 + $0xcc] ss:$16 sps:$4 sm:$0xff]   ;;  %v2046_v58 = vld [vmem:[%s2327_s12 + $0xc0] ss:$16 sps:$4 sm:$0xff]  }
  0x1b   : > { %1848 = vmatprep.subr.bf16.mxu1 %v1995_v21  ;;  %v2047_v59 = vld [vmem:[%s2327_s12 + $0xc8] ss:$16 sps:$4 sm:$0xff]   ;;  %v2048_v60 = vld [vmem:[%s2327_s12 + $0xe4] ss:$16 sps:$4 sm:$0xff]   ;;  %v2050_v61 = vld [vmem:[%s2327_s12 + $0xec] ss:$16 sps:$4 sm:$0xff]  }
  0x1c   : > { %v2052_v62 = vld [vmem:[%s2327_s12 + $0xe0] ss:$16 sps:$4 sm:$0xff]   ;;  %v2053_v63 = vld [vmem:[%s2327_s12 + $0xe8] ss:$16 sps:$4 sm:$0xff]   ;;  %v2054_v0 = vld [vmem:[%s2327_s12 + $0x104] ss:$16 sps:$4 sm:$0xff]  }
  0x1d   : > { %1737 = vmatpush3.bf16.msra.mxu0 %v1996_v22  ;;  %v2056_v1 = vld [vmem:[%s2327_s12 + $0x10c] ss:$16 sps:$4 sm:$0xff]   ;;  %v2058_v2 = vld [vmem:[%s2327_s12 + $0x100] ss:$16 sps:$4 sm:$0xff]   ;;  %v2059_v3 = vld [vmem:[%s2327_s12 + $0x108] ss:$16 sps:$4 sm:$0xff]  }
  0x1e   : > { %1849 = vmatpush3.bf16.msra.mxu1 %v1997_v23  ;;  %1738 = vmatprep.subr.bf16.mxu0 %v1998_v24  ;;  %v2060_v4 = vld [vmem:[%s2327_s12 + $0x124] ss:$16 sps:$4 sm:$0xff]   ;;  %v2062_v5 = vld [vmem:[%s2327_s12 + $0x12c] ss:$16 sps:$4 sm:$0xff]   ;;  %v2064_v6 = vld [vmem:[%s2327_s12 + $0x120] ss:$16 sps:$4 sm:$0xff]  }
  0x1f   : > { %1850 = vmatprep.subr.bf16.mxu1 %v1999_v25  ;;  %v2065_v7 = vld [vmem:[%s2327_s12 + $0x128] ss:$16 sps:$4 sm:$0xff]   ;;  %v2066_v8 = vld [vmem:[%s2327_s12 + $0x144] ss:$16 sps:$4 sm:$0xff]   ;;  %v2068_v9 = vld [vmem:[%s2327_s12 + $0x14c] ss:$16 sps:$4 sm:$0xff]  }
  0x20   : > { %v2070_v10 = vld [vmem:[%s2327_s12 + $0x140] ss:$16 sps:$4 sm:$0xff]   ;;  %v2071_v11 = vld [vmem:[%s2327_s12 + $0x148] ss:$16 sps:$4 sm:$0xff]   ;;  %v2072_v12 = vld [vmem:[%s2327_s12 + $0x164] ss:$16 sps:$4 sm:$0xff]  }
  0x21   : > { %1739 = vmatpush3.bf16.msra.mxu0 %v2000_v26  ;;  %v2074_v13 = vld [vmem:[%s2327_s12 + $0x16c] ss:$16 sps:$4 sm:$0xff]   ;;  %v2076_v14 = vld [vmem:[%s2327_s12 + $0x160] ss:$16 sps:$4 sm:$0xff]   ;;  %v2077_v15 = vld [vmem:[%s2327_s12 + $0x168] ss:$16 sps:$4 sm:$0xff]  }
  0x22   : > { %1851 = vmatpush3.bf16.msra.mxu1 %v2001_v27  ;;  %1740 = vmatprep.subr.bf16.mxu0 %v2002_v28  ;;  %v2078_v16 = vld [vmem:[%s2327_s12 + $0x184] ss:$16 sps:$4 sm:$0xff]   ;;  %v2080_v17 = vld [vmem:[%s2327_s12 + $0x18c] ss:$16 sps:$4 sm:$0xff]   ;;  %v2082_v18 = vld [vmem:[%s2327_s12 + $0x180] ss:$16 sps:$4 sm:$0xff]  }
  0x23   : > { %1852 = vmatprep.subr.bf16.mxu1 %v2003_v29  ;;  %v2083_v19 = vld [vmem:[%s2327_s12 + $0x188] ss:$16 sps:$4 sm:$0xff]   ;;  %v2084_v20 = vld [vmem:[%s2327_s12 + $0x1a4] ss:$16 sps:$4 sm:$0xff]   ;;  %v2086_v21 = vld [vmem:[%s2327_s12 + $0x1ac] ss:$16 sps:$4 sm:$0xff]  }
  0x24   : > { %v2088_v22 = vld [vmem:[%s2327_s12 + $0x1a0] ss:$16 sps:$4 sm:$0xff]   ;;  %v2089_v23 = vld [vmem:[%s2327_s12 + $0x1a8] ss:$16 sps:$4 sm:$0xff]   ;;  %v2090_v24 = vld [vmem:[%s2327_s12 + $0x1c4] ss:$16 sps:$4 sm:$0xff]  }
  0x25   : > { %1741 = vmatpush3.bf16.msra.mxu0 %v2004_v30  ;;  %v2092_v25 = vld [vmem:[%s2327_s12 + $0x1cc] ss:$16 sps:$4 sm:$0xff]   ;;  %v2094_v26 = vld [vmem:[%s2327_s12 + $0x1c0] ss:$16 sps:$4 sm:$0xff]   ;;  %v2095_v27 = vld [vmem:[%s2327_s12 + $0x1c8] ss:$16 sps:$4 sm:$0xff]  }
  0x26   : > { %1853 = vmatpush3.bf16.msra.mxu1 %v2005_v31  ;;  %v2096_v28 = vld [vmem:[%s2327_s12 + $0x1e4] ss:$16 sps:$4 sm:$0xff]   ;;  %v2098_v29 = vld [vmem:[%s2327_s12 + $0x1ec] ss:$16 sps:$4 sm:$0xff]   ;;  %v2100_v30 = vld [vmem:[%s2327_s12 + $0x1e0] ss:$16 sps:$4 sm:$0xff]  }
  0x27   : > { %v2101_v31 = vld [vmem:[%s2327_s12 + $0x1e8] ss:$16 sps:$4 sm:$0xff]  }
  0x28   : > { %1009 = vmatmul.mubr.bf16.vlgmr.msra.gmra.mrb[0].mxu0 %v2006_v32 }
  0x29   : > { %1170 = vmatmul.mubr.bf16.vlgmr.msra.gmra.mrb[0].mxu1 %v2009_v34  ;;  %1016 = vmatprep.mubr.bf16.mxu0 %v2012_v36 }
  0x2a   : > { %1177 = vmatprep.mubr.bf16.mxu1 %v2014_v37 }
  0x30   : > { %1017 = vmatmul.mubr.bf16.gmra.mrb[4].mxu0 %v2016_v38 }
  0x31   : > { %1178 = vmatmul.mubr.bf16.gmra.mrb[4].mxu1 %v2017_v39  ;;  %1024 = vmatprep.mubr.bf16.mxu0 %v2018_v40 }
  0x32   : > { %1185 = vmatprep.mubr.bf16.mxu1 %v2020_v41  ;;  %v2402_v41 = vld [vmem:[%s2485_s2] ss:$0 sm:$0xff] }
  0x38   : > { %1025 = vmatmul.mubr.bf16.gmra.mrb[8].mxu0 %v2022_v42 }
  0x39   : > { %1186 = vmatmul.mubr.bf16.gmra.mrb[8].mxu1 %v2023_v43  ;;  %1032 = vmatprep.mubr.bf16.mxu0 %v2024_v44 }
  0x3a   : > { %1193 = vmatprep.mubr.bf16.mxu1 %v2026_v45 }
  0x40   : > { %1033 = vmatmul.mubr.bf16.gmra.mrb[12].mxu0 %v2028_v46 }
  0x41   : > { %1194 = vmatmul.mubr.bf16.gmra.mrb[12].mxu1 %v2029_v47  ;;  %1040 = vmatprep.mubr.bf16.mxu0 %v2030_v48 }
  0x42   : > { %1201 = vmatprep.mubr.bf16.mxu1 %v2032_v49 }
  0x48   : > { %1041 = vmatmul.mubr.bf16.gmra.mrb[16].mxu0 %v2034_v50 }
  0x49   : > { %1202 = vmatmul.mubr.bf16.gmra.mrb[16].mxu1 %v2035_v51  ;;  %1048 = vmatprep.mubr.bf16.mxu0 %v2036_v52 }
  0x4a   : > { %1209 = vmatprep.mubr.bf16.mxu1 %v2038_v53 }
  0x50   : > { %1049 = vmatmul.mubr.bf16.gmra.mrb[20].mxu0 %v2040_v54 }
  0x51   : > { %1210 = vmatmul.mubr.bf16.gmra.mrb[20].mxu1 %v2041_v55  ;;  %1056 = vmatprep.mubr.bf16.mxu0 %v2042_v56 }
  0x52   : > { %1217 = vmatprep.mubr.bf16.mxu1 %v2044_v57 }
  0x58   : > { %1057 = vmatmul.mubr.bf16.gmra.mrb[24].mxu0 %v2046_v58 }
  0x59   : > { %1218 = vmatmul.mubr.bf16.gmra.mrb[24].mxu1 %v2047_v59  ;;  %1064 = vmatprep.mubr.bf16.mxu0 %v2048_v60 }
  0x5a   : > { %1225 = vmatprep.mubr.bf16.mxu1 %v2050_v61 }
  0x60   : > { %1065 = vmatmul.mubr.bf16.gmra.mrb[28].mxu0 %v2052_v62 }
  0x61   : > { %1226 = vmatmul.mubr.bf16.gmra.mrb[28].mxu1 %v2053_v63  ;;  %1072 = vmatprep.mubr.bf16.mxu0 %v2054_v0 }
  0x62   : > { %1233 = vmatprep.mubr.bf16.mxu1 %v2056_v1 }
  0x68   : > { %1073 = vmatmul.mubr.bf16.gmra.mrb[32].mxu0 %v2058_v2 }
  0x69   : > { %1234 = vmatmul.mubr.bf16.gmra.mrb[32].mxu1 %v2059_v3  ;;  %1080 = vmatprep.mubr.bf16.mxu0 %v2060_v4 }
  0x6a   : > { %1241 = vmatprep.mubr.bf16.mxu1 %v2062_v5 }
  0x70   : > { %1081 = vmatmul.mubr.bf16.gmra.mrb[36].mxu0 %v2064_v6 }
  0x71   : > { %1242 = vmatmul.mubr.bf16.gmra.mrb[36].mxu1 %v2065_v7  ;;  %1088 = vmatprep.mubr.bf16.mxu0 %v2066_v8 }
  0x72   : > { %1249 = vmatprep.mubr.bf16.mxu1 %v2068_v9 }
  0x78   : > { %1089 = vmatmul.mubr.bf16.gmra.mrb[40].mxu0 %v2070_v10 }
  0x79   : > { %1250 = vmatmul.mubr.bf16.gmra.mrb[40].mxu1 %v2071_v11  ;;  %1096 = vmatprep.mubr.bf16.mxu0 %v2072_v12 }
  0x7a   : > { %1257 = vmatprep.mubr.bf16.mxu1 %v2074_v13 }
  0x80   : > { %1097 = vmatmul.mubr.bf16.gmra.mrb[44].mxu0 %v2076_v14 }
  0x81   : > { %1258 = vmatmul.mubr.bf16.gmra.mrb[44].mxu1 %v2077_v15  ;;  %1104 = vmatprep.mubr.bf16.mxu0 %v2078_v16 }
  0x82   : > { %1265 = vmatprep.mubr.bf16.mxu1 %v2080_v17 }
  0x88   : > { %1105 = vmatmul.mubr.bf16.gmra.mrb[48].mxu0 %v2082_v18 }
  0x89   : > { %1266 = vmatmul.mubr.bf16.gmra.mrb[48].mxu1 %v2083_v19  ;;  %1112 = vmatprep.mubr.bf16.mxu0 %v2084_v20 }
  0x8a   : > { %1273 = vmatprep.mubr.bf16.mxu1 %v2086_v21 }
  0x90   : > { %1113 = vmatmul.mubr.bf16.gmra.mrb[52].mxu0 %v2088_v22 }
  0x91   : > { %1274 = vmatmul.mubr.bf16.gmra.mrb[52].mxu1 %v2089_v23  ;;  %1120 = vmatprep.mubr.bf16.mxu0 %v2090_v24 }
  0x92   : > { %1281 = vmatprep.mubr.bf16.mxu1 %v2092_v25 }
  0x98   : > { %1121 = vmatmul.mubr.bf16.gmra.mrb[56].mxu0 %v2094_v26 }
  0x99   : > { %1282 = vmatmul.mubr.bf16.gmra.mrb[56].mxu1 %v2095_v27  ;;  %1128 = vmatprep.mubr.bf16.mxu0 %v2096_v28 }
  0x9a   : > { %1289 = vmatprep.mubr.bf16.mxu1 %v2098_v29 }
  0xa0   : > { %1129 = vmatmul.mubr.bf16.gmra.mrb[60].mxu0 %v2100_v30 }
  0xa1   : > { %1290 = vmatmul.mubr.bf16.gmra.mrb[60].mxu1 %v2101_v31 }
  0xfb   : > { %v1742_v32 = vpop.f32.mrb[0].mxu0 }
  0xfc   : > { %v1854_v33 = vpop.f32.mrb[0].mxu1  ;;  %v1743_v34 = vpop.f32.mrb[1].mxu0 }
  0xfd   : > { %v1744_v35 = vadd.f32 %v1743_v34, %v1742_v32  ;;  %v1855_v36 = vpop.f32.mrb[1].mxu1  ;;  %v1745_v37 = vpop.f32.mrb[2].mxu0 }
  0xfe   : > { %v1856_v38 = vadd.f32 %v1855_v36, %v1854_v33  ;;  %v1857_v39 = vpop.f32.mrb[2].mxu1  ;;  %v1746_v40 = vpop.f32.mrb[3].mxu0 }
  0xff   : > { %v1747_v42 = vadd.f32 %v1746_v40, %v1745_v37  ;;  %v1858_v43 = vpop.f32.mrb[3].mxu1 }
 0x100   : > { %v1172_v44 = vadd.f32 %v1856_v38, %v1744_v35  ;;  %v1859_v45 = vadd.f32 %v1858_v43, %v1857_v39 }
 0x102   : > { %v1404_v46 = vadd.f32 %v2402_v41, %v1172_v44  ;;  %v1175_v47 = vadd.f32 %v1859_v45, %v1747_v42 }
 0x103   : > { %v1748_v48 = vpop.f32.mrb[4].mxu0 }
 0x104   : > { %2102 = vtanh.f32 %v1404_v46  ;;  %v1405_v49 = vadd.f32 %v2402_v41, %v1175_v47  ;;  %v1860_v50 = vpop.f32.mrb[4].mxu1  ;;  %v1749_v51 = vpop.f32.mrb[5].mxu0 }
 0x105   : > { %v1750_v52 = vadd.f32 %v1749_v51, %v1748_v48  ;;  %v1861_v53 = vpop.f32.mrb[5].mxu1  ;;  %v1751_v54 = vpop.f32.mrb[6].mxu0 }
 0x106   : > { %2104 = vtanh.f32 %v1405_v49  ;;  %v1862_v55 = vadd.f32 %v1861_v53, %v1860_v50  ;;  %v1863_v56 = vpop.f32.mrb[6].mxu1  ;;  %v1752_v57 = vpop.f32.mrb[7].mxu0 }
 0x107   : > { %v1753_v58 = vadd.f32 %v1752_v57, %v1751_v54  ;;  %v1864_v59 = vpop.f32.mrb[7].mxu1 }
 0x108   : > { %v1180_v60 = vadd.f32 %v1862_v55, %v1750_v52  ;;  %v1865_v61 = vadd.f32 %v1864_v59, %v1863_v56 }
 0x10a   : > { %v1406_v62 = vadd.f32 %v2402_v41, %v1180_v60  ;;  %v1183_v63 = vadd.f32 %v1865_v61, %v1753_v58 }
 0x10b   : > { %v1754_v0 = vpop.f32.mrb[8].mxu0 }
 0x10c   : > { %2106 = vtanh.f32 %v1406_v62  ;;  %v1407_v1 = vadd.f32 %v2402_v41, %v1183_v63  ;;  %v1866_v2 = vpop.f32.mrb[8].mxu1  ;;  %v1755_v3 = vpop.f32.mrb[9].mxu0 }
 0x10d   : > { %v1756_v4 = vadd.f32 %v1755_v3, %v1754_v0  ;;  %v1867_v5 = vpop.f32.mrb[9].mxu1  ;;  %v1757_v6 = vpop.f32.mrb[10].mxu0 }
 0x10e   : > { %v2103_v7 = vpop.eup %2102  ;;  %2108 = vtanh.f32 %v1407_v1  ;;  %v1868_v8 = vadd.f32 %v1867_v5, %v1866_v2  ;;  %v1869_v9 = vpop.f32.mrb[10].mxu1 }
 0x10f   : > { %v1758_v10 = vpop.f32.mrb[11].mxu0  ;;  %1468 = vst [vmem:[%s2411_s20] sm:$0xff] %v2103_v7  ;;  %v1870_v12 = vpop.f32.mrb[11].mxu1 }
 0x110   : > { %v1759_v11 = vadd.f32 %v1758_v10, %v1757_v6  ;;  %v2105_v13 = vpop.eup %2104  ;;  %v1188_v14 = vadd.f32 %v1868_v8, %v1756_v4  ;;  %v1871_v15 = vadd.f32 %v1870_v12, %v1869_v9 }
 0x111   : > { %1469 = vst [vmem:[%s2411_s20 + $0x8] sm:$0xff] %v2105_v13 }
 0x112   : > { %v1408_v16 = vadd.f32 %v2402_v41, %v1188_v14  ;;  %v1191_v17 = vadd.f32 %v1871_v15, %v1759_v11 }
 0x113   : > { %v1760_v18 = vpop.f32.mrb[12].mxu0 }
 0x114   : > { %2110 = vtanh.f32 %v1408_v16  ;;  %v1409_v19 = vadd.f32 %v2402_v41, %v1191_v17  ;;  %v1872_v20 = vpop.f32.mrb[12].mxu1  ;;  %v1761_v21 = vpop.f32.mrb[13].mxu0 }
 0x115   : > { %v1762_v22 = vadd.f32 %v1761_v21, %v1760_v18  ;;  %v1873_v23 = vpop.f32.mrb[13].mxu1  ;;  %v1763_v24 = vpop.f32.mrb[14].mxu0 }
 0x116   : > { %v2107_v25 = vpop.eup %2106  ;;  %2112 = vtanh.f32 %v1409_v19  ;;  %v1874_v26 = vadd.f32 %v1873_v23, %v1872_v20  ;;  %v1875_v27 = vpop.f32.mrb[14].mxu1 }
 0x117   : > { %v1764_v28 = vpop.f32.mrb[15].mxu0  ;;  %1470 = vst [vmem:[%s2411_s20 + $0x10] sm:$0xff] %v2107_v25  ;;  %v1876_v30 = vpop.f32.mrb[15].mxu1 }
 0x118   : > { %v1765_v29 = vadd.f32 %v1764_v28, %v1763_v24  ;;  %v2109_v31 = vpop.eup %2108  ;;  %v1196_v32 = vadd.f32 %v1874_v26, %v1762_v22  ;;  %v1877_v33 = vadd.f32 %v1876_v30, %v1875_v27 }
 0x119   : > { %1471 = vst [vmem:[%s2411_s20 + $0x18] sm:$0xff] %v2109_v31 }
 0x11a   : > { %v1410_v34 = vadd.f32 %v2402_v41, %v1196_v32  ;;  %v1199_v35 = vadd.f32 %v1877_v33, %v1765_v29 }
 0x11b   : > { %v1766_v36 = vpop.f32.mrb[16].mxu0 }
 0x11c   : > { %2114 = vtanh.f32 %v1410_v34  ;;  %v1411_v37 = vadd.f32 %v2402_v41, %v1199_v35  ;;  %v1878_v38 = vpop.f32.mrb[16].mxu1  ;;  %v1767_v39 = vpop.f32.mrb[17].mxu0 }
 0x11d   : > { %v1768_v40 = vadd.f32 %v1767_v39, %v1766_v36  ;;  %v1879_v42 = vpop.f32.mrb[17].mxu1  ;;  %v1769_v43 = vpop.f32.mrb[18].mxu0 }
 0x11e   : > { %v2111_v44 = vpop.eup %2110  ;;  %2116 = vtanh.f32 %v1411_v37  ;;  %v1880_v45 = vadd.f32 %v1879_v42, %v1878_v38  ;;  %v1881_v46 = vpop.f32.mrb[18].mxu1 }
 0x11f   : > { %v1770_v47 = vpop.f32.mrb[19].mxu0  ;;  %1472 = vst [vmem:[%s2411_s20 + $0x20] sm:$0xff] %v2111_v44  ;;  %v1882_v49 = vpop.f32.mrb[19].mxu1 }
 0x120   : > { %v1771_v48 = vadd.f32 %v1770_v47, %v1769_v43  ;;  %v2113_v50 = vpop.eup %2112  ;;  %v1204_v51 = vadd.f32 %v1880_v45, %v1768_v40  ;;  %v1883_v52 = vadd.f32 %v1882_v49, %v1881_v46 }
 0x121   : > { %1473 = vst [vmem:[%s2411_s20 + $0x28] sm:$0xff] %v2113_v50 }
 0x122   : > { %v1412_v53 = vadd.f32 %v2402_v41, %v1204_v51  ;;  %v1207_v54 = vadd.f32 %v1883_v52, %v1771_v48 }
 0x123   : > { %v1772_v55 = vpop.f32.mrb[20].mxu0 }
 0x124   : > { %2118 = vtanh.f32 %v1412_v53  ;;  %v1413_v56 = vadd.f32 %v2402_v41, %v1207_v54  ;;  %v1884_v57 = vpop.f32.mrb[20].mxu1  ;;  %v1773_v58 = vpop.f32.mrb[21].mxu0 }
 0x125   : > { %v1774_v59 = vadd.f32 %v1773_v58, %v1772_v55  ;;  %v1885_v60 = vpop.f32.mrb[21].mxu1  ;;  %v1775_v61 = vpop.f32.mrb[22].mxu0 }
 0x126   : > { %v2115_v62 = vpop.eup %2114  ;;  %2120 = vtanh.f32 %v1413_v56  ;;  %v1886_v63 = vadd.f32 %v1885_v60, %v1884_v57  ;;  %v1887_v0 = vpop.f32.mrb[22].mxu1 }
 0x127   : > { %v1776_v1 = vpop.f32.mrb[23].mxu0  ;;  %1474 = vst [vmem:[%s2411_s20 + $0x30] sm:$0xff] %v2115_v62  ;;  %v1888_v3 = vpop.f32.mrb[23].mxu1 }
 0x128   : > { %v1777_v2 = vadd.f32 %v1776_v1, %v1775_v61  ;;  %v2117_v4 = vpop.eup %2116  ;;  %v1212_v5 = vadd.f32 %v1886_v63, %v1774_v59  ;;  %v1889_v6 = vadd.f32 %v1888_v3, %v1887_v0 }
 0x129   : > { %1475 = vst [vmem:[%s2411_s20 + $0x38] sm:$0xff] %v2117_v4 }
 0x12a   : > { %v1414_v7 = vadd.f32 %v2402_v41, %v1212_v5  ;;  %v1215_v8 = vadd.f32 %v1889_v6, %v1777_v2 }
 0x12b   : > { %v1778_v9 = vpop.f32.mrb[24].mxu0 }
 0x12c   : > { %2122 = vtanh.f32 %v1414_v7  ;;  %v1415_v10 = vadd.f32 %v2402_v41, %v1215_v8  ;;  %v1890_v11 = vpop.f32.mrb[24].mxu1  ;;  %v1779_v12 = vpop.f32.mrb[25].mxu0 }
 0x12d   : > { %v1780_v13 = vadd.f32 %v1779_v12, %v1778_v9  ;;  %v1891_v14 = vpop.f32.mrb[25].mxu1  ;;  %v1781_v15 = vpop.f32.mrb[26].mxu0 }
 0x12e   : > { %v2119_v16 = vpop.eup %2118  ;;  %2124 = vtanh.f32 %v1415_v10  ;;  %v1892_v17 = vadd.f32 %v1891_v14, %v1890_v11  ;;  %v1893_v18 = vpop.f32.mrb[26].mxu1 }
 0x12f   : > { %v1782_v19 = vpop.f32.mrb[27].mxu0  ;;  %1476 = vst [vmem:[%s2411_s20 + $0x40] sm:$0xff] %v2119_v16  ;;  %v1894_v21 = vpop.f32.mrb[27].mxu1 }
 0x130   : > { %v1783_v20 = vadd.f32 %v1782_v19, %v1781_v15  ;;  %v2121_v22 = vpop.eup %2120  ;;  %v1220_v23 = vadd.f32 %v1892_v17, %v1780_v13  ;;  %v1895_v24 = vadd.f32 %v1894_v21, %v1893_v18 }
 0x131   : > { %1477 = vst [vmem:[%s2411_s20 + $0x48] sm:$0xff] %v2121_v22 }
 0x132   : > { %v1416_v25 = vadd.f32 %v2402_v41, %v1220_v23  ;;  %v1223_v26 = vadd.f32 %v1895_v24, %v1783_v20 }
 0x133   : > { %v1784_v27 = vpop.f32.mrb[28].mxu0 }
 0x134   : > { %2126 = vtanh.f32 %v1416_v25  ;;  %v1417_v28 = vadd.f32 %v2402_v41, %v1223_v26  ;;  %v1896_v29 = vpop.f32.mrb[28].mxu1  ;;  %v1785_v30 = vpop.f32.mrb[29].mxu0 }
 0x135   : > { %v1786_v31 = vadd.f32 %v1785_v30, %v1784_v27  ;;  %v1897_v32 = vpop.f32.mrb[29].mxu1  ;;  %v1787_v33 = vpop.f32.mrb[30].mxu0 }
 0x136   : > { %v2123_v34 = vpop.eup %2122  ;;  %2128 = vtanh.f32 %v1417_v28  ;;  %v1898_v35 = vadd.f32 %v1897_v32, %v1896_v29  ;;  %v1899_v36 = vpop.f32.mrb[30].mxu1 }
 0x137   : > { %v1788_v37 = vpop.f32.mrb[31].mxu0  ;;  %1478 = vst [vmem:[%s2411_s20 + $0x50] sm:$0xff] %v2123_v34  ;;  %v1900_v39 = vpop.f32.mrb[31].mxu1 }
 0x138   : > { %v1789_v38 = vadd.f32 %v1788_v37, %v1787_v33  ;;  %v2125_v40 = vpop.eup %2124  ;;  %v1228_v42 = vadd.f32 %v1898_v35, %v1786_v31  ;;  %v1901_v43 = vadd.f32 %v1900_v39, %v1899_v36 }
 0x139   : > { %1479 = vst [vmem:[%s2411_s20 + $0x58] sm:$0xff] %v2125_v40 }
 0x13a   : > { %v1418_v44 = vadd.f32 %v2402_v41, %v1228_v42  ;;  %v1231_v45 = vadd.f32 %v1901_v43, %v1789_v38 }
 0x13b   : > { %v1790_v46 = vpop.f32.mrb[32].mxu0 }
 0x13c   : > { %2130 = vtanh.f32 %v1418_v44  ;;  %v1419_v47 = vadd.f32 %v2402_v41, %v1231_v45  ;;  %v1902_v48 = vpop.f32.mrb[32].mxu1  ;;  %v1791_v49 = vpop.f32.mrb[33].mxu0 }
 0x13d   : > { %v1792_v50 = vadd.f32 %v1791_v49, %v1790_v46  ;;  %v1903_v51 = vpop.f32.mrb[33].mxu1  ;;  %v1793_v52 = vpop.f32.mrb[34].mxu0 }
 0x13e   : > { %v2127_v53 = vpop.eup %2126  ;;  %2132 = vtanh.f32 %v1419_v47  ;;  %v1904_v54 = vadd.f32 %v1903_v51, %v1902_v48  ;;  %v1905_v55 = vpop.f32.mrb[34].mxu1 }
 0x13f   : > { %v1794_v56 = vpop.f32.mrb[35].mxu0  ;;  %1480 = vst [vmem:[%s2411_s20 + $0x60] sm:$0xff] %v2127_v53  ;;  %v1906_v58 = vpop.f32.mrb[35].mxu1 }
 0x140   : > { %v1795_v57 = vadd.f32 %v1794_v56, %v1793_v52  ;;  %v2129_v59 = vpop.eup %2128  ;;  %v1236_v60 = vadd.f32 %v1904_v54, %v1792_v50  ;;  %v1907_v61 = vadd.f32 %v1906_v58, %v1905_v55 }
 0x141   : > { %1481 = vst [vmem:[%s2411_s20 + $0x68] sm:$0xff] %v2129_v59 }
 0x142   : > { %v1420_v62 = vadd.f32 %v2402_v41, %v1236_v60  ;;  %v1239_v63 = vadd.f32 %v1907_v61, %v1795_v57 }
 0x143   : > { %v1796_v0 = vpop.f32.mrb[36].mxu0 }
 0x144   : > { %2134 = vtanh.f32 %v1420_v62  ;;  %v1421_v1 = vadd.f32 %v2402_v41, %v1239_v63  ;;  %v1908_v2 = vpop.f32.mrb[36].mxu1  ;;  %v1797_v3 = vpop.f32.mrb[37].mxu0 }
 0x145   : > { %v1798_v4 = vadd.f32 %v1797_v3, %v1796_v0  ;;  %v1909_v5 = vpop.f32.mrb[37].mxu1  ;;  %v1799_v6 = vpop.f32.mrb[38].mxu0 }
 0x146   : > { %v2131_v7 = vpop.eup %2130  ;;  %2136 = vtanh.f32 %v1421_v1  ;;  %v1910_v8 = vadd.f32 %v1909_v5, %v1908_v2  ;;  %v1911_v9 = vpop.f32.mrb[38].mxu1 }
 0x147   : > { %v1800_v10 = vpop.f32.mrb[39].mxu0  ;;  %1482 = vst [vmem:[%s2411_s20 + $0x70] sm:$0xff] %v2131_v7  ;;  %v1912_v12 = vpop.f32.mrb[39].mxu1 }
 0x148   : > { %v1801_v11 = vadd.f32 %v1800_v10, %v1799_v6  ;;  %v2133_v13 = vpop.eup %2132  ;;  %v1244_v14 = vadd.f32 %v1910_v8, %v1798_v4  ;;  %v1913_v15 = vadd.f32 %v1912_v12, %v1911_v9 }
 0x149   : > { %1483 = vst [vmem:[%s2411_s20 + $0x78] sm:$0xff] %v2133_v13 }
 0x14a   : > { %v1422_v16 = vadd.f32 %v2402_v41, %v1244_v14  ;;  %v1247_v17 = vadd.f32 %v1913_v15, %v1801_v11 }
 0x14b   : > { %v1802_v18 = vpop.f32.mrb[40].mxu0 }
 0x14c   : > { %2138 = vtanh.f32 %v1422_v16  ;;  %v1423_v19 = vadd.f32 %v2402_v41, %v1247_v17  ;;  %v1914_v20 = vpop.f32.mrb[40].mxu1  ;;  %v1803_v21 = vpop.f32.mrb[41].mxu0 }
 0x14d   : > { %v1804_v22 = vadd.f32 %v1803_v21, %v1802_v18  ;;  %v1915_v23 = vpop.f32.mrb[41].mxu1  ;;  %v1805_v24 = vpop.f32.mrb[42].mxu0 }
 0x14e   : > { %v2135_v25 = vpop.eup %2134  ;;  %2140 = vtanh.f32 %v1423_v19  ;;  %v1916_v26 = vadd.f32 %v1915_v23, %v1914_v20  ;;  %v1917_v27 = vpop.f32.mrb[42].mxu1 }
 0x14f   : > { %v1806_v28 = vpop.f32.mrb[43].mxu0  ;;  %1484 = vst [vmem:[%s2411_s20 + $0x80] sm:$0xff] %v2135_v25  ;;  %v1918_v30 = vpop.f32.mrb[43].mxu1 }
 0x150   : > { %v1807_v29 = vadd.f32 %v1806_v28, %v1805_v24  ;;  %v2137_v31 = vpop.eup %2136  ;;  %v1252_v32 = vadd.f32 %v1916_v26, %v1804_v22  ;;  %v1919_v33 = vadd.f32 %v1918_v30, %v1917_v27 }
 0x151   : > { %1485 = vst [vmem:[%s2411_s20 + $0x88] sm:$0xff] %v2137_v31 }
 0x152   : > { %v1424_v34 = vadd.f32 %v2402_v41, %v1252_v32  ;;  %v1255_v35 = vadd.f32 %v1919_v33, %v1807_v29 }
 0x153   : > { %v1808_v36 = vpop.f32.mrb[44].mxu0 }
 0x154   : > { %2142 = vtanh.f32 %v1424_v34  ;;  %v1425_v37 = vadd.f32 %v2402_v41, %v1255_v35  ;;  %v1920_v38 = vpop.f32.mrb[44].mxu1  ;;  %v1809_v39 = vpop.f32.mrb[45].mxu0 }
 0x155   : > { %v1810_v40 = vadd.f32 %v1809_v39, %v1808_v36  ;;  %v1921_v42 = vpop.f32.mrb[45].mxu1  ;;  %v1811_v43 = vpop.f32.mrb[46].mxu0 }
 0x156   : > { %v2139_v44 = vpop.eup %2138  ;;  %2144 = vtanh.f32 %v1425_v37  ;;  %v1922_v45 = vadd.f32 %v1921_v42, %v1920_v38  ;;  %v1923_v46 = vpop.f32.mrb[46].mxu1 }
 0x157   : > { %v1812_v47 = vpop.f32.mrb[47].mxu0  ;;  %1486 = vst [vmem:[%s2411_s20 + $0x90] sm:$0xff] %v2139_v44  ;;  %v1924_v49 = vpop.f32.mrb[47].mxu1 }
 0x158   : > { %v1813_v48 = vadd.f32 %v1812_v47, %v1811_v43  ;;  %v2141_v50 = vpop.eup %2140  ;;  %v1260_v51 = vadd.f32 %v1922_v45, %v1810_v40  ;;  %v1925_v52 = vadd.f32 %v1924_v49, %v1923_v46 }
 0x159   : > { %1487 = vst [vmem:[%s2411_s20 + $0x98] sm:$0xff] %v2141_v50 }
 0x15a   : > { %v1426_v53 = vadd.f32 %v2402_v41, %v1260_v51  ;;  %v1263_v54 = vadd.f32 %v1925_v52, %v1813_v48 }
 0x15b   : > { %v1814_v55 = vpop.f32.mrb[48].mxu0 }
 0x15c   : > { %2146 = vtanh.f32 %v1426_v53  ;;  %v1427_v56 = vadd.f32 %v2402_v41, %v1263_v54  ;;  %v1926_v57 = vpop.f32.mrb[48].mxu1  ;;  %v1815_v58 = vpop.f32.mrb[49].mxu0 }
 0x15d   : > { %v1816_v59 = vadd.f32 %v1815_v58, %v1814_v55  ;;  %v1927_v60 = vpop.f32.mrb[49].mxu1  ;;  %v1817_v61 = vpop.f32.mrb[50].mxu0 }
 0x15e   : > { %v2143_v62 = vpop.eup %2142  ;;  %2148 = vtanh.f32 %v1427_v56  ;;  %v1928_v63 = vadd.f32 %v1927_v60, %v1926_v57  ;;  %v1929_v0 = vpop.f32.mrb[50].mxu1 }
 0x15f   : > { %v1818_v1 = vpop.f32.mrb[51].mxu0  ;;  %1488 = vst [vmem:[%s2411_s20 + $0xa0] sm:$0xff] %v2143_v62  ;;  %v1930_v3 = vpop.f32.mrb[51].mxu1 }
 0x160   : > { %v1819_v2 = vadd.f32 %v1818_v1, %v1817_v61  ;;  %v2145_v4 = vpop.eup %2144  ;;  %v1268_v5 = vadd.f32 %v1928_v63, %v1816_v59  ;;  %v1931_v6 = vadd.f32 %v1930_v3, %v1929_v0 }
 0x161   : > { %1489 = vst [vmem:[%s2411_s20 + $0xa8] sm:$0xff] %v2145_v4 }
 0x162   : > { %v1428_v7 = vadd.f32 %v2402_v41, %v1268_v5  ;;  %v1271_v8 = vadd.f32 %v1931_v6, %v1819_v2 }
 0x163   : > { %v1820_v9 = vpop.f32.mrb[52].mxu0 }
 0x164   : > { %2150 = vtanh.f32 %v1428_v7  ;;  %v1429_v10 = vadd.f32 %v2402_v41, %v1271_v8  ;;  %v1932_v11 = vpop.f32.mrb[52].mxu1  ;;  %v1821_v12 = vpop.f32.mrb[53].mxu0 }
 0x165   : > { %v1822_v13 = vadd.f32 %v1821_v12, %v1820_v9  ;;  %v1933_v14 = vpop.f32.mrb[53].mxu1  ;;  %v1823_v15 = vpop.f32.mrb[54].mxu0 }
 0x166   : > { %v2147_v16 = vpop.eup %2146  ;;  %2152 = vtanh.f32 %v1429_v10  ;;  %v1934_v17 = vadd.f32 %v1933_v14, %v1932_v11  ;;  %v1935_v18 = vpop.f32.mrb[54].mxu1 }
 0x167   : > { %v1824_v19 = vpop.f32.mrb[55].mxu0  ;;  %1490 = vst [vmem:[%s2411_s20 + $0xb0] sm:$0xff] %v2147_v16  ;;  %v1936_v21 = vpop.f32.mrb[55].mxu1 }
 0x168   : > { %v1825_v20 = vadd.f32 %v1824_v19, %v1823_v15  ;;  %v2149_v22 = vpop.eup %2148  ;;  %v1276_v23 = vadd.f32 %v1934_v17, %v1822_v13  ;;  %v1937_v24 = vadd.f32 %v1936_v21, %v1935_v18 }
 0x169   : > { %1491 = vst [vmem:[%s2411_s20 + $0xb8] sm:$0xff] %v2149_v22 }
 0x16a   : > { %v1430_v25 = vadd.f32 %v2402_v41, %v1276_v23  ;;  %v1279_v26 = vadd.f32 %v1937_v24, %v1825_v20 }
 0x16b   : > { %v1826_v27 = vpop.f32.mrb[56].mxu0 }
 0x16c   : > { %2154 = vtanh.f32 %v1430_v25  ;;  %v1431_v28 = vadd.f32 %v2402_v41, %v1279_v26  ;;  %v1938_v29 = vpop.f32.mrb[56].mxu1  ;;  %v1827_v30 = vpop.f32.mrb[57].mxu0 }
 0x16d   : > { %v1828_v31 = vadd.f32 %v1827_v30, %v1826_v27  ;;  %v1939_v32 = vpop.f32.mrb[57].mxu1  ;;  %v1829_v33 = vpop.f32.mrb[58].mxu0 }
 0x16e   : > { %v2151_v34 = vpop.eup %2150  ;;  %2156 = vtanh.f32 %v1431_v28  ;;  %v1940_v35 = vadd.f32 %v1939_v32, %v1938_v29  ;;  %v1941_v36 = vpop.f32.mrb[58].mxu1 }
 0x16f   : > { %v1830_v37 = vpop.f32.mrb[59].mxu0  ;;  %1492 = vst [vmem:[%s2411_s20 + $0xc0] sm:$0xff] %v2151_v34  ;;  %v1942_v39 = vpop.f32.mrb[59].mxu1 }
 0x170   : > { %v1831_v38 = vadd.f32 %v1830_v37, %v1829_v33  ;;  %v2153_v40 = vpop.eup %2152  ;;  %v1284_v42 = vadd.f32 %v1940_v35, %v1828_v31  ;;  %v1943_v43 = vadd.f32 %v1942_v39, %v1941_v36 }
 0x171   : > { %1493 = vst [vmem:[%s2411_s20 + $0xc8] sm:$0xff] %v2153_v40 }
 0x172   : > { %v1432_v44 = vadd.f32 %v2402_v41, %v1284_v42  ;;  %v1287_v45 = vadd.f32 %v1943_v43, %v1831_v38 }
 0x173   : > { %v1832_v46 = vpop.f32.mrb[60].mxu0 }
 0x174   : > { %2158 = vtanh.f32 %v1432_v44  ;;  %v1433_v47 = vadd.f32 %v2402_v41, %v1287_v45  ;;  %v1944_v48 = vpop.f32.mrb[60].mxu1  ;;  %v1833_v49 = vpop.f32.mrb[61].mxu0 }
 0x175   : > { %v1834_v50 = vadd.f32 %v1833_v49, %v1832_v46  ;;  %v1945_v51 = vpop.f32.mrb[61].mxu1  ;;  %v1835_v52 = vpop.f32.mrb[62].mxu0 }
 0x176   : > { %v2155_v53 = vpop.eup %2154  ;;  %2160 = vtanh.f32 %v1433_v47  ;;  %v1946_v54 = vadd.f32 %v1945_v51, %v1944_v48  ;;  %v1947_v55 = vpop.f32.mrb[62].mxu1 }
 0x177   : > { %v1836_v56 = vpop.f32.mrb[63].mxu0  ;;  %1494 = vst [vmem:[%s2411_s20 + $0xd0] sm:$0xff] %v2155_v53  ;;  %v1948_v58 = vpop.f32.mrb[63].mxu1 }
 0x178   : > { %v1837_v57 = vadd.f32 %v1836_v56, %v1835_v52  ;;  %v2157_v59 = vpop.eup %2156  ;;  %v1292_v60 = vadd.f32 %v1946_v54, %v1834_v50  ;;  %v1949_v61 = vadd.f32 %v1948_v58, %v1947_v55 }
 0x179   : > { %1495 = vst [vmem:[%s2411_s20 + $0xd8] sm:$0xff] %v2157_v59 }
 0x17a   : > { %v1434_v62 = vadd.f32 %v2402_v41, %v1292_v60  ;;  %v1295_v63 = vadd.f32 %v1949_v61, %v1837_v57 }
 0x17c   : > { %2162 = vtanh.f32 %v1434_v62  ;;  %v1435_v0 = vadd.f32 %v2402_v41, %v1295_v63 }
 0x17e   : > { %v2159_v1 = vpop.eup %2158  ;;  %2164 = vtanh.f32 %v1435_v0 }
 0x17f   : > { %1496 = vst [vmem:[%s2411_s20 + $0xe0] sm:$0xff] %v2159_v1 }
 0x180   : > { %v2161_v2 = vpop.eup %2160 }
 0x181   : > { %1497 = vst [vmem:[%s2411_s20 + $0xe8] sm:$0xff] %v2161_v2 }
 0x186   : > { %v2163_v3 = vpop.eup %2162 }
 0x187   : > { %1498 = vst [vmem:[%s2411_s20 + $0xf0] sm:$0xff] %v2163_v3 }
 0x188   : > { %v2165_v4 = vpop.eup %2164 }
 0x189   : > { %1499 = vst [vmem:[%s2411_s20 + $0xf8] sm:$0xff] %v2165_v4 }
 0x18a PF: > { %s13_s14 = sadd.s32 1, %s2188_s14   ;;  %s2487_s12 = smov %s2184_s13 }
 0x18b   : > { %p10_p5 = scmp.ge.s32.totalorder %s13_s14, 4   ;;  %s2488_s13 = smov %s2490_s15 }
 0x18d   :  { %12 = sbr.rel (!%p10_p5) target bundleno = 2 (0x2), region = 76 }

</bundles_post_ra>
